<compile_context>
chip_gen: v7x
topology: tpu7x:2x2x1
jax: 0.10.0
libtpu: 0.0.40
codegen_flags: <defaults>
</compile_context>

<pallas_src>
import math

import jax
import jax.numpy as jnp
from jax.experimental import pallas as pl
from jax.experimental.pallas import tpu as pltpu


def _temporal_gate_kernel(x_ref, m_ref, g_ref):
    # x_ref: (BR, L) block of packed rows (G groups of T per lane row).
    # m_ref: (L, G) block-diagonal 1/T reduction matrix.
    # g_ref: (BR, G) per-group gate.
    x = x_ref[...].astype(jnp.float32)
    mean = jnp.dot(
        x, m_ref[...],
        preferred_element_type=jnp.float32,
        precision=jax.lax.Precision.HIGHEST,   # MXU is otherwise idle; keep f32 accuracy
    )
    # sigmoid: exp rides the EUP slot; the divide only touches the T-x-smaller output.
    g_ref[...] = (1.0 / (1.0 + jnp.exp(-mean))).astype(g_ref.dtype)


def _choose_groups_per_row(nr, t, lane_target=2048):
    """Groups per packed lane row.  Must divide nr (free reshape, no padding).

    Prefer G with (G*T) % 128 == 0 (fully dense lanes); otherwise the largest
    divisor keeping the lane width <= lane_target."""
    g0 = 128 // math.gcd(t, 128)           # smallest G making G*T a multiple of 128
    divs = set()
    i = 1
    while i * i <= nr:
        if nr % i == 0:
            divs.add(i)
            divs.add(nr // i)
        i += 1
    cap_aligned = max(lane_target // t, g0)
    aligned = [d for d in divs if d % g0 == 0 and d <= cap_aligned]
    if aligned:
        return max(aligned)
    cap = max(lane_target // t, 1)
    unaligned = [d for d in divs if d <= cap]
    return max(unaligned) if unaligned else 1


def _vmem_capacity_bytes():
    try:
        return int(pltpu.get_tpu_info().vmem_capacity_bytes)
    except Exception:
        return 64 * 1024 * 1024             # conservative: v7x per-TensorCore VMEM


def _pick_block_rows(r, l, itemsize, vmem_bytes):
    """Rows per grid step: multiple of 8, sized against a per-buffer VMEM budget."""
    per_buf = 16 * 1024 * 1024 if vmem_bytes >= 100 * 1024 * 1024 else 8 * 1024 * 1024
    lanes_padded = ((l + 127) // 128) * 128
    bytes_per_row = lanes_padded * max(int(itemsize), 1)
    cap = max(8, (per_buf // bytes_per_row) // 8 * 8)
    if r >= 16:                             # keep >= 2 blocks so both v7x TCs stream
        cap = min(cap, max(8, (r // 2) // 8 * 8))
    return r if r <= cap else cap


def temporal_attention(x):
    """x: (N, C, T, V) -> sigmoid(mean over groups of T consecutive flat elements),
    broadcast back, reshaped to (N, C, T, V) — exactly the PyTorch module."""
    N, C, T, V = x.shape
    nr = N * C * V                          # number of length-T groups
    g = _choose_groups_per_row(nr, T)
    l = g * T
    r = nr // g
    xp = x.reshape(r, l)                    # free row-major repack: g whole groups per row

    # Block-diagonal reduction matrix: red[i, j] = 1/T iff i // T == j.
    row_group = jax.lax.broadcasted_iota(jnp.int32, (l, g), 0) // T
    col = jax.lax.broadcasted_iota(jnp.int32, (l, g), 1)
    red = jnp.where(row_group == col, jnp.float32(1.0 / T), jnp.float32(0.0))

    vmem_cap = _vmem_capacity_bytes()
    br = _pick_block_rows(r, l, x.dtype.itemsize, vmem_cap)
    vmem_limit = (64 * 1024 * 1024 if vmem_cap >= 100 * 1024 * 1024
                  else 40 * 1024 * 1024)

    gate = pl.pallas_call(
        _temporal_gate_kernel,
        out_shape=jax.ShapeDtypeStruct((r, g), jnp.float32),
        grid_spec=pltpu.PrefetchScalarGridSpec(
            num_scalar_prefetch=0,
            grid=(pl.cdiv(r, br),),
            in_specs=[
                pl.BlockSpec((br, l), lambda i: (i, 0)),
                pl.BlockSpec((l, g), lambda i: (0, 0)),   # constant block -> fetched once
            ],
            out_specs=pl.BlockSpec((br, g), lambda i: (i, 0)),
        ),
        compiler_params=pltpu.CompilerParams(
            dimension_semantics=("parallel",),            # shard row chunks across v7x TCs
            vmem_limit_bytes=vmem_limit,
        ),
    )(xp, red)

    # Broadcast over T in the wrapper so XLA fuses it into consumers; the kernel
    # never writes the T-fold-redundant tensor.
    gate_flat = gate.reshape(nr)
    out = jnp.broadcast_to(gate_flat[:, None], (nr, T))
    return out.reshape(N, C, T, V).astype(x.dtype)


def _reference(x):
    N, C, T, V = x.shape
    xf = x.reshape(N, C * V, T)             # same raw-memory reinterpret as torch .view
    m = jnp.mean(xf.astype(jnp.float32), axis=-1, keepdims=True)
    gate = jax.nn.sigmoid(m)
    out = jnp.broadcast_to(gate, xf.shape)
    return out.reshape(N, C, T, V).astype(x.dtype)


if __name__ == "__main__":
    key = jax.random.PRNGKey(0)
    k1, k2, k3 = jax.random.split(key, 3)

    # Case 1: small shape consistent with the module; T*V multiple of 128 (dense lanes).
    x1 = jax.random.normal(k1, (2, 4, 16, 16), dtype=jnp.float32)
    o1 = jax.block_until_ready(temporal_attention(x1))
    r1 = _reference(x1)
    assert o1.shape == x1.shape
    assert jnp.allclose(o1, r1, atol=1e-4, rtol=1e-4), float(jnp.max(jnp.abs(o1 - r1)))

    # Case 2: T=12 (does not divide 128), V=20 -> exercises the packing fallback path.
    x2 = jax.random.normal(k2, (2, 8, 12, 20), dtype=jnp.float32)
    o2 = jax.block_until_ready(temporal_attention(x2))
    r2 = _reference(x2)
    assert o2.shape == x2.shape
    assert jnp.allclose(o2, r2, atol=1e-4, rtol=1e-4), float(jnp.max(jnp.abs(o2 - r2)))

    # Case 3: enough rows for a multi-block "parallel" grid with a partial edge block.
    x3 = jax.random.normal(k3, (4, 32, 16, 25), dtype=jnp.float32)
    o3 = jax.block_until_ready(temporal_attention(x3))
    r3 = _reference(x3)
    assert o3.shape == x3.shape
    assert jnp.allclose(o3, r3, atol=1e-4, rtol=1e-4), float(jnp.max(jnp.abs(o3 - r3)))

    print("KERNEL_OK")
</pallas_src>

<mosaic_0001>
module attributes {stable_mosaic.version = 11 : i64} {
  func.func @_temporal_gate_kernel(%arg0: i32, %arg1: memref<1x2048xf32, #tpu.memory_space<vmem>>, %arg2: memref<2048x128xf32, #tpu.memory_space<vmem>>, %arg3: memref<1x128xf32, #tpu.memory_space<vmem>>) attributes {dimension_semantics = [#tpu.dimension_semantics<parallel>], iteration_bounds = array<i64: 1>, scalar_prefetch = 0 : i64, scratch_operands = 0 : i64, tpu.core_type = #tpu.core_type<tc>, window_params = [{transform_indices = @transform_0, window_bounds = array<i64: 1, 2048>}, {pipeline_mode = #tpu.pipeline_mode<synchronous>, transform_indices = @transform_1, window_bounds = array<i64: 2048, 128>}, {transform_indices = @transform_2, window_bounds = array<i64: 1, 128>}]} {
    %c0 = arith.constant 0 : index
    %c0_0 = arith.constant 0 : index
    %0 = vector.load %arg1[%c0, %c0_0] : memref<1x2048xf32, #tpu.memory_space<vmem>>, vector<1x2048xf32>
    %c0_1 = arith.constant 0 : index
    %c0_2 = arith.constant 0 : index
    %1 = vector.load %arg2[%c0_1, %c0_2] : memref<2048x128xf32, #tpu.memory_space<vmem>>, vector<2048x128xf32>
    %cst = arith.constant dense<0.000000e+00> : vector<1x128xf32>
    %2 = tpu.matmul %0, %1, %cst {dimension_numbers = #tpu.dot_dimension_numbers<[1], [0], [0], [1], [0, 0, 1, 1], [], []>, precision = #tpu.contract_precision<fp32>} : vector<1x2048xf32>, vector<2048x128xf32>, vector<1x128xf32> -> vector<1x128xf32>
    %cst_3 = arith.constant 0.000000e+00 : f32
    %3 = vector.broadcast %cst_3 : f32 to vector<1x128xf32>
    %4 = arith.subf %3, %2 : vector<1x128xf32>
    %5 = math.exp %4 : vector<1x128xf32>
    %cst_4 = arith.constant 1.000000e+00 : f32
    %6 = vector.broadcast %cst_4 : f32 to vector<1x128xf32>
    %7 = arith.addf %6, %5 : vector<1x128xf32>
    %cst_5 = arith.constant 1.000000e+00 : f32
    %8 = vector.broadcast %cst_5 : f32 to vector<1x128xf32>
    %9 = arith.divf %8, %7 : vector<1x128xf32>
    %c0_6 = arith.constant 0 : index
    %c0_7 = arith.constant 0 : index
    %10 = vector.load %arg3[%c0_6, %c0_7] : memref<1x128xf32, #tpu.memory_space<vmem>>, vector<1x128xf32>
    tpu.vector_store %arg3[%c0_6, %c0_7], %9 {strides = array<i32>} : memref<1x128xf32, #tpu.memory_space<vmem>>, vector<1x128xf32>,
    return
  }
  func.func @transform_0(%arg0: i32) -> (i32, i32) {
    %c0_i32 = arith.constant 0 : i32
    %c0_i32_0 = arith.constant 0 : i32
    return %arg0, %c0_i32 : i32, i32
  }
  func.func @transform_1(%arg0: i32) -> (i32, i32) {
    %c0_i32 = arith.constant 0 : i32
    %c0_i32_0 = arith.constant 0 : i32
    %c0_i32_1 = arith.constant 0 : i32
    return %c0_i32, %c0_i32_0 : i32, i32
  }
  func.func @transform_2(%arg0: i32) -> (i32, i32) {
    %c0_i32 = arith.constant 0 : i32
    %c0_i32_0 = arith.constant 0 : i32
    return %arg0, %c0_i32 : i32, i32
  }
}

</mosaic_0001>

<bundles_post_ra>
// kernel: tpu_custom_call.1
= control target key start
LH: loop header
LB: loop body
LE: loop exit
PB: predicated region body
PF: predicated region fallthrough
CT: control target
= control target key end

     0   :  { %7 = vsyncpa [#allocation3], 0  ;;  %s14690_s0 = inlined_call_operand.hbm [shape: f32[1,2048], index: 0, kind: input, shape index: {}]   ;;  %s14691_s1 = inlined_call_operand.hbm [shape: f32[2048,128], index: 1, kind: input, shape index: {}]   ;;  %s14692_s2 = inlined_call_operand.hbm [shape: f32[1,128], index: 2, kind: output, shape index: {}]  }
   0x1   :  { %8 = vsyncpa [#allocation6], 0 }
   0x2   :  { %9 = vsyncpa [#allocation4], 0  ;;  %s10598_s9 = smov [#allocation2]   ;;  %s10599_s11 = smov [#allocation5]  }
   0x3   :  { %s16_s10 = sshll.u32 %s10598_s9, 4  ;;  %s25_s12 = sshll.u32 %s10599_s11, 4  ;;  %s17_s10 = int_to_ptr.vmem [resolvable:$true] %s16_s10  ;;  %s10618_s12 = int_to_ptr.vmem [resolvable:$true] %s25_s12 }
   0x4   :  { %s10526_s15 = scalar_lea.hbm %s14690_s0, 256 }
   0x5   :  { %p10527_p0 = scmp.ne.s32.totalorder %s14690_s0, %s10526_s15  ;;  %p10530_p1 = scmp.lt.u32.totalorder %s10526_s15, %s14690_s0 }
   0x7   :  { %p10532_p2 = pnand %p10530_p1, %p10527_p0 }
   0x9   :  { %10535 = shalt.err (!%p10532_p2)
}
   0xa   :  { %s10536_s20 = scalar_lea.vmem %s17_s10, 256  ;;  %p10541_p4 = scmp.lt.s32.totalorder %s17_s10, %s17_s10 }
   0xb   :  { %p10537_p3 = scmp.ne.s32.totalorder %s17_s10, %s10536_s20  ;;  %p10542_p5 = scmp.lt.s32.totalorder %s10536_s20, %s10536_s20 }
   0xd   :  { %p10543_p6 = por %p10542_p5, %p10541_p4 }
   0xf   :  { %p10544_p7 = pnand %p10543_p6, %p10537_p3 }
  0x11   :  { %10547 = shalt.err (!%p10544_p7)
}
  0x12   :  { %19 = dma.hbm_to_vmem [thread:$0]  %s14690_s0, 256, %s17_s10, [#allocation3]  }
  0x13   :  { %s10548_s25 = scalar_lea.hbm %s14691_s1, 32768 }
  0x14   :  { %p10549_p8 = scmp.ne.s32.totalorder %s14691_s1, %s10548_s25  ;;  %p10552_p9 = scmp.lt.u32.totalorder %s10548_s25, %s14691_s1 }
  0x16   :  { %p10554_p10 = pnand %p10552_p9, %p10549_p8 }
  0x18   :  { %10557 = shalt.err (!%p10554_p10)
}
  0x19   :  { %s10558_s30 = scalar_lea.vmem %s10618_s12, 32768  ;;  %p10563_p12 = scmp.lt.s32.totalorder %s10618_s12, %s10618_s12 }
  0x1a   :  { %p10559_p11 = scmp.ne.s32.totalorder %s10618_s12, %s10558_s30  ;;  %p10564_p13 = scmp.lt.s32.totalorder %s10558_s30, %s10558_s30 }
  0x1c   :  { %p10565_p0 = por %p10564_p13, %p10563_p12 }
  0x1e   :  { %p10566_p1 = pnand %p10565_p0, %p10559_p11 }
  0x20   :  { %10569 = shalt.err (!%p10566_p1)
}
  0x21   :  { %s10600_s0 = smov 128   ;;  %s10601_s3 = smov 8  }
  0x22   :  { %31 = dma.hbm_to_vmem [thread:$0]  %s14691_s1, 32768, %s10618_s12, [#allocation6], %s10600_s0, %s10600_s0, %s10601_s3  }
  0x23   :  { %10592 = dma.done.wait [#allocation3], 256  }
  0x24   :  { %10593 = vsyncadd [#allocation3], 4294967040 }
  0x25   :  { %10594 = dma.done.wait [#allocation6], 32768  }
  0x26   :  { %10595 = vsyncadd [#allocation6], 4294934528  ;;  %v298_v0 = vlaneseq  ;;  %v56_v2 = vld [vmem:[#allocation5 + $0x80] sm:$0xff]  ;;  %v57_v3 = vld [vmem:[#allocation5 + $0x88] sm:$0xff]  ;;  %s10602_s1 = smov [#allocation7]  }
  0x27   :  { %v40_v4 = vld [vmem:[#allocation5] sm:$0xff]  ;;  %v427_v5 = vand.u32 4294901760, %v56_v2  ;;  %v430_v6 = vand.u32 4294901760, %v57_v3  ;;  %v41_v7 = vld [vmem:[#allocation5 + $0x8] sm:$0xff]  ;;  %v58_v9 = vld [vmem:[#allocation5 + $0x90] sm:$0xff]  ;;  %s7287_s6 = sshll.u32 %s10602_s1, 4  ;;  %s7288_s6 = int_to_ptr.vmem [resolvable:$true] %s7287_s6 }
  0x28   :  { %v10649_v1 = vshrl.u32 %v298_v0, 7  ;;  %v379_v8 = vand.u32 4294901760, %v40_v4  ;;  %v59_v10 = vld [vmem:[#allocation5 + $0x98] sm:$0xff]  ;;  %v382_v11 = vand.u32 4294901760, %v41_v7  ;;  %v433_v12 = vand.u32 4294901760, %v58_v9  ;;  %v42_v14 = vld [vmem:[#allocation5 + $0x10] sm:$0xff]  ;;  %p10575_p3 = scmp.lt.s32.totalorder %s7288_s6, %s7288_s6 }
  0x29   :  { %v436_v13 = vand.u32 4294901760, %v59_v10  ;;  %v43_v15 = vld [vmem:[#allocation5 + $0x18] sm:$0xff]  ;;  %v10652_v17 = vpack.c.bf16 %v430_v6, %v427_v5  ;;  %v385_v19 = vand.u32 4294901760, %v42_v14  ;;  %v60_v21 = vld [vmem:[#allocation5 + $0xa0] sm:$0xff]  ;;  %v61_v22 = vld [vmem:[#allocation5 + $0xa8] sm:$0xff]  ;;  %v10673_v35 = vsub.f32 %v56_v2, %v427_v5  ;;  %s10570_s7 = scalar_lea.vmem %s7288_s6, 16 }
  0x2a   :  { %15125 = vst [vmem:[#allocation11_spill] sm:$0xff] %v10649_v1  ;;  %v10654_v18 = vsub.f32 %v40_v4, %v379_v8  ;;  %v388_v20 = vand.u32 4294901760, %v43_v15  ;;  %v10656_v23 = vpack.c.bf16 %v382_v11, %v379_v8  ;;  %v10658_v24 = vsub.f32 %v41_v7, %v382_v11  ;;  %v44_v26 = vld [vmem:[#allocation5 + $0x20] sm:$0xff]  ;;  %v45_v27 = vld [vmem:[#allocation5 + $0x28] sm:$0xff]  ;;  %v62_v41 = vld [vmem:[#allocation5 + $0xb0] sm:$0xff]  ;;  %p10571_p2 = scmp.ne.s32.totalorder %s7288_s6, %s10570_s7  ;;  %s10574_s8 = scalar_lea.vmem %s7288_s6, 32 }
  0x2b   :  { %v10660_v25 = vpack.c.bf16 %v436_v13, %v433_v12  ;;  %8978 = vmatprep.subr.bf16.mxu0 %v10652_v17  ;;  %v10664_v29 = vsub.f32 %v58_v9, %v433_v12  ;;  %v10666_v30 = vsub.f32 %v59_v10, %v436_v13  ;;  %v10670_v32 = vsub.f32 %v42_v14, %v385_v19  ;;  %v63_v46 = vld [vmem:[#allocation5 + $0xb8] sm:$0xff]  ;;  %v46_v59 = vld [vmem:[#allocation5 + $0x30] sm:$0xff]  ;;  %v64_v10 = vld [vmem:[#allocation5 + $0xc0] sm:$0xff]  ;;  %p10576_p4 = scmp.lt.s32.totalorder %s10574_s8, %s10570_s7 }
  0x2c   :  { %v10668_v31 = vpack.c.bf16 %v388_v20, %v385_v19  ;;  %8980 = vmatpush3.bf16.msra.mxu0 %v10656_v23  ;;  %v439_v33 = vand.u32 4294901760, %v60_v21  ;;  %v442_v34 = vand.u32 4294901760, %v61_v22  ;;  %v10675_v36 = vsub.f32 %v57_v3, %v430_v6  ;;  %v47_v60 = vld [vmem:[#allocation5 + $0x38] sm:$0xff]  ;;  %v65_v11 = vld [vmem:[#allocation5 + $0xc8] sm:$0xff]  ;;  %v48_v19 = vld [vmem:[#allocation5 + $0x40] sm:$0xff] }
  0x2d   :  { %8982 = vmatprep.subr.bf16.mxu0 %v10660_v25  ;;  %v391_v37 = vand.u32 4294901760, %v44_v26  ;;  %v394_v38 = vand.u32 4294901760, %v45_v27  ;;  %v14706_v39 = vand.u32 4294901760, %v10654_v18  ;;  %v14705_v40 = vand.u32 4294901760, %v10658_v24  ;;  %p10577_p5 = por %p10576_p4, %p10575_p3 }
  0x2e   :  { %v10680_v42 = vsub.f32 %v43_v15, %v388_v20  ;;  %v10682_v43 = vpack.c.bf16 %v442_v34, %v439_v33  ;;  %v10684_v44 = vsub.f32 %v60_v21, %v439_v33  ;;  %v14710_v45 = vand.u32 4294901760, %v10673_v35 }
  0x2f   :  { %v10687_v47 = vsub.f32 %v61_v22, %v442_v34  ;;  %v14708_v48 = vand.u32 4294901760, %v10675_v36  ;;  %v10690_v49 = vpack.c.bf16 %v394_v38, %v391_v37  ;;  %v10692_v50 = vsub.f32 %v44_v26, %v391_v37  ;;  %p10578_p6 = pnand %p10577_p5, %p10571_p2 }
  0x30   :  { %8984 = vmatpush3.bf16.msra.mxu0 %v10668_v31  ;;  %v606_v51 = vsub.f32 %v10673_v35, %v14710_v45  ;;  %v494_v52 = vsub.f32 %v10654_v18, %v14706_v39  ;;  %v501_v53 = vsub.f32 %v10658_v24, %v14705_v40  ;;  %v445_v54 = vand.u32 4294901760, %v62_v41  ;;  %v70_v40 = vld [vmem:[#allocation5 + $0xf0] sm:$0xff]  ;;  %v71_v39 = vld [vmem:[#allocation5 + $0xf8] sm:$0xff] }
  0x31   :  { %8986 = vmatprep.subr.bf16.mxu0 %v10682_v43  ;;  %v613_v55 = vsub.f32 %v10675_v36, %v14708_v48  ;;  %v448_v56 = vand.u32 4294901760, %v63_v46  ;;  %v14703_v57 = vand.u32 4294901760, %v10664_v29  ;;  %v14701_v58 = vand.u32 4294901760, %v10666_v30 }
  0x32   :  { %v607_v61 = vand.u32 4294901760, %v606_v51  ;;  %v10710_v62 = vsub.f32 %v45_v27, %v394_v38  ;;  %v495_v63 = vand.u32 4294901760, %v494_v52  ;;  %v502_v0 = vand.u32 4294901760, %v501_v53  ;;  %v49_v38 = vld [vmem:[#allocation5 + $0x48] sm:$0xff] }
  0x33   :  { %v614_v2 = vand.u32 4294901760, %v613_v55  ;;  %v10712_v3 = vpack.c.bf16 %v448_v56, %v445_v54  ;;  %v10714_v4 = vsub.f32 %v62_v41, %v445_v54  ;;  %v620_v5 = vsub.f32 %v10664_v29, %v14703_v57 }
  0x34   :  { %8988 = vmatpush3.bf16.msra.mxu0 %v10690_v49  ;;  %v9011_v6 = vpack.c.bf16 %v502_v0, %v495_v63  ;;  %v627_v7 = vsub.f32 %v10666_v30, %v14701_v58  ;;  %v397_v8 = vand.u32 4294901760, %v46_v59  ;;  %v400_v9 = vand.u32 4294901760, %v47_v60 }
  0x35   :  { %v9009_v12 = vpack.c.bf16 %v614_v2, %v607_v61  ;;  %8990 = vmatprep.subr.bf16.mxu0 %v10712_v3  ;;  %v621_v13 = vand.u32 4294901760, %v620_v5  ;;  %v14700_v14 = vand.u32 4294901760, %v10670_v32  ;;  %v14698_v15 = vand.u32 4294901760, %v10680_v42  ;;  %v66_v2 = vld [vmem:[#allocation5 + $0xd0] sm:$0xff]  ;;  %v67_v5 = vld [vmem:[#allocation5 + $0xd8] sm:$0xff] }
  0x36   :  { %v10726_v20 = vsub.f32 %v63_v46, %v448_v56  ;;  %v628_v21 = vand.u32 4294901760, %v627_v7  ;;  %v10728_v22 = vpack.c.bf16 %v400_v9, %v397_v8  ;;  %v10730_v26 = vsub.f32 %v46_v59, %v397_v8 }
  0x37   :  { %9010 = vmatprep.subr.bf16.mxu1 %v9009_v12  ;;  %v508_v27 = vsub.f32 %v10670_v32, %v14700_v14  ;;  %v515_v33 = vsub.f32 %v10680_v42, %v14698_v15  ;;  %v451_v34 = vand.u32 4294901760, %v64_v10  ;;  %v454_v37 = vand.u32 4294901760, %v65_v11 }
  0x38   :  { %9012 = vmatpush3.bf16.msra.mxu1 %v9011_v6  ;;  %v9013_v41 = vpack.c.bf16 %v628_v21, %v621_v13  ;;  %8992 = vmatpush3.bf16.msra.mxu0 %v10728_v22  ;;  %v14696_v46 = vand.u32 4294901760, %v10684_v44  ;;  %v14695_v51 = vand.u32 4294901760, %v10687_v47  ;;  %v403_v52 = vand.u32 4294901760, %v48_v19 }
  0x39   :  { %v10741_v53 = vsub.f32 %v47_v60, %v400_v9  ;;  %v509_v54 = vand.u32 4294901760, %v508_v27  ;;  %v516_v55 = vand.u32 4294901760, %v515_v33  ;;  %v10743_v56 = vpack.c.bf16 %v454_v37, %v451_v34  ;;  %v50_v9 = vld [vmem:[#allocation5 + $0x50] sm:$0xff] }
  0x3a   :  { %9014 = vmatprep.subr.bf16.mxu1 %v9013_v41  ;;  %v10745_v59 = vsub.f32 %v64_v10, %v451_v34  ;;  %v634_v61 = vsub.f32 %v10684_v44, %v14696_v46  ;;  %v641_v63 = vsub.f32 %v10687_v47, %v14695_v51  ;;  %v406_v0 = vand.u32 4294901760, %v49_v38  ;;  %v68_v51 = vld [vmem:[#allocation5 + $0xe0] sm:$0xff]  ;;  %v69_v46 = vld [vmem:[#allocation5 + $0xe8] sm:$0xff] }
  0x3b   :  { %v9015_v60 = vpack.c.bf16 %v516_v55, %v509_v54  ;;  %8994 = vmatprep.subr.bf16.mxu0 %v10743_v56  ;;  %v10754_v6 = vsub.f32 %v65_v11, %v454_v37  ;;  %v14693_v7 = vand.u32 4294901760, %v10692_v50  ;;  %v14694_v8 = vand.u32 4294901760, %v10710_v62  ;;  %v51_v37 = vld [vmem:[#allocation5 + $0x58] sm:$0xff] }
  0x3c   :  { %v635_v10 = vand.u32 4294901760, %v634_v61  ;;  %v642_v12 = vand.u32 4294901760, %v641_v63  ;;  %v10758_v13 = vpack.c.bf16 %v406_v0, %v403_v52  ;;  %v10760_v21 = vsub.f32 %v48_v19, %v403_v52 }
  0x3d   :  { %9016 = vmatpush3.bf16.msra.mxu1 %v9015_v60  ;;  %v522_v27 = vsub.f32 %v10692_v50, %v14693_v7  ;;  %v529_v11 = vsub.f32 %v10710_v62, %v14694_v8  ;;  %v457_v33 = vand.u32 4294901760, %v66_v2  ;;  %v460_v34 = vand.u32 4294901760, %v67_v5 }
  0x3e   :  { %v9017_v41 = vpack.c.bf16 %v642_v12, %v635_v10  ;;  %8996 = vmatpush3.bf16.msra.mxu0 %v10758_v13  ;;  %v14697_v54 = vand.u32 4294901760, %v10714_v4  ;;  %v14699_v19 = vand.u32 4294901760, %v10726_v20  ;;  %v409_v52 = vand.u32 4294901760, %v50_v9 }
  0x3f   :  { %v10771_v55 = vsub.f32 %v49_v38, %v406_v0  ;;  %v523_v61 = vand.u32 4294901760, %v522_v27  ;;  %v530_v63 = vand.u32 4294901760, %v529_v11  ;;  %v10773_v60 = vpack.c.bf16 %v460_v34, %v457_v33  ;;  %v52_v11 = vld [vmem:[#allocation5 + $0x60] sm:$0xff] }
  0x40   :  { %9018 = vmatprep.subr.bf16.mxu1 %v9017_v41  ;;  %v10775_v7 = vsub.f32 %v66_v2, %v457_v33  ;;  %v648_v10 = vsub.f32 %v10714_v4, %v14697_v54  ;;  %v655_v12 = vsub.f32 %v10726_v20, %v14699_v19  ;;  %v412_v8 = vand.u32 4294901760, %v51_v37  ;;  %v53_v19 = vld [vmem:[#allocation5 + $0x68] sm:$0xff] }
  0x41   :  { %v9019_v38 = vpack.c.bf16 %v530_v63, %v523_v61  ;;  %8998 = vmatprep.subr.bf16.mxu0 %v10773_v60  ;;  %v10784_v0 = vsub.f32 %v67_v5, %v460_v34  ;;  %v14702_v27 = vand.u32 4294901760, %v10730_v26  ;;  %v14704_v2 = vand.u32 4294901760, %v10741_v53 }
  0x42   :  { %v649_v33 = vand.u32 4294901760, %v648_v10  ;;  %v656_v41 = vand.u32 4294901760, %v655_v12  ;;  %v10788_v54 = vpack.c.bf16 %v412_v8, %v409_v52  ;;  %v10790_v15 = vsub.f32 %v50_v9, %v409_v52 }
  0x43   :  { %9020 = vmatpush3.bf16.msra.mxu1 %v9019_v38  ;;  %v536_v61 = vsub.f32 %v10730_v26, %v14702_v27  ;;  %v543_v5 = vsub.f32 %v10741_v53, %v14704_v2  ;;  %v463_v34 = vand.u32 4294901760, %v68_v51  ;;  %v466_v63 = vand.u32 4294901760, %v69_v46 }
  0x44   :  { %15126 = vst [vmem:[#allocation12_spill] sm:$0xff] %v10788_v54  ;;  %v9021_v14 = vpack.c.bf16 %v656_v41, %v649_v33  ;;  %9000 = vmatpush3.bf16.msra.mxu0 %v10788_v54  ;;  %v14707_v10 = vand.u32 4294901760, %v10745_v59  ;;  %v14709_v9 = vand.u32 4294901760, %v10754_v6  ;;  %v415_v52 = vand.u32 4294901760, %v52_v11 }
  0x45   :  { %v10801_v12 = vsub.f32 %v51_v37, %v412_v8  ;;  %v537_v38 = vand.u32 4294901760, %v536_v61  ;;  %v544_v58 = vand.u32 4294901760, %v543_v5  ;;  %v10803_v27 = vpack.c.bf16 %v466_v63, %v463_v34  ;;  %v54_v61 = vld [vmem:[#allocation5 + $0x70] sm:$0xff] }
  0x46   :  { %9022 = vmatprep.subr.bf16.mxu1 %v9021_v14  ;;  %v10805_v57 = vsub.f32 %v68_v51, %v463_v34  ;;  %v662_v33 = vsub.f32 %v10745_v59, %v14707_v10  ;;  %v669_v41 = vsub.f32 %v10754_v6, %v14709_v9  ;;  %v418_v2 = vand.u32 4294901760, %v53_v19  ;;  %v55_v9 = vld [vmem:[#allocation5 + $0x78] sm:$0xff] }
  0x47   :  { %15127 = vst [vmem:[#allocation13_spill] sm:$0xff] %v10803_v27  ;;  %v9023_v8 = vpack.c.bf16 %v544_v58, %v537_v38  ;;  %9002 = vmatprep.subr.bf16.mxu0 %v10803_v27  ;;  %v10814_v37 = vsub.f32 %v69_v46, %v466_v63  ;;  %v14711_v14 = vand.u32 4294901760, %v10760_v21  ;;  %v14712_v51 = vand.u32 4294901760, %v10771_v55 }
  0x48   :  { %v663_v5 = vand.u32 4294901760, %v662_v33  ;;  %v670_v34 = vand.u32 4294901760, %v669_v41  ;;  %v10818_v10 = vpack.c.bf16 %v418_v2, %v415_v52  ;;  %v10820_v48 = vsub.f32 %v52_v11, %v415_v52 }
  0x49   :  { %9024 = vmatpush3.bf16.msra.mxu1 %v9023_v8  ;;  %v550_v58 = vsub.f32 %v10760_v21, %v14711_v14  ;;  %v557_v46 = vsub.f32 %v10771_v55, %v14712_v51  ;;  %v469_v63 = vand.u32 4294901760, %v70_v40  ;;  %v472_v38 = vand.u32 4294901760, %v71_v39 }
  0x4a   :  { %15128 = vst [vmem:[#allocation14_spill] sm:$0xff] %v10818_v10  ;;  %v9025_v45 = vpack.c.bf16 %v670_v34, %v663_v5  ;;  %9004 = vmatpush3.bf16.msra.mxu0 %v10818_v10  ;;  %v14715_v33 = vand.u32 4294901760, %v10775_v7  ;;  %v14716_v11 = vand.u32 4294901760, %v10784_v0  ;;  %v421_v52 = vand.u32 4294901760, %v54_v61  ;;  %v10843_v10 = vld [vmem:[#allocation2] sm:$0xff] }
  0x4b   :  { %v10831_v41 = vsub.f32 %v53_v19, %v418_v2  ;;  %v551_v8 = vand.u32 4294901760, %v550_v58  ;;  %v558_v28 = vand.u32 4294901760, %v557_v46  ;;  %v10833_v14 = vpack.c.bf16 %v472_v38, %v469_v63  ;;  %15130 = vst [vmem:[#allocation16_spill] sm:$0xff] %v10843_v10 }
  0x4c   :  { %9026 = vmatprep.subr.bf16.mxu1 %v9025_v45  ;;  %v10835_v16 = vsub.f32 %v70_v40, %v469_v63  ;;  %v676_v5 = vsub.f32 %v10775_v7, %v14715_v33  ;;  %v683_v34 = vsub.f32 %v10784_v0, %v14716_v11  ;;  %v424_v51 = vand.u32 4294901760, %v55_v9 }
  0x4d   :  { %15129 = vst [vmem:[#allocation15_spill] sm:$0xff] %v10833_v14  ;;  %v9027_v19 = vpack.c.bf16 %v558_v28, %v551_v8  ;;  %9006 = vmatprep.subr.bf16.mxu0 %v10833_v14  ;;  %v10846_v2 = vsub.f32 %v71_v39, %v472_v38  ;;  %v14717_v45 = vand.u32 4294901760, %v10790_v15  ;;  %v14718_v40 = vand.u32 4294901760, %v10801_v12 }
  0x4e   :  { %v677_v58 = vand.u32 4294901760, %v676_v5  ;;  %v684_v46 = vand.u32 4294901760, %v683_v34  ;;  %v10850_v63 = vpack.c.bf16 %v424_v51, %v421_v52  ;;  %v10852_v33 = vsub.f32 %v54_v61, %v421_v52 }
  0x4f   :  { %9028 = vmatpush3.bf16.msra.mxu1 %v9027_v19  ;;  %v564_v11 = vsub.f32 %v10790_v15, %v14717_v45  ;;  %v571_v28 = vsub.f32 %v10801_v12, %v14718_v40  ;;  %v15132_v39 = vsub.s32 1, %v10649_v1  ;;  %v14727_v8 = vand.u32 4294901760, %v10805_v57 }
  0x50   :  { %15131 = vst [vmem:[#allocation17_spill] sm:$0xff] %v10850_v63  ;;  %v9029_v5 = vpack.c.bf16 %v684_v46, %v677_v58  ;;  %9008 = vmatpush3.bf16.msra.mxu0 %v10850_v63  ;;  %v14728_v61 = vand.u32 4294901760, %v10814_v37  ;;  %v9041_v52 = vpack.c.bf16 %v10675_v36, %v10673_v35  ;;  %v15133_v34 = vsub.s32 0, %v10649_v1 }
  0x51   :  { %v305_v38 = vrot.slane %v10843_v10, %v15132_v39  ;;  %v565_v45 = vand.u32 4294901760, %v564_v11  ;;  %v572_v40 = vand.u32 4294901760, %v571_v28  ;;  %v690_v39 = vsub.f32 %v10805_v57, %v14727_v8 }
  0x52   :  { %v301_v19 = vrot.slane %v10843_v10, %v15133_v34  ;;  %9030 = vmatprep.subr.bf16.mxu1 %v9029_v5  ;;  %v697_v58 = vsub.f32 %v10814_v37, %v14728_v61  ;;  %9042 = vmatprep.subr.bf16.mxu0 %v9041_v52  ;;  %v14729_v1 = vand.u32 4294901760, %v10820_v48  ;;  %v14730_v34 = vand.u32 4294901760, %v10831_v41 }
  0x53   :  { %v10871_v14 = vand.u32 4294901760, %v305_v38  ;;  %v10883_v11 = vsub.f32 %v55_v9, %v424_v51  ;;  %v9031_v28 = vpack.c.bf16 %v572_v40, %v565_v45  ;;  %v691_v63 = vand.u32 4294901760, %v690_v39 }
  0x54   :  { %v10879_v46 = vand.u32 4294901760, %v301_v19  ;;  %v698_v5 = vand.u32 4294901760, %v697_v58  ;;  %v578_v52 = vsub.f32 %v10820_v48, %v14729_v1  ;;  %v585_v9 = vsub.f32 %v10831_v41, %v14730_v34 }
  0x55   :  { %15134 = vst [vmem:[#allocation18_spill] sm:$0xff] %v10871_v14  ;;  %v10886_v10 = vsub.f32 %v305_v38, %v10871_v14  ;;  %715 = vmatprep.mubr.f32.mxu1 %v10871_v14  ;;  %9032 = vmatpush3.bf16.msra.mxu1 %v9031_v28  ;;  %v14735_v45 = vand.u32 4294901760, %v10835_v16  ;;  %v14736_v40 = vand.u32 4294901760, %v10846_v2  ;;  %v591_v34 = vand.u32 4294901760, %v10852_v33 }
  0x56   :  { %v10890_v8 = vsub.f32 %v301_v19, %v10879_v46  ;;  %v9033_v38 = vpack.c.bf16 %v698_v5, %v691_v63  ;;  %v579_v19 = vand.u32 4294901760, %v578_v52  ;;  %v586_v58 = vand.u32 4294901760, %v585_v9 }
  0x57   :  { %v476_v51 = vand.u32 4294901760, %v10886_v10  ;;  %v704_v1 = vsub.f32 %v10835_v16, %v14735_v45  ;;  %v711_v28 = vsub.f32 %v10846_v2, %v14736_v40  ;;  %v9043_v52 = vpack.c.bf16 %v10658_v24, %v10654_v18 }
  0x58   :  { %v14739_v39 = vand.u32 4294901760, %v10890_v8  ;;  %9034 = vmatprep.subr.bf16.mxu1 %v9033_v38  ;;  %v9035_v5 = vpack.c.bf16 %v586_v58, %v579_v19  ;;  %v598_v9 = vand.u32 4294901760, %v10883_v11  ;;  %v592_v40 = vsub.f32 %v10852_v33, %v591_v34 }
  0x59   :  { %v477_v61 = vsub.f32 %v10886_v10, %v476_v51  ;;  %v705_v27 = vand.u32 4294901760, %v704_v1  ;;  %v712_v45 = vand.u32 4294901760, %v711_v28  ;;  %v9045_v38 = vpack.c.bf16 %v10666_v30, %v10664_v29 }
  0x5a   :  { %v483_v63 = vsub.f32 %v10890_v8, %v14739_v39  ;;  %9036 = vmatpush3.bf16.msra.mxu1 %v9035_v5  ;;  %v599_v19 = vsub.f32 %v10883_v11, %v598_v9  ;;  %v593_v39 = vand.u32 4294901760, %v592_v40  ;;  %v9047_v1 = vpack.c.bf16 %v10680_v42, %v10670_v32 }
  0x5b   :  { %v478_v14 = vand.u32 4294901760, %v477_v61  ;;  %v9037_v58 = vpack.c.bf16 %v712_v45, %v705_v27  ;;  %v9051_v5 = vpack.c.bf16 %v10710_v62, %v10692_v50  ;;  %v15135_v27 = vand.u32 4294901760, %v10673_v35 }
  0x5c   :  { %v484_v54 = vand.u32 4294901760, %v483_v63  ;;  %v600_v61 = vand.u32 4294901760, %v599_v19  ;;  %v9049_v63 = vpack.c.bf16 %v10687_v47, %v10684_v44  ;;  %v15137_v45 = vand.u32 4294901760, %v10654_v18 }
  0x5d   :  { %479 = vmatprep.mubr.f32.mxu0 %v478_v14  ;;  %9038 = vmatprep.subr.bf16.mxu1 %v9037_v58  ;;  %v15138_v40 = vand.u32 4294901760, %v10658_v24  ;;  %v15141_v58 = vand.u32 4294901760, %v10670_v32  ;;  %v15143_v35 = vand.u32 4294901760, %v10684_v44  ;;  %v15145_v24 = vand.u32 4294901760, %v10692_v50 }
  0x5e   :  { %485 = vmatmul.mubr.f32.vlgmr.msra.gmra.mrb[0].mxu0 %v484_v54  ;;  %v9039_v28 = vpack.c.bf16 %v600_v61, %v593_v39  ;;  %v15136_v54 = vand.u32 4294901760, %v10675_v36  ;;  %v15139_v39 = vand.u32 4294901760, %v10664_v29  ;;  %v15142_v61 = vand.u32 4294901760, %v10680_v42 }
  0x5f   :  { %9044 = vmatpush3.bf16.msra.mxu0 %v9043_v52  ;;  %852 = vmatprep.mubr.f32.mxu0 %v10886_v10  ;;  %v9107_v52 = vpack.c.bf16 %v15138_v40, %v15137_v45  ;;  %v15144_v36 = vand.u32 4294901760, %v10687_v47  ;;  %v15146_v29 = vand.u32 4294901760, %v10710_v62  ;;  %v15148_v32 = vand.u32 4294901760, %v10726_v20 }
  0x60   :  { %9046 = vmatprep.subr.bf16.mxu0 %v9045_v38  ;;  %v9105_v14 = vpack.c.bf16 %v15136_v54, %v15135_v27  ;;  %v15140_v38 = vand.u32 4294901760, %v10666_v30  ;;  %v10947_v10 = vpack.c.bf16 %v15142_v61, %v15141_v58  ;;  %9040 = vmatpush3.bf16.msra.mxu1 %v9039_v28  ;;  %v15147_v30 = vand.u32 4294901760, %v10714_v4 }
  0x61   :  { %v10953_v18 = vpack.c.bf16 %v15144_v36, %v15143_v35  ;;  %v10959_v27 = vpack.c.bf16 %v15146_v29, %v15145_v24  ;;  %v15149_v28 = vand.u32 4294901760, %v10730_v26  ;;  %v15150_v44 = vand.u32 4294901760, %v10741_v53  ;;  %9074 = vmatprep.subr.bf16.mxu1 %v10652_v17 }
  0x62   :  { %v9109_v19 = vpack.c.bf16 %v15140_v38, %v15139_v39  ;;  %v10965_v42 = vpack.c.bf16 %v15148_v32, %v15147_v30  ;;  %v15151_v47 = vand.u32 4294901760, %v10745_v59  ;;  %v15152_v50 = vand.u32 4294901760, %v10754_v6 }
  0x63   :  { %v10971_v54 = vpack.c.bf16 %v15150_v44, %v15149_v28  ;;  %9048 = vmatpush3.bf16.msra.mxu0 %v9047_v1  ;;  %v15153_v45 = vand.u32 4294901760, %v10760_v21  ;;  %v15154_v40 = vand.u32 4294901760, %v10771_v55  ;;  %v15155_v38 = vand.u32 4294901760, %v10775_v7  ;;  %717 = vmatmul.mubr.f32.vlgmr.msra.gmra.mrb[0].mxu1 %v10879_v46  ;;  %v15165_v44 = vld [vmem:[#allocation18_spill] sm:$0xff] }
  0x64   :  { %v10978_v62 = vpack.c.bf16 %v15152_v50, %v15151_v47  ;;  %v15156_v58 = vand.u32 4294901760, %v10784_v0  ;;  %9050 = vmatprep.subr.bf16.mxu0 %v9049_v63  ;;  %v9053_v1 = vpack.c.bf16 %v10726_v20, %v10714_v4  ;;  %v15157_v35 = vand.u32 4294901760, %v10790_v15  ;;  %9076 = vmatpush3.bf16.msra.mxu1 %v10656_v23 }
  0x65   :  { %v10984_v39 = vpack.c.bf16 %v15154_v40, %v15153_v45  ;;  %v15158_v36 = vand.u32 4294901760, %v10801_v12  ;;  %v15159_v29 = vand.u32 4294901760, %v10820_v48  ;;  %v15160_v30 = vand.u32 4294901760, %v10831_v41  ;;  %959 = vmatprep.mubr.f32.mxu1 %v476_v51  ;;  %9078 = vmatprep.subr.bf16.mxu1 %v10660_v25  ;;  %v90_v40 = vld [vmem:[#allocation5 + $0x190] sm:$0xff] }
  0x66   :  { %v10990_v61 = vpack.c.bf16 %v15156_v58, %v15155_v38  ;;  %v9055_v4 = vpack.c.bf16 %v10741_v53, %v10730_v26  ;;  %v9057_v20 = vpack.c.bf16 %v10754_v6, %v10745_v59  ;;  %v9059_v63 = vpack.c.bf16 %v10771_v55, %v10760_v21  ;;  %v15162_v21 = vld [vmem:[#allocation13_spill] sm:$0xff]  ;;  %v15163_v55 = vld [vmem:[#allocation14_spill] sm:$0xff] }
  0x67   :  { %v10998_v24 = vpack.c.bf16 %v15158_v36, %v15157_v35  ;;  %v11004_v32 = vpack.c.bf16 %v15160_v30, %v15159_v29  ;;  %9052 = vmatpush3.bf16.msra.mxu0 %v9051_v5  ;;  %v9061_v51 = vpack.c.bf16 %v10784_v0, %v10775_v7  ;;  %v9063_v26 = vpack.c.bf16 %v10801_v12, %v10790_v15  ;;  %v15161_v7 = vld [vmem:[#allocation12_spill] sm:$0xff]  ;;  %v72_v12 = vld [vmem:[#allocation5 + $0x100] sm:$0xff]  ;;  %v15166_v38 = vld [vmem:[#allocation17_spill] sm:$0xff] }
  0x68   :  { %9054 = vmatprep.subr.bf16.mxu0 %v9053_v1  ;;  %9080 = vmatpush3.bf16.msra.mxu1 %v10668_v31  ;;  %v9065_v53 = vpack.c.bf16 %v10814_v37, %v10805_v57  ;;  %v9067_v59 = vpack.c.bf16 %v10831_v41, %v10820_v48  ;;  %v9069_v6 = vpack.c.bf16 %v10846_v2, %v10835_v16  ;;  %v88_v48 = vld [vmem:[#allocation5 + $0x180] sm:$0xff]  ;;  %v89_v0 = vld [vmem:[#allocation5 + $0x188] sm:$0xff]  ;;  %v1241_v50 = vand.u32 4294901760, %v72_v12  ;;  %v75_v1 = vld [vmem:[#allocation5 + $0x118] sm:$0xff] }
  0x69   :  { %9082 = vmatprep.subr.bf16.mxu1 %v10682_v43  ;;  %v9071_v15 = vpack.c.bf16 %v10883_v11, %v10852_v33  ;;  %v73_v41 = vld [vmem:[#allocation5 + $0x108] sm:$0xff]  ;;  %v1289_v28 = vand.u32 4294901760, %v88_v48  ;;  %v1292_v47 = vand.u32 4294901760, %v89_v0  ;;  %v92_v36 = vld [vmem:[#allocation5 + $0x1a0] sm:$0xff]  ;;  %v15167_v30 = vand.u32 4294901760, %v10890_v8 }
  0x6a   :  { %v15164_v5 = vld [vmem:[#allocation15_spill] sm:$0xff]  ;;  %v1244_v45 = vand.u32 4294901760, %v73_v41 }
  0x6b   :  { %9056 = vmatpush3.bf16.msra.mxu0 %v9055_v4  ;;  %v11044_v58 = vsub.f32 %v88_v48, %v1289_v28  ;;  %v93_v29 = vld [vmem:[#allocation5 + $0x1a8] sm:$0xff]  ;;  %v11049_v4 = vsub.f32 %v89_v0, %v1292_v47  ;;  %v94_v0 = vld [vmem:[#allocation5 + $0x1b0] sm:$0xff] }
  0x6c   :  { %9058 = vmatprep.subr.bf16.mxu0 %v9057_v20  ;;  %9084 = vmatpush3.bf16.msra.mxu1 %v10690_v49  ;;  %v11051_v20 = vsub.f32 %v72_v12, %v1241_v50  ;;  %v11081_v48 = vpack.c.bf16 %v1244_v45, %v1241_v50 }
  0x6d   :  { %9086 = vmatprep.subr.bf16.mxu1 %v10712_v3 }
  0x6e   :  { %15172 = vst [vmem:[#allocation12_spill] sm:$0xff] %v11081_v48  ;;  %v14746_v11 = vand.u32 4294901760, %v11051_v20 }
  0x6f   :  { %9060 = vmatpush3.bf16.msra.mxu0 %v9059_v63  ;;  %v15169_v63 = vand.u32 4294901760, %v10814_v37  ;;  %v14752_v37 = vand.u32 4294901760, %v11044_v58 }
  0x70   :  { %9062 = vmatprep.subr.bf16.mxu0 %v9061_v51  ;;  %9088 = vmatpush3.bf16.msra.mxu1 %v10728_v22  ;;  %v15170_v51 = vand.u32 4294901760, %v10835_v16  ;;  %v1304_v16 = vand.u32 4294901760, %v93_v29 }
  0x71   :  { %9090 = vmatprep.subr.bf16.mxu1 %v10743_v56 }
  0x73   :  { %9064 = vmatpush3.bf16.msra.mxu0 %v9063_v26  ;;  %v15171_v26 = vand.u32 4294901760, %v10846_v2  ;;  %v76_v2 = vld [vmem:[#allocation5 + $0x120] sm:$0xff] }
  0x74   :  { %9066 = vmatprep.subr.bf16.mxu0 %v9065_v53  ;;  %9092 = vmatpush3.bf16.msra.mxu1 %v10758_v13 }
  0x75   :  { %9094 = vmatprep.subr.bf16.mxu1 %v10773_v60 }
  0x77   :  { %9068 = vmatpush3.bf16.msra.mxu0 %v9067_v59  ;;  %v1250_v59 = vand.u32 4294901760, %v75_v1 }
  0x78   :  { %9070 = vmatprep.subr.bf16.mxu0 %v9069_v6  ;;  %9096 = vmatpush3.bf16.msra.mxu1 %v15161_v7  ;;  %v77_v6 = vld [vmem:[#allocation5 + $0x128] sm:$0xff] }
  0x79   :  { %9098 = vmatprep.subr.bf16.mxu1 %v15162_v21 }
  0x7b   :  { %9072 = vmatpush3.bf16.msra.mxu0 %v9071_v15  ;;  %v11079_v15 = vpack.c.bf16 %v1292_v47, %v1289_v28  ;;  %v1256_v28 = vand.u32 4294901760, %v77_v6  ;;  %v11099_v47 = vsub.f32 %v75_v1, %v1250_v59 }
  0x7c   :  { %9106 = vmatprep.subr.bf16.mxu0 %v9105_v14  ;;  %9100 = vmatpush3.bf16.msra.mxu1 %v15163_v55  ;;  %v91_v14 = vld [vmem:[#allocation5 + $0x198] sm:$0xff] }
  0x7d   :  { %9102 = vmatprep.subr.bf16.mxu1 %v15164_v5  ;;  %v1298_v35 = vand.u32 4294901760, %v91_v14 }
  0x7e   :  { %855 = vmatmul.mubr.f32.vlgmr.msra.gmra.mrb[2].mxu0 %v10890_v8  ;;  %v11066_v8 = vpack.c.bf16 %v15171_v26, %v15170_v51 }
  0x7f   :  { %9108 = vmatpush3.bf16.msra.mxu0 %v9107_v52  ;;  %1129 = vmatprep.mubr.f32.mxu0 %v15165_v44  ;;  %v74_v52 = vld [vmem:[#allocation5 + $0x110] sm:$0xff] }
  0x80   :  { %9110 = vmatprep.subr.bf16.mxu0 %v9109_v19  ;;  %9104 = vmatpush3.bf16.msra.mxu1 %v15166_v38  ;;  %v1295_v19 = vand.u32 4294901760, %v90_v40  ;;  %v1247_v53 = vand.u32 4294901760, %v74_v52 }
  0x81   :  { %9138 = vmatprep.subr.bf16.mxu1 %v10652_v17  ;;  %v15168_v17 = vand.u32 4294901760, %v10805_v57  ;;  %v1301_v57 = vand.u32 4294901760, %v92_v36 }
  0x82   :  { %v11087_v33 = vpack.c.bf16 %v1298_v35, %v1295_v19  ;;  %v11095_v12 = vsub.f32 %v74_v52, %v1247_v53  ;;  %v15173_v52 = vld [vmem:[#allocation11_spill] sm:$0xff] }
  0x83   :  { %9112 = vmatpush3.bf16.msra.mxu0 %v10947_v10  ;;  %963 = vmatmul.mubr.f32.vlgmr.msra.gmra.mrb[2].mxu1 %v15167_v30  ;;  %v11053_v10 = vsub.f32 %v73_v41, %v1244_v45  ;;  %v1253_v41 = vand.u32 4294901760, %v76_v2  ;;  %v11101_v50 = vpack.c.bf16 %v1304_v16, %v1301_v57  ;;  %v1468_v45 = vsub.f32 %v11044_v58, %v14752_v37  ;;  %v82_v37 = vld [vmem:[#allocation5 + $0x150] sm:$0xff] }
  0x84   :  { %9114 = vmatprep.subr.bf16.mxu0 %v10953_v18  ;;  %9140 = vmatpush3.bf16.msra.mxu1 %v10656_v23  ;;  %v11060_v18 = vpack.c.bf16 %v15169_v63, %v15168_v17  ;;  %v11075_v23 = vpack.c.bf16 %v598_v9, %v591_v34  ;;  %v14747_v34 = vand.u32 4294901760, %v11049_v4  ;;  %v11122_v30 = vsub.f32 %v93_v29, %v1304_v16  ;;  %v15175_v63 = vld [vmem:[#allocation16_spill] sm:$0xff] }
  0x85   :  { %1233 = vmatprep.mubr.f32.mxu1 %v15165_v44  ;;  %9142 = vmatprep.subr.bf16.mxu1 %v10660_v25  ;;  %v11085_v25 = vsub.f32 %v91_v14, %v1298_v35  ;;  %v14741_v9 = vand.u32 4294901760, %v11053_v10  ;;  %v95_v44 = vld [vmem:[#allocation5 + $0x1b8] sm:$0xff]  ;;  %v11120_v35 = vsub.f32 %v92_v36, %v1301_v57  ;;  %v11124_v17 = vpack.c.bf16 %v1256_v28, %v1253_v41 }
  0x86   :  { %v11131_v26 = vsub.f32 %v76_v2, %v1253_v41  ;;  %v14743_v36 = vand.u32 4294901760, %v11095_v12  ;;  %v14745_v29 = vand.u32 4294901760, %v11099_v47  ;;  %v1469_v57 = vand.u32 4294901760, %v1468_v45 }
  0x87   :  { %9116 = vmatpush3.bf16.msra.mxu0 %v10959_v27  ;;  %v11083_v27 = vsub.f32 %v90_v40, %v1295_v19  ;;  %v14742_v14 = vand.u32 4294901760, %v11085_v25  ;;  %v14740_v19 = vsub.s32 3, %v15173_v52  ;;  %v1363_v1 = vsub.f32 %v11053_v10, %v14741_v9  ;;  %15174 = vst [vmem:[#allocation13_spill] sm:$0xff] %v11124_v17 }
  0x88   :  { %9118 = vmatprep.subr.bf16.mxu0 %v10965_v42  ;;  %9144 = vmatpush3.bf16.msra.mxu1 %v10668_v31  ;;  %v11093_v42 = vpack.c.bf16 %v1250_v59, %v1247_v53  ;;  %v1307_v31 = vand.u32 4294901760, %v94_v0  ;;  %v11133_v53 = vsub.f32 %v77_v6, %v1256_v28  ;;  %v78_v59 = vld [vmem:[#allocation5 + $0x130] sm:$0xff] }
  0x89   :  { %9146 = vmatprep.subr.bf16.mxu1 %v10682_v43  ;;  %v14744_v40 = vand.u32 4294901760, %v11083_v27  ;;  %v1475_v43 = vsub.f32 %v11049_v4, %v14747_v34  ;;  %v313_v51 = vrot.slane %v15175_v63, %v14740_v19  ;;  %v1364_v41 = vand.u32 4294901760, %v1363_v1  ;;  %v81_v34 = vld [vmem:[#allocation5 + $0x148] sm:$0xff] }
  0x8a   :  { %15176 = vst [vmem:[#allocation14_spill] sm:$0xff] %v11133_v53  ;;  %v11149_v19 = vsub.f32 %v94_v0, %v1307_v31  ;;  %v96_v0 = vld [vmem:[#allocation5 + $0x1c0] sm:$0xff] }
  0x8b   :  { %9120 = vmatpush3.bf16.msra.mxu0 %v10971_v54  ;;  %v1356_v54 = vsub.f32 %v11051_v20, %v14746_v11  ;;  %v1482_v16 = vsub.f32 %v11083_v27, %v14744_v40  ;;  %v1476_v2 = vand.u32 4294901760, %v1475_v43  ;;  %v1370_v43 = vsub.f32 %v11095_v12, %v14743_v36  ;;  %v80_v36 = vld [vmem:[#allocation5 + $0x140] sm:$0xff] }
  0x8c   :  { %9122 = vmatprep.subr.bf16.mxu0 %v10978_v62  ;;  %v1310_v62 = vand.u32 4294901760, %v95_v44  ;;  %9148 = vmatpush3.bf16.msra.mxu1 %v10690_v49  ;;  %v79_v49 = vld [vmem:[#allocation5 + $0x138] sm:$0xff]  ;;  %v14751_v40 = vand.u32 4294901760, %v11131_v26 }
  0x8d   :  { %9150 = vmatprep.subr.bf16.mxu1 %v10712_v3  ;;  %v1489_v3 = vsub.f32 %v11085_v25, %v14742_v14  ;;  %v1357_v6 = vand.u32 4294901760, %v1356_v54  ;;  %v1262_v45 = vand.u32 4294901760, %v79_v49  ;;  %v14749_v54 = vand.u32 4294901760, %v11120_v35 }
  0x8e   :  { %v11146_v28 = vpack.c.bf16 %v1310_v62, %v1307_v31  ;;  %v11156_v14 = vsub.f32 %v95_v44, %v1310_v62  ;;  %v97_v31 = vld [vmem:[#allocation5 + $0x1c8] sm:$0xff]  ;;  %v1483_v1 = vand.u32 4294901760, %v1482_v16  ;;  %v11168_v62 = vpack.c.bf16 %v1476_v2, %v1469_v57 }
  0x8f   :  { %9124 = vmatpush3.bf16.msra.mxu0 %v10984_v39  ;;  %v11144_v39 = vand.u32 4294901760, %v313_v51  ;;  %v1313_v16 = vand.u32 4294901760, %v96_v0  ;;  %v11181_v57 = vsub.f32 %v79_v49, %v1262_v45  ;;  %v1371_v2 = vand.u32 4294901760, %v1370_v43 }
  0x90   :  { %9126 = vmatprep.subr.bf16.mxu0 %v10990_v61  ;;  %15178 = vst [vmem:[#allocation18_spill] sm:$0xff] %v11146_v28  ;;  %9152 = vmatpush3.bf16.msra.mxu1 %v10728_v22  ;;  %v1259_v61 = vand.u32 4294901760, %v78_v59  ;;  %15179 = vst [vmem:[#allocation17_spill] sm:$0xff] %v11156_v14  ;;  %v1377_v22 = vsub.f32 %v11099_v47, %v14745_v29  ;;  %v14750_v29 = vand.u32 4294901760, %v11133_v53 }
  0x91   :  { %15177 = vst [vmem:[#allocation15_spill] sm:$0xff] %v11144_v39  ;;  %v11152_v9 = vsub.f32 %v313_v51, %v11144_v39  ;;  %9154 = vmatprep.subr.bf16.mxu1 %v10743_v56  ;;  %v14748_v56 = vand.u32 4294901760, %v11122_v30  ;;  %v11170_v51 = vpack.c.bf16 %v1364_v41, %v1357_v6  ;;  %15182 = vst [vmem:[#allocation20_spill] sm:$0xff] %v11181_v57 }
  0x92   :  { %v11175_v11 = vpack.c.bf16 %v1262_v45, %v1259_v61  ;;  %v1378_v6 = vand.u32 4294901760, %v1377_v22  ;;  %v1496_v41 = vsub.f32 %v11120_v35, %v14749_v54  ;;  %v1384_v49 = vsub.f32 %v11131_v26, %v14751_v40  ;;  %v99_v45 = vld [vmem:[#allocation5 + $0x1d8] sm:$0xff] }
  0x93   :  { %9128 = vmatpush3.bf16.msra.mxu0 %v10998_v24  ;;  %v1490_v24 = vand.u32 4294901760, %v1489_v3  ;;  %v14753_v44 = vand.u32 4294901760, %v11152_v9  ;;  %v1316_v3 = vand.u32 4294901760, %v97_v31  ;;  %v1268_v54 = vand.u32 4294901760, %v81_v34 }
  0x94   :  { %9130 = vmatprep.subr.bf16.mxu0 %v11060_v18  ;;  %9156 = vmatpush3.bf16.msra.mxu1 %v10758_v13  ;;  %15180 = vst [vmem:[#allocation16_spill] sm:$0xff] %v11175_v11  ;;  %v11177_v18 = vsub.f32 %v78_v59, %v1259_v61  ;;  %v1503_v59 = vsub.f32 %v11122_v30, %v14748_v56  ;;  %v1497_v40 = vand.u32 4294901760, %v1496_v41  ;;  %v1385_v43 = vand.u32 4294901760, %v1384_v49 }
  0x95   :  { %9158 = vmatprep.subr.bf16.mxu1 %v10773_v60  ;;  %v11187_v13 = vpack.c.bf16 %v1490_v24, %v1483_v1  ;;  %v1339_v60 = vsub.f32 %v11152_v9, %v14753_v44  ;;  %v1391_v61 = vsub.f32 %v11133_v53, %v14750_v29  ;;  %v11204_v1 = vpack.c.bf16 %v1316_v3, %v1313_v16 }
  0x96   :  { %15181 = vst [vmem:[#allocation19_spill] sm:$0xff] %v11177_v18  ;;  %v11206_v24 = vsub.f32 %v96_v0, %v1313_v16  ;;  %v11208_v56 = vsub.f32 %v97_v31, %v1316_v3  ;;  %v11212_v29 = vpack.c.bf16 %v1378_v6, %v1371_v2  ;;  %v14758_v44 = vand.u32 4294901760, %v11177_v18  ;;  %v83_v31 = vld [vmem:[#allocation5 + $0x158] sm:$0xff] }
  0x97   :  { %9132 = vmatpush3.bf16.msra.mxu0 %v11004_v32  ;;  %v1265_v32 = vand.u32 4294901760, %v80_v36  ;;  %v1322_v16 = vand.u32 4294901760, %v99_v45  ;;  %v1340_v3 = vand.u32 4294901760, %v1339_v60  ;;  %v1392_v53 = vand.u32 4294901760, %v1391_v61 }
  0x98   :  { %9134 = vmatprep.subr.bf16.mxu0 %v11066_v8  ;;  %v98_v8 = vld [vmem:[#allocation5 + $0x1d0] sm:$0xff]  ;;  %9160 = vmatpush3.bf16.msra.mxu1 %v15161_v7  ;;  %v1504_v7 = vand.u32 4294901760, %v1503_v59  ;;  %v15184_v2 = vand.u32 4294901760, %v11156_v14  ;;  %v11229_v22 = vsub.f32 %v81_v34, %v1268_v54  ;;  %v1271_v60 = vand.u32 4294901760, %v82_v37 }
  0x99   :  { %9162 = vmatprep.subr.bf16.mxu1 %v15162_v21  ;;  %v1319_v0 = vand.u32 4294901760, %v98_v8  ;;  %v11225_v41 = vpack.c.bf16 %v1268_v54, %v1265_v32  ;;  %v11227_v59 = vsub.f32 %v80_v36, %v1265_v32  ;;  %v1274_v49 = vand.u32 4294901760, %v83_v31  ;;  %v11241_v36 = vld [vmem:[#allocation5 + $0x1e8] sm:$0xff] }
  0x9a   :  { %v1517_v6 = vsub.f32 %v11156_v14, %v15184_v2  ;;  %15186 = vst [vmem:[#allocation22_spill] sm:$0xff] %v11229_v22  ;;  %v1398_v61 = vsub.f32 %v11177_v18, %v14758_v44  ;;  %v11239_v2 = vld [vmem:[#allocation5 + $0x1e0] sm:$0xff]  ;;  %v9209_v54 = vpack.c.bf16 %v1504_v7, %v1497_v40  ;;  %v11250_v44 = vpack.c.bf16 %v1392_v53, %v1385_v43 }
  0x9b   :  { %9136 = vmatpush3.bf16.msra.mxu0 %v11075_v23  ;;  %v15183_v23 = vand.u32 4294901760, %v11149_v19  ;;  %15185 = vst [vmem:[#allocation21_spill] sm:$0xff] %v11227_v59  ;;  %v11245_v32 = vpack.c.bf16 %v1322_v16, %v1319_v0  ;;  %v11252_v18 = vsub.f32 %v99_v45, %v1322_v16  ;;  %v11255_v14 = vsub.f32 %v82_v37, %v1271_v60  ;;  %v11259_v7 = vld [vmem:[#allocation5 + $0x160] sm:$0xff] }
  0x9c   :  { %9170 = vmatprep.subr.bf16.mxu0 %v11079_v15  ;;  %9164 = vmatpush3.bf16.msra.mxu1 %v15163_v55  ;;  %v14766_v34 = vand.u32 4294901760, %v11239_v2  ;;  %v14767_v40 = vand.u32 4294901760, %v11241_v36  ;;  %v11264_v53 = vpack.c.bf16 %v1274_v49, %v1271_v60  ;;  %v1399_v45 = vand.u32 4294901760, %v1398_v61 }
  0x9d   :  { %v1510_v21 = vsub.f32 %v11149_v19, %v15183_v23  ;;  %9166 = vmatprep.subr.bf16.mxu1 %v15164_v5  ;;  %v15187_v23 = vand.u32 4294901760, %v11181_v57  ;;  %15188 = vst [vmem:[#allocation23_spill] sm:$0xff] %v11245_v32  ;;  %v11247_v5 = vsub.f32 %v98_v8, %v1319_v0  ;;  %15190 = vst [vmem:[#allocation25_spill] sm:$0xff] %v11252_v18  ;;  %v11269_v0 = vld [vmem:[#allocation5 + $0x168] sm:$0xff]  ;;  %v11309_v8 = vld [vmem:[#allocation5 + $0x178] sm:$0xff] }
  0x9e   :  { %1131 = vmatmul.mubr.f32.vlgmr.msra.gmra.mrb[4].mxu0 %v10879_v46  ;;  %v11296_v60 = vsub.f32 %v11241_v36, %v14767_v40  ;;  %v11307_v40 = vld [vmem:[#allocation5 + $0x170] sm:$0xff] }
  0x9f   :  { %9172 = vmatpush3.bf16.msra.mxu0 %v11081_v48  ;;  %v1405_v55 = vsub.f32 %v11181_v57, %v15187_v23  ;;  %15189 = vst [vmem:[#allocation24_spill] sm:$0xff] %v11247_v5  ;;  %v14765_v48 = vand.u32 4294901760, %v11208_v56  ;;  %1341 = vmatprep.mubr.f32.mxu0 %v1340_v3  ;;  %v1511_v23 = vand.u32 4294901760, %v1510_v21  ;;  %v1518_v57 = vand.u32 4294901760, %v1517_v6  ;;  %v11277_v21 = vld [vmem:[#allocation5 + $0x1f0] sm:$0xff]  ;;  %v11279_v6 = vld [vmem:[#allocation5 + $0x1f8] sm:$0xff] }
  0xa0   :  { %9174 = vmatprep.subr.bf16.mxu0 %v11087_v33  ;;  %9168 = vmatpush3.bf16.msra.mxu1 %v15166_v38  ;;  %v15191_v38 = vand.u32 4294901760, %v11206_v24  ;;  %v14769_v3 = vand.u32 4294901760, %v11227_v59 }
  0xa1   :  { %9202 = vmatprep.subr.bf16.mxu1 %v11168_v62  ;;  %v1406_v43 = vand.u32 4294901760, %v1405_v55  ;;  %v1531_v16 = vsub.f32 %v11208_v56, %v14765_v48  ;;  %v9213_v61 = vpack.c.bf16 %v1518_v57, %v1511_v23  ;;  %v11283_v55 = vsub.f32 %v83_v31, %v1274_v49 }
  0xa2   :  { %v1524_v37 = vsub.f32 %v11206_v24, %v15191_v38  ;;  %v1277_v38 = vand.u32 4294901760, %v11259_v7  ;;  %v11291_v48 = vsub.f32 %v11239_v2, %v14766_v34  ;;  %v15192_v57 = vsub.s32 2, %v15173_v52 }
  0xa3   :  { %9176 = vmatpush3.bf16.msra.mxu0 %v11093_v42  ;;  %1235 = vmatmul.mubr.f32.vlgmr.msra.gmra.mrb[4].mxu1 %v10879_v46  ;;  %v1280_v46 = vand.u32 4294901760, %v11269_v0  ;;  %v1532_v62 = vand.u32 4294901760, %v1531_v16  ;;  %v15195_v34 = vand.u32 4294901760, %v11252_v18  ;;  %v15197_v52 = vand.u32 4294901760, %v11279_v6 }
  0xa4   :  { %9178 = vmatprep.subr.bf16.mxu0 %v11101_v50  ;;  %9204 = vmatpush3.bf16.msra.mxu1 %v11170_v51  ;;  %v309_v31 = vrot.slane %v15175_v63, %v15192_v57  ;;  %v9215_v51 = vpack.c.bf16 %v1406_v43, %v1399_v45  ;;  %v1525_v49 = vand.u32 4294901760, %v1524_v37  ;;  %v1412_v63 = vsub.f32 %v11227_v59, %v14769_v3 }
  0xa5   :  { %1577 = vmatprep.mubr.f32.mxu1 %v11144_v39  ;;  %9206 = vmatprep.subr.bf16.mxu1 %v11187_v13  ;;  %v15193_v57 = vand.u32 4294901760, %v11229_v22  ;;  %v15194_v45 = vand.u32 4294901760, %v11247_v5  ;;  %v11322_v37 = vsub.f32 %v11259_v7, %v1277_v38  ;;  %v1545_v23 = vsub.f32 %v11252_v18, %v15195_v34 }
  0xa6   :  { %v11331_v3 = vsub.f32 %v11269_v0, %v1280_v46  ;;  %v11335_v39 = vand.u32 4294901760, %v309_v31  ;;  %v15196_v34 = vand.u32 4294901760, %v11277_v21  ;;  %v14786_v0 = vand.u32 4294901760, %v11291_v48 }
  0xa7   :  { %9180 = vmatpush3.bf16.msra.mxu0 %v11124_v17  ;;  %v1419_v13 = vsub.f32 %v11229_v22, %v15193_v57  ;;  %v1538_v43 = vsub.f32 %v11247_v5, %v15194_v45  ;;  %v1283_v57 = vand.u32 4294901760, %v11307_v40  ;;  %v1286_v45 = vand.u32 4294901760, %v11309_v8 }
  0xa8   :  { %9182 = vmatprep.subr.bf16.mxu0 %v11146_v28  ;;  %9208 = vmatpush3.bf16.msra.mxu1 %v11212_v29  ;;  %v11341_v7 = vsub.f32 %v11277_v21, %v15196_v34  ;;  %v11346_v29 = vsub.f32 %v11279_v6, %v15197_v52  ;;  %v9217_v28 = vpack.c.bf16 %v1532_v62, %v1525_v49  ;;  %v1413_v17 = vand.u32 4294901760, %v1412_v63 }
  0xa9   :  { %9210 = vmatprep.subr.bf16.mxu1 %v9209_v54  ;;  %v1539_v54 = vand.u32 4294901760, %v1538_v43  ;;  %v1546_v18 = vand.u32 4294901760, %v1545_v23  ;;  %v15198_v5 = vand.u32 4294901760, %v11255_v14  ;;  %v15199_v22 = vand.u32 4294901760, %v11283_v55 }
  0xaa   :  { %v11360_v16 = vsub.f32 %v11307_v40, %v1283_v57  ;;  %v11363_v62 = vsub.f32 %v11309_v8, %v1286_v45  ;;  %v11366_v49 = vsub.f32 %v309_v31, %v11335_v39  ;;  %v15201_v31 = vand.u32 4294901760, %v11239_v2 }
  0xab   :  { %9184 = vmatpush3.bf16.msra.mxu0 %v11175_v11  ;;  %v1420_v11 = vand.u32 4294901760, %v1419_v13  ;;  %v1426_v34 = vsub.f32 %v11255_v14, %v15198_v5  ;;  %v1433_v52 = vsub.f32 %v11283_v55, %v15199_v22  ;;  %v1552_v22 = vsub.f32 %v11291_v48, %v14786_v0 }
  0xac   :  { %9186 = vmatprep.subr.bf16.mxu0 %v11204_v1  ;;  %9212 = vmatpush3.bf16.msra.mxu1 %v11250_v44  ;;  %v15200_v44 = vand.u32 4294901760, %v11296_v60  ;;  %v15202_v63 = vand.u32 4294901760, %v11241_v36  ;;  %v9221_v0 = vpack.c.bf16 %v1546_v18, %v1539_v54  ;;  %v1344_v8 = vand.u32 4294901760, %v11366_v49 }
  0xad   :  { %9214 = vmatprep.subr.bf16.mxu1 %v9213_v61  ;;  %v11385_v61 = vpack.c.bf16 %v1280_v46, %v1277_v38  ;;  %v9219_v43 = vpack.c.bf16 %v1420_v11, %v1413_v17  ;;  %v1427_v23 = vand.u32 4294901760, %v1426_v34  ;;  %v1434_v59 = vand.u32 4294901760, %v1433_v52 }
  0xae   :  { %v1559_v5 = vsub.f32 %v11296_v60, %v15200_v44  ;;  %v11383_v13 = vpack.c.bf16 %v15202_v63, %v15201_v31  ;;  %v15203_v44 = vand.u32 4294901760, %v11322_v37  ;;  %v1453_v36 = vand.u32 4294901760, %v11360_v16 }
  0xaf   :  { %9188 = vmatpush3.bf16.msra.mxu0 %v11225_v41  ;;  %v1460_v38 = vand.u32 4294901760, %v11363_v62  ;;  %v1553_v11 = vand.u32 4294901760, %v1552_v22  ;;  %v15205_v18 = vand.u32 4294901760, %v11341_v7  ;;  %v15208_v34 = vand.u32 4294901760, %v11279_v6 }
  0xb0   :  { %9190 = vmatprep.subr.bf16.mxu0 %v11245_v32  ;;  %v1440_v40 = vsub.f32 %v11322_v37, %v15203_v44  ;;  %9216 = vmatpush3.bf16.msra.mxu1 %v9215_v51  ;;  %v15204_v32 = vand.u32 4294901760, %v11331_v3  ;;  %v1560_v17 = vand.u32 4294901760, %v1559_v5  ;;  %v15206_v51 = vand.u32 4294901760, %v11346_v29 }
  0xb1   :  { %9218 = vmatprep.subr.bf16.mxu1 %v9217_v28  ;;  %v1566_v46 = vsub.f32 %v11341_v7, %v15205_v18  ;;  %v9223_v31 = vpack.c.bf16 %v1434_v59, %v1427_v23  ;;  %v1345_v22 = vsub.f32 %v11366_v49, %v1344_v8  ;;  %v1454_v63 = vsub.f32 %v11360_v16, %v1453_v36 }
  0xb2   :  { %v1447_v2 = vsub.f32 %v11331_v3, %v15204_v32  ;;  %v1573_v54 = vsub.f32 %v11346_v29, %v15206_v51  ;;  %v15207_v32 = vand.u32 4294901760, %v11277_v21  ;;  %v1441_v28 = vand.u32 4294901760, %v1440_v40 }
  0xb3   :  { %9192 = vmatpush3.bf16.msra.mxu0 %v11264_v53  ;;  %v1461_v21 = vsub.f32 %v11363_v62, %v1460_v38  ;;  %v11420_v6 = vpack.c.bf16 %v1286_v45, %v1283_v57  ;;  %v9225_v59 = vpack.c.bf16 %v1560_v17, %v1553_v11  ;;  %v1567_v23 = vand.u32 4294901760, %v1566_v46 }
  0xb4   :  { %9194 = vmatprep.subr.bf16.mxu0 %v11383_v13  ;;  %v11408_v52 = vpack.c.bf16 %v15208_v34, %v15207_v32  ;;  %9220 = vmatpush3.bf16.msra.mxu1 %v9219_v43  ;;  %v1448_v5 = vand.u32 4294901760, %v1447_v2  ;;  %v1574_v40 = vand.u32 4294901760, %v1573_v54  ;;  %v9233_v43 = vpack.c.bf16 %v11049_v4, %v11044_v58  ;;  %v15209_v54 = vld [vmem:[#allocation14_spill] sm:$0xff]  ;;  %v15210_v34 = vld [vmem:[#allocation17_spill] sm:$0xff] }
  0xb5   :  { %9222 = vmatprep.subr.bf16.mxu1 %v9221_v0  ;;  %v1346_v44 = vand.u32 4294901760, %v1345_v22  ;;  %v1455_v18 = vand.u32 4294901760, %v1454_v63  ;;  %v1462_v51 = vand.u32 4294901760, %v1461_v21  ;;  %v9235_v57 = vpack.c.bf16 %v11053_v10, %v11051_v20  ;;  %v15214_v63 = vld [vmem:[#allocation20_spill] sm:$0xff] }
  0xb6   :  { %v9227_v2 = vpack.c.bf16 %v1448_v5, %v1441_v28  ;;  %v9229_v45 = vpack.c.bf16 %v1574_v40, %v1567_v23  ;;  %v9237_v0 = vpack.c.bf16 %v11085_v25, %v11083_v27  ;;  %v9239_v17 = vpack.c.bf16 %v11099_v47, %v11095_v12  ;;  %v15211_v28 = vld [vmem:[#allocation12_spill] sm:$0xff]  ;;  %v15213_v5 = vld [vmem:[#allocation19_spill] sm:$0xff]  ;;  %v15215_v23 = vld [vmem:[#allocation21_spill] sm:$0xff] }
  0xb7   :  { %9196 = vmatpush3.bf16.msra.mxu0 %v11385_v61  ;;  %v9231_v11 = vpack.c.bf16 %v1462_v51, %v1455_v18  ;;  %v9241_v46 = vpack.c.bf16 %v11122_v30, %v11120_v35  ;;  %v9243_v32 = vpack.c.bf16 %v15209_v54, %v11131_v26  ;;  %v15212_v22 = vand.u32 4294901760, %v11152_v9  ;;  %v15216_v40 = vld [vmem:[#allocation22_spill] sm:$0xff]  ;;  %v15219_v18 = vld [vmem:[#allocation13_spill] sm:$0xff] }
  0xb8   :  { %9198 = vmatprep.subr.bf16.mxu0 %v11408_v52  ;;  %9224 = vmatpush3.bf16.msra.mxu1 %v9223_v31  ;;  %v9245_v31 = vpack.c.bf16 %v15210_v34, %v11149_v19  ;;  %v9247_v21 = vpack.c.bf16 %v15214_v63, %v15213_v5  ;;  %v15220_v51 = vld [vmem:[#allocation18_spill] sm:$0xff] }
  0xb9   :  { %9226 = vmatprep.subr.bf16.mxu1 %v9225_v59  ;;  %v9249_v59 = vpack.c.bf16 %v11208_v56, %v11206_v24 }
  0xbb   :  { %9200 = vmatpush3.bf16.msra.mxu0 %v11420_v6 }
  0xbc   :  { %9234 = vmatprep.subr.bf16.mxu0 %v9233_v43  ;;  %9228 = vmatpush3.bf16.msra.mxu1 %v9227_v2  ;;  %v9251_v43 = vpack.c.bf16 %v15216_v40, %v15215_v23 }
  0xbd   :  { %9230 = vmatprep.subr.bf16.mxu1 %v9229_v45  ;;  %v9257_v45 = vpack.c.bf16 %v11296_v60, %v11291_v48 }
  0xbe   :  { %1347 = vmatmul.mubr.f32.vlgmr.msra.gmra.mrb[6].mxu0 %v1346_v44  ;;  %v15218_v44 = vld [vmem:[#allocation25_spill] sm:$0xff] }
  0xbf   :  { %9236 = vmatpush3.bf16.msra.mxu0 %v9235_v57  ;;  %1714 = vmatprep.mubr.f32.mxu0 %v11152_v9  ;;  %v15217_v9 = vld [vmem:[#allocation24_spill] sm:$0xff]  ;;  %v9255_v57 = vpack.c.bf16 %v11283_v55, %v11255_v14 }
  0xc0   :  { %9238 = vmatprep.subr.bf16.mxu0 %v9237_v0  ;;  %9232 = vmatpush3.bf16.msra.mxu1 %v9231_v11  ;;  %v9253_v2 = vpack.c.bf16 %v15218_v44, %v15217_v9  ;;  %v15221_v0 = vld [vmem:[#allocation16_spill] sm:$0xff]  ;;  %v9259_v11 = vpack.c.bf16 %v11331_v3, %v11322_v37 }
  0xc1   :  { %9266 = vmatprep.subr.bf16.mxu1 %v11079_v15 }
  0xc3   :  { %9240 = vmatpush3.bf16.msra.mxu0 %v9239_v17  ;;  %1579 = vmatmul.mubr.f32.vlgmr.msra.gmra.mrb[6].mxu1 %v11335_v39  ;;  %v9261_v17 = vpack.c.bf16 %v11346_v29, %v11341_v7 }
  0xc4   :  { %9242 = vmatprep.subr.bf16.mxu0 %v9241_v46  ;;  %9268 = vmatpush3.bf16.msra.mxu1 %v15211_v28  ;;  %v15222_v46 = vld [vmem:[#allocation23_spill] sm:$0xff] }
  0xc5   :  { %1821 = vmatprep.mubr.f32.mxu1 %v15212_v22  ;;  %9270 = vmatprep.subr.bf16.mxu1 %v11087_v33  ;;  %v15224_v22 = vand.u32 4294901760, %v11049_v4  ;;  %v15229_v4 = vand.u32 4294901760, %v11095_v12  ;;  %v15235_v12 = vand.u32 4294901760, %v15209_v54  ;;  %v15240_v54 = vand.u32 4294901760, %v11206_v24 }
  0xc7   :  { %9244 = vmatpush3.bf16.msra.mxu0 %v9243_v32  ;;  %v9263_v32 = vpack.c.bf16 %v11363_v62, %v11360_v16 }
  0xc8   :  { %9246 = vmatprep.subr.bf16.mxu0 %v9245_v31  ;;  %9272 = vmatpush3.bf16.msra.mxu1 %v11093_v42  ;;  %v15223_v31 = vand.u32 4294901760, %v11044_v58  ;;  %v120_v58 = vld [vmem:[#allocation5 + $0x280] sm:$0xff] }
  0xc9   :  { %9274 = vmatprep.subr.bf16.mxu1 %v11101_v50 }
  0xcb   :  { %9248 = vmatpush3.bf16.msra.mxu0 %v9247_v21  ;;  %v9297_v21 = vpack.c.bf16 %v15224_v22, %v15223_v31  ;;  %v104_v31 = vld [vmem:[#allocation5 + $0x200] sm:$0xff]  ;;  %v15232_v22 = vand.u32 4294901760, %v11122_v30  ;;  %v123_v30 = vld [vmem:[#allocation5 + $0x298] sm:$0xff] }
  0xcc   :  { %9250 = vmatprep.subr.bf16.mxu0 %v9249_v59  ;;  %9276 = vmatpush3.bf16.msra.mxu1 %v15219_v18  ;;  %v15225_v59 = vand.u32 4294901760, %v11051_v20  ;;  %v15230_v20 = vand.u32 4294901760, %v11099_v47 }
  0xcd   :  { %9278 = vmatprep.subr.bf16.mxu1 %v15220_v51 }
  0xcf   :  { %9252 = vmatpush3.bf16.msra.mxu0 %v9251_v43  ;;  %v15226_v43 = vand.u32 4294901760, %v11053_v10  ;;  %v9303_v10 = vpack.c.bf16 %v15230_v20, %v15229_v4  ;;  %v2103_v4 = vand.u32 4294901760, %v104_v31  ;;  %v122_v20 = vld [vmem:[#allocation5 + $0x290] sm:$0xff] }
  0xd0   :  { %9254 = vmatprep.subr.bf16.mxu0 %v9253_v2  ;;  %9280 = vmatpush3.bf16.msra.mxu1 %v15221_v0 }
  0xd1   :  { %9282 = vmatprep.subr.bf16.mxu1 %v11204_v1  ;;  %v9299_v2 = vpack.c.bf16 %v15226_v43, %v15225_v59  ;;  %v15233_v59 = vld [vmem:[#allocation15_spill] sm:$0xff] }
  0xd3   :  { %9256 = vmatpush3.bf16.msra.mxu0 %v9255_v57  ;;  %v15227_v57 = vand.u32 4294901760, %v11083_v27  ;;  %v105_v27 = vld [vmem:[#allocation5 + $0x208] sm:$0xff] }
  0xd4   :  { %9258 = vmatprep.subr.bf16.mxu0 %v9257_v45  ;;  %9284 = vmatpush3.bf16.msra.mxu1 %v11225_v41  ;;  %v15228_v45 = vand.u32 4294901760, %v11085_v25  ;;  %v15231_v25 = vand.u32 4294901760, %v11120_v35  ;;  %v2106_v35 = vand.u32 4294901760, %v105_v27 }
  0xd5   :  { %9286 = vmatprep.subr.bf16.mxu1 %v15222_v46 }
  0xd6   :  { %v11580_v62 = vpack.c.bf16 %v2106_v35, %v2103_v4 }
  0xd7   :  { %9260 = vmatpush3.bf16.msra.mxu0 %v9259_v11  ;;  %v9301_v11 = vpack.c.bf16 %v15228_v45, %v15227_v57  ;;  %v15236_v57 = vand.u32 4294901760, %v11149_v19  ;;  %v15237_v45 = vand.u32 4294901760, %v15210_v34  ;;  %v106_v34 = vld [vmem:[#allocation5 + $0x210] sm:$0xff] }
  0xd8   :  { %9262 = vmatprep.subr.bf16.mxu0 %v9261_v17  ;;  %9288 = vmatpush3.bf16.msra.mxu1 %v11264_v53  ;;  %v121_v17 = vld [vmem:[#allocation5 + $0x288] sm:$0xff] }
  0xd9   :  { %9290 = vmatprep.subr.bf16.mxu1 %v11383_v13  ;;  %v2154_v43 = vand.u32 4294901760, %v121_v17 }
  0xdb   :  { %9264 = vmatpush3.bf16.msra.mxu0 %v9263_v32  ;;  %v2151_v32 = vand.u32 4294901760, %v120_v58  ;;  %v11529_v24 = vsub.f32 %v121_v17, %v2154_v43  ;;  %v2157_v17 = vand.u32 4294901760, %v122_v20 }
  0xdc   :  { %9298 = vmatprep.subr.bf16.mxu0 %v9297_v21  ;;  %9292 = vmatpush3.bf16.msra.mxu1 %v11385_v61  ;;  %v9305_v21 = vpack.c.bf16 %v15232_v22, %v15231_v25  ;;  %v15238_v25 = vand.u32 4294901760, %v15213_v5  ;;  %v15239_v22 = vand.u32 4294901760, %v15214_v63  ;;  %v15245_v5 = vand.u32 4294901760, %v15218_v44 }
  0xdd   :  { %9294 = vmatprep.subr.bf16.mxu1 %v11408_v52  ;;  %v15250_v44 = vand.u32 4294901760, %v11296_v60  ;;  %v15253_v60 = vand.u32 4294901760, %v11341_v7  ;;  %v14795_v7 = vand.u32 4294901760, %v11529_v24 }
  0xde   :  { %1717 = vmatmul.mubr.f32.vlgmr.msra.gmra.mrb[8].mxu0 %v11366_v49  ;;  %v15251_v49 = vand.u32 4294901760, %v11322_v37 }
  0xdf   :  { %9300 = vmatpush3.bf16.msra.mxu0 %v9299_v2  ;;  %1991 = vmatprep.mubr.f32.mxu0 %v15233_v59  ;;  %v15234_v2 = vand.u32 4294901760, %v11131_v26  ;;  %v9311_v26 = vpack.c.bf16 %v15239_v22, %v15238_v25  ;;  %v15246_v25 = vld [vmem:[#allocation11_spill] sm:$0xff] }
  0xe0   :  { %9302 = vmatprep.subr.bf16.mxu0 %v9301_v11  ;;  %9296 = vmatpush3.bf16.msra.mxu1 %v11420_v6  ;;  %v9309_v11 = vpack.c.bf16 %v15237_v45, %v15236_v57  ;;  %v15242_v57 = vand.u32 4294901760, %v15215_v23  ;;  %v15247_v23 = vand.u32 4294901760, %v11255_v14 }
  0xe1   :  { %v9307_v47 = vpack.c.bf16 %v15235_v12, %v15234_v2  ;;  %9330 = vmatprep.subr.bf16.mxu1 %v11079_v15  ;;  %v15241_v2 = vand.u32 4294901760, %v11208_v56  ;;  %v11515_v12 = vsub.f32 %v120_v58, %v2151_v32  ;;  %v15244_v15 = vand.u32 4294901760, %v15217_v9  ;;  %v107_v56 = vld [vmem:[#allocation5 + $0x218] sm:$0xff] }
  0xe2   :  { %v14789_v58 = vsub.s32 5, %v15246_v25  ;;  %v15249_v9 = vand.u32 4294901760, %v11291_v48  ;;  %v2109_v48 = vand.u32 4294901760, %v106_v34  ;;  %v2112_v37 = vand.u32 4294901760, %v107_v56 }
  0xe3   :  { %9304 = vmatpush3.bf16.msra.mxu0 %v9303_v10  ;;  %v9313_v19 = vpack.c.bf16 %v15241_v2, %v15240_v54  ;;  %v15243_v10 = vand.u32 4294901760, %v15216_v40  ;;  %v11527_v63 = vpack.c.bf16 %v15245_v5, %v15244_v15  ;;  %1825 = vmatmul.mubr.f32.vlgmr.msra.gmra.mrb[8].mxu1 %v1344_v8  ;;  %v15248_v40 = vand.u32 4294901760, %v11283_v55  ;;  %v124_v2 = vld [vmem:[#allocation5 + $0x2a0] sm:$0xff]  ;;  %v11575_v15 = vld [vmem:[#allocation2] sm:$0xff] }
  0xe4   :  { %9306 = vmatprep.subr.bf16.mxu0 %v9305_v21  ;;  %v11544_v22 = vpack.c.bf16 %v15250_v44, %v15249_v9  ;;  %v2160_v54 = vand.u32 4294901760, %v123_v30  ;;  %9332 = vmatpush3.bf16.msra.mxu1 %v15211_v28  ;;  %v15252_v8 = vand.u32 4294901760, %v11331_v3  ;;  %v11553_v55 = vsub.f32 %v104_v31, %v2103_v4  ;;  %v125_v31 = vld [vmem:[#allocation5 + $0x2a8] sm:$0xff]  ;;  %15255 = vst [vmem:[#allocation14_spill] sm:$0xff] %v11575_v15  ;;  %v127_v9 = vld [vmem:[#allocation5 + $0x2b8] sm:$0xff] }
  0xe5   :  { %v11521_v45 = vpack.c.bf16 %v15243_v10, %v15242_v57  ;;  %v11538_v21 = vpack.c.bf16 %v15248_v40, %v15247_v23  ;;  %v11555_v57 = vsub.f32 %v105_v27, %v2106_v35  ;;  %2095 = vmatprep.mubr.f32.mxu1 %v15233_v59  ;;  %9334 = vmatprep.subr.bf16.mxu1 %v11087_v33  ;;  %v15254_v28 = vand.u32 4294901760, %v11346_v29  ;;  %v109_v29 = vld [vmem:[#allocation5 + $0x228] sm:$0xff]  ;;  %v126_v40 = vld [vmem:[#allocation5 + $0x2b0] sm:$0xff] }
  0xe6   :  { %v11551_v14 = vpack.c.bf16 %v15252_v8, %v15251_v49  ;;  %v11569_v3 = vpack.c.bf16 %v1460_v38, %v1453_v36  ;;  %v14797_v27 = vand.u32 4294901760, %v11515_v12  ;;  %v11572_v59 = vpack.c.bf16 %v2154_v43, %v2151_v32 }
  0xe7   :  { %9308 = vmatpush3.bf16.msra.mxu0 %v9307_v47  ;;  %v11563_v10 = vpack.c.bf16 %v15254_v28, %v15253_v60  ;;  %v2163_v33 = vand.u32 4294901760, %v124_v2  ;;  %v108_v47 = vld [vmem:[#allocation5 + $0x220] sm:$0xff]  ;;  %v321_v16 = vrot.slane %v11575_v15, %v14789_v58  ;;  %v11582_v36 = vpack.c.bf16 %v2160_v54, %v2157_v17  ;;  %v111_v28 = vld [vmem:[#allocation5 + $0x238] sm:$0xff] }
  0xe8   :  { %9310 = vmatprep.subr.bf16.mxu0 %v9309_v11  ;;  %v11584_v38 = vsub.f32 %v122_v20, %v2157_v17  ;;  %v11586_v11 = vsub.f32 %v123_v30, %v2160_v54  ;;  %9336 = vmatpush3.bf16.msra.mxu1 %v11093_v42  ;;  %v11589_v32 = vsub.f32 %v106_v34, %v2109_v48  ;;  %v2166_v43 = vand.u32 4294901760, %v125_v31 }
  0xe9   :  { %15256 = vst [vmem:[#allocation17_spill] sm:$0xff] %v11582_v36  ;;  %v14794_v5 = vand.u32 4294901760, %v11553_v55  ;;  %v14790_v23 = vand.u32 4294901760, %v11555_v57  ;;  %9338 = vmatprep.subr.bf16.mxu1 %v11101_v50  ;;  %v11594_v4 = vsub.f32 %v107_v56, %v2112_v37  ;;  %v2330_v35 = vsub.f32 %v11515_v12, %v14797_v27 }
  0xea   :  { %v2115_v20 = vand.u32 4294901760, %v108_v47  ;;  %v2118_v42 = vand.u32 4294901760, %v109_v29  ;;  %v11599_v30 = vpack.c.bf16 %v2112_v37, %v2109_v48  ;;  %v11601_v34 = vsub.f32 %v124_v2, %v2163_v33 }
  0xeb   :  { %9312 = vmatpush3.bf16.msra.mxu0 %v9311_v26  ;;  %v2337_v44 = vsub.f32 %v11529_v24, %v14795_v7  ;;  %v11606_v26 = vand.u32 4294901760, %v321_v16  ;;  %v2169_v50 = vand.u32 4294901760, %v126_v40  ;;  %v2172_v56 = vand.u32 4294901760, %v127_v9 }
  0xec   :  { %9314 = vmatprep.subr.bf16.mxu0 %v9313_v19  ;;  %15257 = vst [vmem:[#allocation12_spill] sm:$0xff] %v11599_v30  ;;  %v14792_v17 = vand.u32 4294901760, %v11584_v38  ;;  %v14791_v54 = vand.u32 4294901760, %v11586_v11  ;;  %9340 = vmatpush3.bf16.msra.mxu1 %v15219_v18  ;;  %v11611_v49 = vpack.c.bf16 %v2166_v43, %v2163_v33  ;;  %v11613_v19 = vsub.f32 %v125_v31, %v2166_v43  ;;  %v110_v18 = vld [vmem:[#allocation5 + $0x230] sm:$0xff] }
  0xed   :  { %15258 = vst [vmem:[#allocation19_spill] sm:$0xff] %v11606_v26  ;;  %v2218_v2 = vsub.f32 %v11553_v55, %v14794_v5  ;;  %v2225_v8 = vsub.f32 %v11555_v57, %v14790_v23  ;;  %9342 = vmatprep.subr.bf16.mxu1 %v15220_v51  ;;  %v2331_v48 = vand.u32 4294901760, %v2330_v35  ;;  %v11623_v60 = vpack.c.bf16 %v2118_v42, %v2115_v20 }
  0xee   :  { %15259 = vst [vmem:[#allocation20_spill] sm:$0xff] %v11611_v49  ;;  %v14793_v37 = vand.u32 4294901760, %v11589_v32  ;;  %v14796_v31 = vand.u32 4294901760, %v11594_v4  ;;  %v2338_v33 = vand.u32 4294901760, %v2337_v44  ;;  %v11628_v43 = vsub.f32 %v108_v47, %v2115_v20  ;;  %v129_v44 = vld [vmem:[#allocation5 + $0x2c8] sm:$0xff] }
  0xef   :  { %9316 = vmatpush3.bf16.msra.mxu0 %v11521_v45  ;;  %15260 = vst [vmem:[#allocation21_spill] sm:$0xff] %v11623_v60  ;;  %v11630_v58 = vsub.f32 %v109_v29, %v2118_v42  ;;  %v11633_v45 = vsub.f32 %v321_v16, %v11606_v26  ;;  %v11635_v51 = vpack.c.bf16 %v2172_v56, %v2169_v50  ;;  %v2219_v47 = vand.u32 4294901760, %v2218_v2  ;;  %v128_v16 = vld [vmem:[#allocation5 + $0x2c0] sm:$0xff] }
  0xf0   :  { %9318 = vmatprep.subr.bf16.mxu0 %v11527_v63  ;;  %v11637_v35 = vsub.f32 %v126_v40, %v2169_v50  ;;  %v2344_v23 = vsub.f32 %v11584_v38, %v14792_v17  ;;  %v2351_v63 = vsub.f32 %v11586_v11, %v14791_v54  ;;  %9344 = vmatpush3.bf16.msra.mxu1 %v15221_v0  ;;  %v2226_v29 = vand.u32 4294901760, %v2225_v8 }
  0xf1   :  { %15261 = vst [vmem:[#allocation22_spill] sm:$0xff] %v11630_v58  ;;  %15262 = vst [vmem:[#allocation24_spill] sm:$0xff] %v11635_v51  ;;  %v2121_v20 = vand.u32 4294901760, %v110_v18  ;;  %v2124_v42 = vand.u32 4294901760, %v111_v28  ;;  %9346 = vmatprep.subr.bf16.mxu1 %v11204_v1  ;;  %v2232_v40 = vsub.f32 %v11589_v32, %v14793_v37  ;;  %v2239_v50 = vsub.f32 %v11594_v4, %v14796_v31 }
  0xf2   :  { %v14800_v0 = vand.u32 4294901760, %v11601_v34  ;;  %v11657_v8 = vsub.f32 %v127_v9, %v2172_v56  ;;  %v14798_v1 = vand.u32 4294901760, %v11630_v58  ;;  %v14801_v54 = vand.u32 4294901760, %v11633_v45  ;;  %v112_v9 = vld [vmem:[#allocation5 + $0x240] sm:$0xff] }
  0xf3   :  { %9320 = vmatpush3.bf16.msra.mxu0 %v11538_v21  ;;  %v14799_v21 = vand.u32 4294901760, %v11628_v43  ;;  %v2345_v17 = vand.u32 4294901760, %v2344_v23  ;;  %v2352_v37 = vand.u32 4294901760, %v2351_v63  ;;  %v2175_v5 = vand.u32 4294901760, %v128_v16 }
  0xf4   :  { %9322 = vmatprep.subr.bf16.mxu0 %v11544_v22  ;;  %v2178_v7 = vand.u32 4294901760, %v129_v44  ;;  %9348 = vmatpush3.bf16.msra.mxu1 %v11225_v41  ;;  %v11663_v31 = vpack.c.bf16 %v2338_v33, %v2331_v48  ;;  %v11665_v27 = vpack.c.bf16 %v2226_v29, %v2219_v47  ;;  %v11667_v2 = vpack.c.bf16 %v2124_v42, %v2121_v20  ;;  %v113_v33 = vld [vmem:[#allocation5 + $0x248] sm:$0xff]  ;;  %v130_v47 = vld [vmem:[#allocation5 + $0x2d0] sm:$0xff] }
  0xf5   :  { %v11669_v22 = vsub.f32 %v110_v18, %v2121_v20  ;;  %9350 = vmatprep.subr.bf16.mxu1 %v15222_v46  ;;  %v2233_v56 = vand.u32 4294901760, %v2232_v40  ;;  %v2240_v23 = vand.u32 4294901760, %v2239_v50  ;;  %v2358_v63 = vsub.f32 %v11601_v34, %v14800_v0 }
  0xf6   :  { %15263 = vst [vmem:[#allocation25_spill] sm:$0xff] %v11667_v2  ;;  %v15264_v41 = vand.u32 4294901760, %v11613_v19  ;;  %v11680_v18 = vsub.f32 %v111_v28, %v2124_v42  ;;  %v2253_v46 = vsub.f32 %v11630_v58, %v14798_v1  ;;  %v2201_v29 = vsub.f32 %v11633_v45, %v14801_v54  ;;  %v131_v28 = vld [vmem:[#allocation5 + $0x2d8] sm:$0xff]  ;;  %v114_v58 = vld [vmem:[#allocation5 + $0x250] sm:$0xff] }
  0xf7   :  { %9324 = vmatpush3.bf16.msra.mxu0 %v11551_v14  ;;  %v2246_v14 = vsub.f32 %v11628_v43, %v14799_v21  ;;  %v11691_v20 = vpack.c.bf16 %v2352_v37, %v2345_v17  ;;  %v11693_v40 = vpack.c.bf16 %v2178_v7, %v2175_v5  ;;  %v11697_v50 = vsub.f32 %v128_v16, %v2175_v5 }
  0xf8   :  { %v2365_v48 = vsub.f32 %v11613_v19, %v15264_v41  ;;  %9326 = vmatprep.subr.bf16.mxu0 %v11563_v10  ;;  %v2127_v10 = vand.u32 4294901760, %v112_v9  ;;  %9352 = vmatpush3.bf16.msra.mxu1 %v11264_v53  ;;  %v11699_v41 = vsub.f32 %v129_v44, %v2178_v7  ;;  %v2130_v1 = vand.u32 4294901760, %v113_v33  ;;  %v115_v7 = vld [vmem:[#allocation5 + $0x258] sm:$0xff] }
  0xf9   :  { %9354 = vmatprep.subr.bf16.mxu1 %v11383_v13  ;;  %v11704_v17 = vpack.c.bf16 %v2240_v23, %v2233_v56  ;;  %v2359_v37 = vand.u32 4294901760, %v2358_v63  ;;  %v2181_v54 = vand.u32 4294901760, %v130_v47  ;;  %v2247_v53 = vand.u32 4294901760, %v2246_v14 }
  0xfa   :  { %15265 = vst [vmem:[#allocation13_spill] sm:$0xff] %v11699_v41  ;;  %v2366_v0 = vand.u32 4294901760, %v2365_v48  ;;  %v2254_v5 = vand.u32 4294901760, %v2253_v46  ;;  %v2184_v16 = vand.u32 4294901760, %v131_v28  ;;  %v2202_v44 = vand.u32 4294901760, %v2201_v29  ;;  %v11723_v46 = vld [vmem:[#allocation5 + $0x2e0] sm:$0xff] }
  0xfb   :  { %9328 = vmatpush3.bf16.msra.mxu0 %v11569_v3  ;;  %v11707_v42 = vsub.f32 %v112_v9, %v2127_v10  ;;  %v15267_v21 = vand.u32 4294901760, %v11637_v35  ;;  %v11716_v23 = vpack.c.bf16 %v2130_v1, %v2127_v10  ;;  %v11718_v63 = vsub.f32 %v113_v33, %v2130_v1  ;;  %v11731_v10 = vld [vmem:[#allocation5 + $0x2e8] sm:$0xff] }
  0xfc   :  { %9362 = vmatprep.subr.bf16.mxu0 %v11572_v59  ;;  %9356 = vmatpush3.bf16.msra.mxu1 %v11385_v61  ;;  %v15269_v48 = vand.u32 4294901760, %v11657_v8  ;;  %v2133_v14 = vand.u32 4294901760, %v114_v58  ;;  %v11729_v29 = vsub.f32 %v130_v47, %v2181_v54  ;;  %v2136_v61 = vand.u32 4294901760, %v115_v7 }
  0xfd   :  { %15266 = vst [vmem:[#allocation18_spill] sm:$0xff] %v11707_v42  ;;  %v2372_v3 = vsub.f32 %v11637_v35, %v15267_v21  ;;  %15268 = vst [vmem:[#allocation16_spill] sm:$0xff] %v11718_v63  ;;  %9358 = vmatprep.subr.bf16.mxu1 %v11408_v52  ;;  %v11727_v21 = vpack.c.bf16 %v2366_v0, %v2359_v37  ;;  %v11735_v33 = vpack.c.bf16 %v2254_v5, %v2247_v53  ;;  %v11742_v52 = vld [vmem:[#allocation5 + $0x260] sm:$0xff] }
  0xfe   :  { %1993 = vmatmul.mubr.f32.vlgmr.msra.gmra.mrb[10].mxu0 %v11335_v39  ;;  %v2379_v9 = vsub.f32 %v11657_v8, %v15269_v48  ;;  %15270 = vst [vmem:[#allocation23_spill] sm:$0xff] %v11729_v29  ;;  %v11737_v48 = vpack.c.bf16 %v2184_v16, %v2181_v54  ;;  %v11739_v56 = vsub.f32 %v131_v28, %v2184_v16  ;;  %v14806_v13 = vand.u32 4294901760, %v11699_v41 }
  0xff   :  { %9364 = vmatpush3.bf16.msra.mxu0 %v11580_v62  ;;  %2203 = vmatprep.mubr.f32.mxu0 %v2202_v44  ;;  %v2373_v0 = vand.u32 4294901760, %v2372_v3  ;;  %v15273_v47 = vand.u32 4294901760, %v11669_v22  ;;  %v15274_v1 = vand.u32 4294901760, %v11680_v18  ;;  %v14809_v53 = vand.u32 4294901760, %v11723_v46 }
 0x100   :  { %9366 = vmatprep.subr.bf16.mxu0 %v11582_v36  ;;  %15271 = vst [vmem:[#allocation15_spill] sm:$0xff] %v11737_v48  ;;  %15272 = vst [vmem:[#allocation26_spill] sm:$0xff] %v11739_v56  ;;  %9360 = vmatpush3.bf16.msra.mxu1 %v11420_v6  ;;  %v2380_v54 = vand.u32 4294901760, %v2379_v9  ;;  %v11752_v28 = vsub.f32 %v114_v58, %v2133_v14  ;;  %v11758_v44 = vpack.c.bf16 %v2136_v61, %v2133_v14  ;;  %v11765_v6 = vld [vmem:[#allocation5 + $0x268] sm:$0xff] }
 0x101   :  { %v2260_v37 = vsub.f32 %v11669_v22, %v15273_v47  ;;  %v2267_v36 = vsub.f32 %v11680_v18, %v15274_v1  ;;  %9394 = vmatprep.subr.bf16.mxu1 %v11663_v31  ;;  %v11760_v3 = vsub.f32 %v115_v7, %v2136_v61  ;;  %v15275_v1 = vand.u32 4294901760, %v11697_v50  ;;  %v11774_v7 = vld [vmem:[#allocation5 + $0x2f0] sm:$0xff]  ;;  %v11776_v61 = vld [vmem:[#allocation5 + $0x2f8] sm:$0xff] }
 0x102   :  { %v2393_v9 = vsub.f32 %v11699_v41, %v14806_v13  ;;  %v11783_v5 = vsub.f32 %v11723_v46, %v14809_v53  ;;  %v9405_v14 = vpack.c.bf16 %v2380_v54, %v2373_v0  ;;  %v15276_v31 = vand.u32 4294901760, %v11731_v10  ;;  %v11806_v53 = vld [vmem:[#allocation5 + $0x270] sm:$0xff]  ;;  %v11808_v13 = vld [vmem:[#allocation5 + $0x278] sm:$0xff] }
 0x103   :  { %9368 = vmatpush3.bf16.msra.mxu0 %v11599_v30  ;;  %v2386_v47 = vsub.f32 %v11697_v50, %v15275_v1  ;;  %2097 = vmatmul.mubr.f32.vlgmr.msra.gmra.mrb[10].mxu1 %v11335_v39  ;;  %v2261_v16 = vand.u32 4294901760, %v2260_v37  ;;  %v2268_v58 = vand.u32 4294901760, %v2267_v36  ;;  %v2142_v1 = vand.u32 4294901760, %v11765_v6 }
 0x104   :  { %9370 = vmatprep.subr.bf16.mxu0 %v11611_v49  ;;  %9396 = vmatpush3.bf16.msra.mxu1 %v11665_v27  ;;  %v11790_v49 = vsub.f32 %v11731_v10, %v15276_v31  ;;  %v15277_v39 = vsub.s32 4, %v15246_v25  ;;  %v15278_v27 = vand.u32 4294901760, %v11742_v52  ;;  %v15281_v25 = vand.u32 4294901760, %v11729_v29 }
 0x105   :  { %2439 = vmatprep.mubr.f32.mxu1 %v11606_v26  ;;  %9398 = vmatprep.subr.bf16.mxu1 %v11691_v20  ;;  %v2387_v37 = vand.u32 4294901760, %v2386_v47  ;;  %v15280_v47 = vand.u32 4294901760, %v11718_v63  ;;  %v9407_v31 = vpack.c.bf16 %v2268_v58, %v2261_v16  ;;  %v15282_v26 = vand.u32 4294901760, %v11739_v56 }
 0x106   :  { %v317_v36 = vrot.slane %v11575_v15, %v15277_v39  ;;  %v11802_v0 = vsub.f32 %v11742_v52, %v15278_v27  ;;  %v2394_v39 = vand.u32 4294901760, %v2393_v9  ;;  %v15279_v15 = vand.u32 4294901760, %v11707_v42 }
 0x107   :  { %9372 = vmatpush3.bf16.msra.mxu0 %v11623_v60  ;;  %v2281_v27 = vsub.f32 %v11718_v63, %v15280_v47  ;;  %v2400_v54 = vsub.f32 %v11729_v29, %v15281_v25  ;;  %v2407_v60 = vsub.f32 %v11739_v56, %v15282_v26  ;;  %v2145_v47 = vand.u32 4294901760, %v11806_v53 }
 0x108   :  { %9374 = vmatprep.subr.bf16.mxu0 %v11635_v51  ;;  %v2274_v20 = vsub.f32 %v11707_v42, %v15279_v15  ;;  %9400 = vmatpush3.bf16.msra.mxu1 %v11704_v17  ;;  %v11827_v15 = vsub.f32 %v11765_v6, %v2142_v1  ;;  %v2148_v63 = vand.u32 4294901760, %v11808_v13  ;;  %v11831_v42 = vand.u32 4294901760, %v317_v36 }
 0x109   :  { %9402 = vmatprep.subr.bf16.mxu1 %v11727_v21  ;;  %v15284_v25 = vand.u32 4294901760, %v11774_v7  ;;  %v15285_v17 = vand.u32 4294901760, %v11776_v61  ;;  %v14832_v6 = vand.u32 4294901760, %v11783_v5  ;;  %v9409_v9 = vpack.c.bf16 %v2394_v39, %v2387_v37 }
 0x10a   :  { %15283 = vst [vmem:[#allocation27_spill] sm:$0xff] %v11831_v42  ;;  %v2275_v51 = vand.u32 4294901760, %v2274_v20  ;;  %v2401_v21 = vand.u32 4294901760, %v2400_v54  ;;  %v2408_v56 = vand.u32 4294901760, %v2407_v60  ;;  %v15286_v29 = vand.u32 4294901760, %v11752_v28 }
 0x10b   :  { %9376 = vmatpush3.bf16.msra.mxu0 %v11667_v2  ;;  %v11838_v26 = vsub.f32 %v11774_v7, %v15284_v25  ;;  %v11843_v16 = vsub.f32 %v11776_v61, %v15285_v17  ;;  %v2282_v2 = vand.u32 4294901760, %v2281_v27  ;;  %v15287_v30 = vand.u32 4294901760, %v11760_v3 }
 0x10c   :  { %9378 = vmatprep.subr.bf16.mxu0 %v11693_v40  ;;  %v2288_v25 = vsub.f32 %v11752_v28, %v15286_v29  ;;  %9404 = vmatpush3.bf16.msra.mxu1 %v11735_v33  ;;  %v11857_v58 = vsub.f32 %v11806_v53, %v2145_v47  ;;  %v11860_v37 = vsub.f32 %v11808_v13, %v2148_v63  ;;  %v15288_v29 = vand.u32 4294901760, %v11790_v49 }
 0x10d   :  { %v2295_v17 = vsub.f32 %v11760_v3, %v15287_v30  ;;  %v11863_v60 = vsub.f32 %v317_v36, %v11831_v42  ;;  %9406 = vmatprep.subr.bf16.mxu1 %v9405_v14  ;;  %v2414_v30 = vsub.f32 %v11783_v5, %v14832_v6  ;;  %v15289_v36 = vand.u32 4294901760, %v11723_v46 }
 0x10e   :  { %v2421_v33 = vsub.f32 %v11790_v49, %v15288_v29  ;;  %v15290_v39 = vand.u32 4294901760, %v11731_v10  ;;  %v15291_v14 = vand.u32 4294901760, %v11742_v52  ;;  %v9411_v6 = vpack.c.bf16 %v2282_v2, %v2275_v51 }
 0x10f   :  { %9380 = vmatpush3.bf16.msra.mxu0 %v11716_v23  ;;  %v9413_v54 = vpack.c.bf16 %v2408_v56, %v2401_v21  ;;  %v2289_v41 = vand.u32 4294901760, %v2288_v25  ;;  %v2296_v29 = vand.u32 4294901760, %v2295_v17  ;;  %v15292_v53 = vand.u32 4294901760, %v11802_v0 }
 0x110   :  { %9382 = vmatprep.subr.bf16.mxu0 %v11737_v48  ;;  %v11880_v20 = vpack.c.bf16 %v15290_v39, %v15289_v36  ;;  %v11884_v27 = vpack.c.bf16 %v2142_v1, %v15291_v14  ;;  %9408 = vmatpush3.bf16.msra.mxu1 %v9407_v31  ;;  %v14837_v48 = vand.u32 4294901760, %v11863_v60  ;;  %v15293_v46 = vand.u32 4294901760, %v11827_v15 }
 0x111   :  { %v2302_v13 = vsub.f32 %v11802_v0, %v15292_v53  ;;  %v14836_v36 = vand.u32 4294901760, %v11857_v58  ;;  %v14835_v52 = vand.u32 4294901760, %v11860_v37  ;;  %9410 = vmatprep.subr.bf16.mxu1 %v9409_v9  ;;  %v2415_v51 = vand.u32 4294901760, %v2414_v30 }
 0x112   :  { %v2309_v10 = vsub.f32 %v11827_v15, %v15293_v46  ;;  %v2422_v2 = vand.u32 4294901760, %v2421_v33  ;;  %v15294_v56 = vand.u32 4294901760, %v11838_v26  ;;  %v15295_v31 = vand.u32 4294901760, %v11843_v16 }
 0x113   :  { %9384 = vmatpush3.bf16.msra.mxu0 %v11758_v44  ;;  %v15296_v25 = vand.u32 4294901760, %v11774_v7  ;;  %v15297_v17 = vand.u32 4294901760, %v11776_v61  ;;  %v9415_v39 = vpack.c.bf16 %v2296_v29, %v2289_v41  ;;  %v2303_v9 = vand.u32 4294901760, %v2302_v13 }
 0x114   :  { %v2428_v1 = vsub.f32 %v11838_v26, %v15294_v56  ;;  %v2435_v21 = vsub.f32 %v11843_v16, %v15295_v31  ;;  %9386 = vmatprep.subr.bf16.mxu0 %v11880_v20  ;;  %9412 = vmatpush3.bf16.msra.mxu1 %v9411_v6  ;;  %v2207_v30 = vsub.f32 %v11863_v60, %v14837_v48  ;;  %v2310_v33 = vand.u32 4294901760, %v2309_v10 }
 0x115   :  { %v11907_v53 = vpack.c.bf16 %v15297_v17, %v15296_v25  ;;  %v2316_v14 = vsub.f32 %v11857_v58, %v14836_v36  ;;  %v2323_v7 = vsub.f32 %v11860_v37, %v14835_v52  ;;  %9414 = vmatprep.subr.bf16.mxu1 %v9413_v54  ;;  %v11919_v61 = vpack.c.bf16 %v2148_v63, %v2145_v47 }
 0x116   :  { %v9417_v41 = vpack.c.bf16 %v2422_v2, %v2415_v51  ;;  %v2429_v6 = vand.u32 4294901760, %v2428_v1  ;;  %v2436_v13 = vand.u32 4294901760, %v2435_v21  ;;  %v9425_v29 = vpack.c.bf16 %v11529_v24, %v11515_v12  ;;  %v15299_v21 = vld [vmem:[#allocation22_spill] sm:$0xff] }
 0x117   :  { %15298 = vst [vmem:[#allocation28_spill] sm:$0xff] %v11907_v53  ;;  %9388 = vmatpush3.bf16.msra.mxu0 %v11884_v27  ;;  %v2208_v46 = vand.u32 4294901760, %v2207_v30  ;;  %v9419_v10 = vpack.c.bf16 %v2310_v33, %v2303_v9  ;;  %v2317_v56 = vand.u32 4294901760, %v2316_v14  ;;  %v2324_v31 = vand.u32 4294901760, %v2323_v7  ;;  %v15301_v9 = vld [vmem:[#allocation17_spill] sm:$0xff]  ;;  %v15303_v7 = vld [vmem:[#allocation12_spill] sm:$0xff] }
 0x118   :  { %9390 = vmatprep.subr.bf16.mxu0 %v11907_v53  ;;  %9416 = vmatpush3.bf16.msra.mxu1 %v9415_v39  ;;  %v9427_v63 = vpack.c.bf16 %v11555_v57, %v11553_v55  ;;  %v9421_v47 = vpack.c.bf16 %v2436_v13, %v2429_v6  ;;  %v9429_v54 = vpack.c.bf16 %v11586_v11, %v11584_v38  ;;  %v15300_v39 = vand.u32 4294901760, %v11633_v45  ;;  %v15302_v33 = vld [vmem:[#allocation13_spill] sm:$0xff]  ;;  %v15305_v6 = vld [vmem:[#allocation18_spill] sm:$0xff]  ;;  %v15306_v13 = vld [vmem:[#allocation16_spill] sm:$0xff] }
 0x119   :  { %9418 = vmatprep.subr.bf16.mxu1 %v9417_v41  ;;  %v9423_v51 = vpack.c.bf16 %v2324_v31, %v2317_v56  ;;  %v9431_v2 = vpack.c.bf16 %v11594_v4, %v11589_v32  ;;  %v9433_v1 = vpack.c.bf16 %v11613_v19, %v11601_v34  ;;  %v9435_v25 = vpack.c.bf16 %v15299_v21, %v11628_v43  ;;  %v15304_v41 = vld [vmem:[#allocation20_spill] sm:$0xff]  ;;  %v15309_v56 = vld [vmem:[#allocation21_spill] sm:$0xff] }
 0x11a   :  { %v9437_v17 = vpack.c.bf16 %v11657_v8, %v11637_v35  ;;  %v9439_v30 = vpack.c.bf16 %v11680_v18, %v11669_v22  ;;  %v9441_v14 = vpack.c.bf16 %v15302_v33, %v11697_v50  ;;  %v15310_v31 = vld [vmem:[#allocation24_spill] sm:$0xff]  ;;  %v15316_v36 = vand.u32 4294901760, %v11555_v57 }
 0x11b   :  { %9392 = vmatpush3.bf16.msra.mxu0 %v11919_v61  ;;  %v15319_v57 = vand.u32 4294901760, %v11589_v32  ;;  %v15325_v32 = vand.u32 4294901760, %v15299_v21 }
 0x11c   :  { %9426 = vmatprep.subr.bf16.mxu0 %v9425_v29  ;;  %9420 = vmatpush3.bf16.msra.mxu1 %v9419_v10  ;;  %v9443_v29 = vpack.c.bf16 %v15306_v13, %v15305_v6 }
 0x11d   :  { %9422 = vmatprep.subr.bf16.mxu1 %v9421_v47  ;;  %v9449_v47 = vpack.c.bf16 %v11790_v49, %v11783_v5 }
 0x11e   :  { %2209 = vmatmul.mubr.f32.vlgmr.msra.gmra.mrb[12].mxu0 %v2208_v46  ;;  %v15308_v46 = vld [vmem:[#allocation26_spill] sm:$0xff] }
 0x11f   :  { %9428 = vmatpush3.bf16.msra.mxu0 %v9427_v63  ;;  %2576 = vmatprep.mubr.f32.mxu0 %v11633_v45  ;;  %v15307_v45 = vld [vmem:[#allocation23_spill] sm:$0xff]  ;;  %v9447_v63 = vpack.c.bf16 %v11760_v3, %v11752_v28 }
 0x120   :  { %9430 = vmatprep.subr.bf16.mxu0 %v9429_v54  ;;  %9424 = vmatpush3.bf16.msra.mxu1 %v9423_v51  ;;  %v9445_v10 = vpack.c.bf16 %v15308_v46, %v15307_v45  ;;  %v15311_v51 = vld [vmem:[#allocation25_spill] sm:$0xff] }
 0x121   :  { %9458 = vmatprep.subr.bf16.mxu1 %v11572_v59 }
 0x123   :  { %9432 = vmatpush3.bf16.msra.mxu0 %v9431_v2  ;;  %2441 = vmatmul.mubr.f32.vlgmr.msra.gmra.mrb[12].mxu1 %v11831_v42 }
 0x124   :  { %9434 = vmatprep.subr.bf16.mxu0 %v9433_v1  ;;  %9460 = vmatpush3.bf16.msra.mxu1 %v11580_v62  ;;  %v9451_v1 = vpack.c.bf16 %v11827_v15, %v11802_v0 }
 0x125   :  { %2683 = vmatprep.mubr.f32.mxu1 %v15300_v39  ;;  %9462 = vmatprep.subr.bf16.mxu1 %v15301_v9  ;;  %v15312_v39 = vld [vmem:[#allocation15_spill] sm:$0xff] }
 0x127   :  { %9436 = vmatpush3.bf16.msra.mxu0 %v9435_v25 }
 0x128   :  { %9438 = vmatprep.subr.bf16.mxu0 %v9437_v17  ;;  %9464 = vmatpush3.bf16.msra.mxu1 %v15303_v7  ;;  %v9453_v17 = vpack.c.bf16 %v11843_v16, %v11838_v26 }
 0x129   :  { %9466 = vmatprep.subr.bf16.mxu1 %v15304_v41 }
 0x12b   :  { %9440 = vmatpush3.bf16.msra.mxu0 %v9439_v30  ;;  %v9455_v30 = vpack.c.bf16 %v11860_v37, %v11857_v58 }
 0x12c   :  { %9442 = vmatprep.subr.bf16.mxu0 %v9441_v14  ;;  %9468 = vmatpush3.bf16.msra.mxu1 %v15309_v56 }
 0x12d   :  { %9470 = vmatprep.subr.bf16.mxu1 %v15310_v31 }
 0x12f   :  { %9444 = vmatpush3.bf16.msra.mxu0 %v9443_v29  ;;  %v15313_v29 = vand.u32 4294901760, %v11515_v12 }
 0x130   :  { %9446 = vmatprep.subr.bf16.mxu0 %v9445_v10  ;;  %9472 = vmatpush3.bf16.msra.mxu1 %v15311_v51  ;;  %v15314_v10 = vand.u32 4294901760, %v11529_v24  ;;  %v15317_v24 = vand.u32 4294901760, %v11584_v38 }
 0x131   :  { %v7329_v54 = vpop.f32.mrb[0].mxu0  ;;  %9474 = vmatprep.subr.bf16.mxu1 %v11693_v40 }
 0x132   :  { %v7330_v2 = vpop.f32.mrb[1].mxu0 }
 0x133   :  { %9448 = vmatpush3.bf16.msra.mxu0 %v9447_v63  ;;  %v7331_v25 = vadd.f32 %v7330_v2, %v7329_v54  ;;  %v9489_v63 = vpack.c.bf16 %v15314_v10, %v15313_v29  ;;  %v152_v54 = vld [vmem:[#allocation5 + $0x380] sm:$0xff]  ;;  %v15318_v29 = vand.u32 4294901760, %v11586_v11 }
 0x134   :  { %9450 = vmatprep.subr.bf16.mxu0 %v9449_v47  ;;  %9476 = vmatpush3.bf16.msra.mxu1 %v11716_v23  ;;  %v153_v47 = vld [vmem:[#allocation5 + $0x388] sm:$0xff]  ;;  %v136_v10 = vld [vmem:[#allocation5 + $0x300] sm:$0xff] }
 0x135   :  { %9478 = vmatprep.subr.bf16.mxu1 %v15312_v39  ;;  %v3016_v42 = vand.u32 4294901760, %v153_v47  ;;  %v2965_v11 = vand.u32 4294901760, %v136_v10 }
 0x136   :  { %v7364_v14 = vpop.f32.mrb[0].mxu1 }
 0x137   :  { %9452 = vmatpush3.bf16.msra.mxu0 %v9451_v1  ;;  %v7365_v2 = vpop.f32.mrb[1].mxu1  ;;  %v15315_v1 = vand.u32 4294901760, %v11553_v55  ;;  %v154_v55 = vld [vmem:[#allocation5 + $0x390] sm:$0xff]  ;;  %v11995_v38 = vsub.f32 %v153_v47, %v3016_v42  ;;  %v15327_v47 = vand.u32 4294901760, %v11657_v8 }
 0x138   :  { %9454 = vmatprep.subr.bf16.mxu0 %v9453_v17  ;;  %v7366_v52 = vadd.f32 %v7365_v2, %v7364_v14  ;;  %9480 = vmatpush3.bf16.msra.mxu1 %v11758_v44  ;;  %v3013_v17 = vand.u32 4294901760, %v152_v54  ;;  %v9493_v14 = vpack.c.bf16 %v15318_v29, %v15317_v24  ;;  %v15321_v2 = vand.u32 4294901760, %v11601_v34 }
 0x139   :  { %9482 = vmatprep.subr.bf16.mxu1 %v11880_v20  ;;  %v9491_v48 = vpack.c.bf16 %v15316_v36, %v15315_v1  ;;  %v15320_v36 = vand.u32 4294901760, %v11594_v4  ;;  %v15322_v1 = vand.u32 4294901760, %v11613_v19  ;;  %v15324_v29 = vand.u32 4294901760, %v11628_v43 }
 0x13a   :  { %v11980_v12 = vadd.f32 %v7366_v52, %v7331_v25  ;;  %v11993_v25 = vsub.f32 %v152_v54, %v3013_v17  ;;  %v15326_v54 = vand.u32 4294901760, %v11637_v35  ;;  %v15328_v34 = vand.u32 4294901760, %v11669_v22 }
 0x13b   :  { %9456 = vmatpush3.bf16.msra.mxu0 %v9455_v30  ;;  %v137_v30 = vld [vmem:[#allocation5 + $0x308] sm:$0xff]  ;;  %v9495_v52 = vpack.c.bf16 %v15320_v36, %v15319_v57  ;;  %v9497_v24 = vpack.c.bf16 %v15322_v1, %v15321_v2  ;;  %v9499_v4 = vpack.c.bf16 %v15325_v32, %v15324_v29  ;;  %v15329_v19 = vand.u32 4294901760, %v11680_v18 }
 0x13c   :  { %9490 = vmatprep.subr.bf16.mxu0 %v9489_v63  ;;  %9484 = vmatpush3.bf16.msra.mxu1 %v11884_v27  ;;  %v155_v63 = vld [vmem:[#allocation5 + $0x398] sm:$0xff]  ;;  %v9501_v57 = vpack.c.bf16 %v15327_v47, %v15326_v54  ;;  %v2968_v36 = vand.u32 4294901760, %v137_v30  ;;  %v15330_v2 = vand.u32 4294901760, %v11697_v50  ;;  %v15331_v43 = vand.u32 4294901760, %v15302_v33  ;;  %v138_v33 = vld [vmem:[#allocation5 + $0x310] sm:$0xff] }
 0x13d   :  { %9486 = vmatprep.subr.bf16.mxu1 %v11907_v53  ;;  %v3019_v53 = vand.u32 4294901760, %v154_v55  ;;  %v15332_v1 = vand.u32 4294901760, %v15305_v6  ;;  %v15333_v35 = vand.u32 4294901760, %v15306_v13  ;;  %v3022_v29 = vand.u32 4294901760, %v155_v63  ;;  %v139_v54 = vld [vmem:[#allocation5 + $0x318] sm:$0xff] }
 0x13e   :  { %2579 = vmatmul.mubr.f32.vlgmr.msra.gmra.mrb[14].mxu0 %v11863_v60  ;;  %v9505_v21 = vpack.c.bf16 %v15331_v43, %v15330_v2  ;;  %v15334_v22 = vand.u32 4294901760, %v15307_v45  ;;  %v15335_v18 = vand.u32 4294901760, %v15308_v46  ;;  %v12032_v50 = vsub.f32 %v136_v10, %v2965_v11  ;;  %v15342_v43 = vld [vmem:[#allocation11_spill] sm:$0xff] }
 0x13f   :  { %9492 = vmatpush3.bf16.msra.mxu0 %v9491_v48  ;;  %v15323_v48 = vld [vmem:[#allocation19_spill] sm:$0xff]  ;;  %v12023_v8 = vpack.c.bf16 %v15333_v35, %v15332_v1  ;;  %v14849_v6 = vand.u32 4294901760, %v11993_v25  ;;  %v14846_v13 = vand.u32 4294901760, %v11995_v38  ;;  %v15336_v47 = vand.u32 4294901760, %v11752_v28 }
 0x140   :  { %9494 = vmatprep.subr.bf16.mxu0 %v9493_v14  ;;  %2853 = vmatprep.mubr.f32.mxu0 %v15323_v48  ;;  %v9503_v14 = vpack.c.bf16 %v15329_v19, %v15328_v34  ;;  %v12030_v32 = vpack.c.bf16 %v15335_v18, %v15334_v22  ;;  %v15338_v45 = vand.u32 4294901760, %v11783_v5  ;;  %v15339_v46 = vand.u32 4294901760, %v11790_v49  ;;  %v156_v18 = vld [vmem:[#allocation5 + $0x3a0] sm:$0xff] }
 0x141   :  { %9488 = vmatpush3.bf16.msra.mxu1 %v11919_v61  ;;  %v15340_v10 = vand.u32 4294901760, %v11802_v0  ;;  %v15341_v19 = vand.u32 4294901760, %v11827_v15  ;;  %v15343_v28 = vand.u32 4294901760, %v11863_v60  ;;  %v15345_v1 = vand.u32 4294901760, %v11843_v16 }
 0x142   :  { %9522 = vmatprep.subr.bf16.mxu1 %v11572_v59  ;;  %v12046_v34 = vpack.c.bf16 %v15339_v46, %v15338_v45  ;;  %v15346_v49 = vand.u32 4294901760, %v11857_v58  ;;  %v15347_v35 = vand.u32 4294901760, %v11860_v37  ;;  %v12069_v15 = vsub.f32 %v137_v30, %v2968_v36  ;;  %v140_v58 = vld [vmem:[#allocation5 + $0x320] sm:$0xff]  ;;  %v141_v37 = vld [vmem:[#allocation5 + $0x328] sm:$0xff] }
 0x143   :  { %9496 = vmatpush3.bf16.msra.mxu0 %v9495_v52  ;;  %v15337_v52 = vand.u32 4294901760, %v11760_v3  ;;  %v12052_v2 = vpack.c.bf16 %v15341_v19, %v15340_v10  ;;  %v15344_v3 = vand.u32 4294901760, %v11838_v26  ;;  %v12071_v22 = vsub.f32 %v154_v55, %v3019_v53  ;;  %v159_v10 = vld [vmem:[#allocation5 + $0x3b8] sm:$0xff] }
 0x144   :  { %9498 = vmatprep.subr.bf16.mxu0 %v9497_v24  ;;  %v14841_v24 = vsub.s32 7, %v15342_v43  ;;  %2687 = vmatmul.mubr.f32.vlgmr.msra.gmra.mrb[14].mxu1 %v15343_v28  ;;  %v12067_v0 = vpack.c.bf16 %v15347_v35, %v15346_v49  ;;  %v12074_v60 = vpack.c.bf16 %v3016_v42, %v3013_v17  ;;  %v12076_v26 = vsub.f32 %v155_v63, %v3022_v29 }
 0x145   :  { %v12040_v59 = vpack.c.bf16 %v15337_v52, %v15336_v47  ;;  %v12061_v5 = vpack.c.bf16 %v15345_v1, %v15344_v3  ;;  %v157_v47 = vld [vmem:[#allocation5 + $0x3a8] sm:$0xff]  ;;  %9524 = vmatpush3.bf16.msra.mxu1 %v11580_v62  ;;  %v2971_v16 = vand.u32 4294901760, %v138_v33  ;;  %v2974_v52 = vand.u32 4294901760, %v139_v54  ;;  %2957 = vmatprep.mubr.f32.mxu1 %v15323_v48 }
 0x146   :  { %9526 = vmatprep.subr.bf16.mxu1 %v15301_v9  ;;  %v12080_v30 = vpack.c.bf16 %v2968_v36, %v2965_v11  ;;  %v3192_v55 = vsub.f32 %v11993_v25, %v14849_v6  ;;  %v3199_v62 = vsub.f32 %v11995_v38, %v14846_v13  ;;  %v14845_v42 = vand.u32 4294901760, %v12032_v50  ;;  %v15349_v9 = vld [vmem:[#allocation14_spill] sm:$0xff] }
 0x147   :  { %9500 = vmatpush3.bf16.msra.mxu0 %v9499_v4  ;;  %v12089_v17 = vpack.c.bf16 %v3022_v29, %v3019_v53  ;;  %v3025_v63 = vand.u32 4294901760, %v156_v18  ;;  %v3028_v48 = vand.u32 4294901760, %v157_v47  ;;  %v158_v4 = vld [vmem:[#allocation5 + $0x3b0] sm:$0xff]  ;;  %v329_v11 = vrot.slane %v15349_v9, %v14841_v24 }
 0x148   :  { %15348 = vst [vmem:[#allocation22_spill] sm:$0xff] %v12080_v30  ;;  %9502 = vmatprep.subr.bf16.mxu0 %v9501_v57  ;;  %v2977_v36 = vand.u32 4294901760, %v140_v58  ;;  %v2980_v45 = vand.u32 4294901760, %v141_v37  ;;  %v14844_v46 = vand.u32 4294901760, %v12069_v15  ;;  %v14842_v19 = vand.u32 4294901760, %v12071_v22 }
 0x149   :  { %9528 = vmatpush3.bf16.msra.mxu1 %v15303_v7  ;;  %v12097_v28 = vpack.c.bf16 %v2974_v52, %v2971_v16  ;;  %v12099_v53 = vsub.f32 %v138_v33, %v2971_v16  ;;  %v12101_v57 = vsub.f32 %v139_v54, %v2974_v52  ;;  %v14843_v29 = vand.u32 4294901760, %v12076_v26 }
 0x14a   :  { %9530 = vmatprep.subr.bf16.mxu1 %v15304_v41  ;;  %v3193_v3 = vand.u32 4294901760, %v3192_v55  ;;  %v3200_v1 = vand.u32 4294901760, %v3199_v62  ;;  %v3080_v49 = vsub.f32 %v12032_v50, %v14845_v42  ;;  %v3031_v35 = vand.u32 4294901760, %v158_v4  ;;  %v143_v55 = vld [vmem:[#allocation5 + $0x338] sm:$0xff]  ;;  %v161_v42 = vld [vmem:[#allocation5 + $0x3c8] sm:$0xff] }
 0x14b   :  { %9504 = vmatpush3.bf16.msra.mxu0 %v9503_v14  ;;  %v12108_v7 = vpack.c.bf16 %v3028_v48, %v3025_v63  ;;  %v12110_v9 = vsub.f32 %v156_v18, %v3025_v63  ;;  %v3034_v33 = vand.u32 4294901760, %v159_v10  ;;  %v12112_v54 = vand.u32 4294901760, %v329_v11 }
 0x14c   :  { %9506 = vmatprep.subr.bf16.mxu0 %v9505_v21  ;;  %v12114_v16 = vsub.f32 %v157_v47, %v3028_v48  ;;  %v12116_v14 = vpack.c.bf16 %v2980_v45, %v2977_v36  ;;  %v3087_v41 = vsub.f32 %v12069_v15, %v14844_v46  ;;  %v3206_v52 = vsub.f32 %v12071_v22, %v14842_v19  ;;  %v142_v21 = vld [vmem:[#allocation5 + $0x330] sm:$0xff]  ;;  %v160_v46 = vld [vmem:[#allocation5 + $0x3c0] sm:$0xff] }
 0x14d   :  { %15350 = vst [vmem:[#allocation17_spill] sm:$0xff] %v12112_v54  ;;  %9532 = vmatpush3.bf16.msra.mxu1 %v15309_v56  ;;  %v12125_v18 = vsub.f32 %v140_v58, %v2977_v36  ;;  %v3213_v47 = vsub.f32 %v12076_v26, %v14843_v29  ;;  %v14848_v62 = vand.u32 4294901760, %v12099_v53  ;;  %v14847_v63 = vand.u32 4294901760, %v12101_v57 }
 0x14e   :  { %15351 = vst [vmem:[#allocation13_spill] sm:$0xff] %v12116_v14  ;;  %9534 = vmatprep.subr.bf16.mxu1 %v15310_v31  ;;  %v12134_v48 = vpack.c.bf16 %v3200_v1, %v3193_v3  ;;  %v12136_v24 = vsub.f32 %v141_v37, %v2980_v45  ;;  %v3081_v19 = vand.u32 4294901760, %v3080_v49  ;;  %v12138_v56 = vsub.f32 %v158_v4, %v3031_v35 }
 0x14f   :  { %9508 = vmatpush3.bf16.msra.mxu0 %v12023_v8  ;;  %v12141_v58 = vpack.c.bf16 %v3034_v33, %v3031_v35  ;;  %v2983_v36 = vand.u32 4294901760, %v142_v21  ;;  %v2986_v29 = vand.u32 4294901760, %v143_v55  ;;  %v12144_v13 = vsub.f32 %v329_v11, %v12112_v54 }
 0x150   :  { %15352 = vst [vmem:[#allocation12_spill] sm:$0xff] %v12136_v24  ;;  %9510 = vmatprep.subr.bf16.mxu0 %v12030_v32  ;;  %v3088_v31 = vand.u32 4294901760, %v3087_v41  ;;  %v12146_v3 = vsub.f32 %v159_v10, %v3034_v33  ;;  %v3207_v37 = vand.u32 4294901760, %v3206_v52  ;;  %v14853_v45 = vand.u32 4294901760, %v12110_v9 }
 0x151   :  { %15353 = vst [vmem:[#allocation20_spill] sm:$0xff] %v12141_v58  ;;  %v7399_v8 = vpop.f32.mrb[2].mxu0  ;;  %9536 = vmatpush3.bf16.msra.mxu1 %v15311_v51  ;;  %v3214_v32 = vand.u32 4294901760, %v3213_v47  ;;  %v3094_v1 = vsub.f32 %v12099_v53, %v14848_v62  ;;  %v3101_v11 = vsub.f32 %v12101_v57, %v14847_v63  ;;  %v14851_v49 = vand.u32 4294901760, %v12114_v16  ;;  %v144_v62 = vld [vmem:[#allocation5 + $0x340] sm:$0xff] }
 0x152   :  { %v7400_v4 = vpop.f32.mrb[3].mxu0  ;;  %9538 = vmatprep.subr.bf16.mxu1 %v11693_v40  ;;  %v3037_v10 = vand.u32 4294901760, %v160_v46  ;;  %v3040_v33 = vand.u32 4294901760, %v161_v42  ;;  %v14850_v51 = vand.u32 4294901760, %v12125_v18  ;;  %v12161_v41 = vpack.c.bf16 %v2986_v29, %v2983_v36 }
 0x153   :  { %v7401_v35 = vadd.f32 %v7400_v4, %v7399_v8  ;;  %9512 = vmatpush3.bf16.msra.mxu0 %v12040_v59  ;;  %v12163_v52 = vsub.f32 %v142_v21, %v2983_v36  ;;  %v14852_v47 = vand.u32 4294901760, %v12136_v24  ;;  %v14854_v63 = vand.u32 4294901760, %v12144_v13 }
 0x154   :  { %9514 = vmatprep.subr.bf16.mxu0 %v12046_v34  ;;  %15354 = vst [vmem:[#allocation18_spill] sm:$0xff] %v12161_v41  ;;  %v12168_v4 = vpack.c.bf16 %v3088_v31, %v3081_v19  ;;  %v12170_v59 = vsub.f32 %v143_v55, %v2986_v29  ;;  %v3220_v40 = vsub.f32 %v12110_v9, %v14853_v45  ;;  %v3095_v21 = vand.u32 4294901760, %v3094_v1  ;;  %v162_v55 = vld [vmem:[#allocation5 + $0x3d0] sm:$0xff] }
 0x155   :  { %15355 = vst [vmem:[#allocation16_spill] sm:$0xff] %v12163_v52  ;;  %v857_v8 = vadd.f32 %v7401_v35, %v11980_v12  ;;  %9540 = vmatpush3.bf16.msra.mxu1 %v11716_v23  ;;  %v12176_v34 = vpack.c.bf16 %v3214_v32, %v3207_v37  ;;  %v3102_v36 = vand.u32 4294901760, %v3101_v11  ;;  %v3227_v6 = vsub.f32 %v12114_v16, %v14851_v49  ;;  %v145_v12 = vld [vmem:[#allocation5 + $0x348] sm:$0xff] }
 0x156   :  { %9542 = vmatprep.subr.bf16.mxu1 %v15312_v39  ;;  %v12183_v19 = vpack.c.bf16 %v3040_v33, %v3037_v10  ;;  %v12185_v29 = vsub.f32 %v160_v46, %v3037_v10  ;;  %v3108_v23 = vsub.f32 %v12125_v18, %v14850_v51  ;;  %v7434_v31 = vpop.f32.mrb[2].mxu1  ;;  %v12191_v37 = vsub.f32 %v161_v42, %v3040_v33  ;;  %v163_v39 = vld [vmem:[#allocation5 + $0x3d8] sm:$0xff]  ;;  %v15361_v10 = vld [vmem:[#allocation27_spill] sm:$0xff] }
 0x157   :  { %9516 = vmatpush3.bf16.msra.mxu0 %v12052_v2  ;;  %v2989_v32 = vand.u32 4294901760, %v144_v62  ;;  %v3115_v2 = vsub.f32 %v12136_v24, %v14852_v47  ;;  %v3063_v46 = vsub.f32 %v12144_v13, %v14854_v63  ;;  %v7435_v1 = vpop.f32.mrb[3].mxu1  ;;  %v3221_v11 = vand.u32 4294901760, %v3220_v40  ;;  %v147_v40 = vld [vmem:[#allocation5 + $0x358] sm:$0xff] }
 0x158   :  { %15356 = vst [vmem:[#allocation23_spill] sm:$0xff] %v12183_v19  ;;  %9518 = vmatprep.subr.bf16.mxu0 %v12061_v5  ;;  %v2992_v35 = vand.u32 4294901760, %v145_v12  ;;  %v146_v5 = vld [vmem:[#allocation5 + $0x350] sm:$0xff]  ;;  %v7436_v42 = vadd.f32 %v7435_v1, %v7434_v31  ;;  %v12202_v33 = vpack.c.bf16 %v3102_v36, %v3095_v21  ;;  %v3228_v49 = vand.u32 4294901760, %v3227_v6 }
 0x159   :  { %9544 = vmatpush3.bf16.msra.mxu1 %v11758_v44  ;;  %v3043_v47 = vand.u32 4294901760, %v162_v55  ;;  %v3109_v45 = vand.u32 4294901760, %v3108_v23  ;;  %v3046_v63 = vand.u32 4294901760, %v163_v39  ;;  %v14859_v24 = vand.u32 4294901760, %v12163_v52 }
 0x15a   :  { %9546 = vmatprep.subr.bf16.mxu1 %v11880_v20  ;;  %v12208_v51 = vadd.f32 %v7436_v42, %v857_v8  ;;  %v3116_v44 = vand.u32 4294901760, %v3115_v2  ;;  %v2995_v21 = vand.u32 4294901760, %v146_v5  ;;  %v3064_v36 = vand.u32 4294901760, %v3063_v46  ;;  %v15364_v42 = vld [vmem:[#allocation28_spill] sm:$0xff] }
 0x15b   :  { %9520 = vmatpush3.bf16.msra.mxu0 %v12067_v0  ;;  %v12211_v6 = vpack.c.bf16 %v2992_v35, %v2989_v32  ;;  %v12213_v31 = vsub.f32 %v144_v62, %v2989_v32  ;;  %v15359_v20 = vand.u32 4294901760, %v12138_v56  ;;  %v15360_v23 = vand.u32 4294901760, %v12146_v3  ;;  %v12229_v32 = vld [vmem:[#allocation5 + $0x3e0] sm:$0xff] }
 0x15c   :  { %9554 = vmatprep.subr.bf16.mxu0 %v12074_v60  ;;  %v12223_v8 = vpack.c.bf16 %v3228_v49, %v3221_v11  ;;  %v12225_v2 = vsub.f32 %v145_v12, %v2992_v35  ;;  %v12227_v46 = vsub.f32 %v162_v55, %v3043_v47  ;;  %v2998_v62 = vand.u32 4294901760, %v147_v40  ;;  %v12241_v12 = vld [vmem:[#allocation5 + $0x3e8] sm:$0xff] }
 0x15d   :  { %15357 = vst [vmem:[#allocation26_spill] sm:$0xff] %v12211_v6  ;;  %15358 = vst [vmem:[#allocation21_spill] sm:$0xff] %v12213_v31  ;;  %v3234_v0 = vsub.f32 %v12138_v56, %v15359_v20  ;;  %v3241_v1 = vsub.f32 %v12146_v3, %v15360_v23  ;;  %9548 = vmatpush3.bf16.msra.mxu1 %v11884_v27  ;;  %v12233_v20 = vpack.c.bf16 %v3046_v63, %v3043_v47  ;;  %v12250_v47 = vld [vmem:[#allocation5 + $0x360] sm:$0xff] }
 0x15e   :  { %2855 = vmatmul.mubr.f32.vlgmr.msra.gmra.mrb[16].mxu0 %v15361_v10  ;;  %15362 = vst [vmem:[#allocation24_spill] sm:$0xff] %v12225_v2  ;;  %15363 = vst [vmem:[#allocation25_spill] sm:$0xff] %v12227_v46  ;;  %9550 = vmatprep.subr.bf16.mxu1 %v15364_v42  ;;  %v3122_v23 = vsub.f32 %v12163_v52, %v14859_v24  ;;  %v15366_v27 = vand.u32 4294901760, %v12170_v59  ;;  %v12244_v55 = vpack.c.bf16 %v3116_v44, %v3109_v45  ;;  %v12272_v45 = vld [vmem:[#allocation5 + $0x3f8] sm:$0xff] }
 0x15f   :  { %9556 = vmatpush3.bf16.msra.mxu0 %v12080_v30  ;;  %15365 = vst [vmem:[#allocation15_spill] sm:$0xff] %v12233_v20  ;;  %v12246_v11 = vsub.f32 %v163_v39, %v3046_v63  ;;  %v12248_v35 = vsub.f32 %v146_v5, %v2995_v21  ;;  %3065 = vmatprep.mubr.f32.mxu0 %v3064_v36  ;;  %v3235_v42 = vand.u32 4294901760, %v3234_v0  ;;  %v3242_v30 = vand.u32 4294901760, %v3241_v1  ;;  %v12259_v39 = vld [vmem:[#allocation5 + $0x368] sm:$0xff]  ;;  %v12270_v63 = vld [vmem:[#allocation5 + $0x3f0] sm:$0xff] }
 0x160   :  { %v3129_v49 = vsub.f32 %v12170_v59, %v15366_v27  ;;  %9558 = vmatprep.subr.bf16.mxu0 %v12089_v17  ;;  %v14862_v24 = vand.u32 4294901760, %v12229_v32  ;;  %v14863_v52 = vand.u32 4294901760, %v12185_v29  ;;  %v12255_v27 = vpack.c.bf16 %v2998_v62, %v2995_v21  ;;  %v12307_v21 = vld [vmem:[#allocation5 + $0x370] sm:$0xff] }
 0x161   :  { %15367 = vst [vmem:[#allocation19_spill] sm:$0xff] %v12246_v11  ;;  %9552 = vmatpush3.bf16.msra.mxu1 %v11919_v61  ;;  %v12264_v44 = vsub.f32 %v147_v40, %v2998_v62  ;;  %v3123_v36 = vand.u32 4294901760, %v3122_v23  ;;  %v14865_v61 = vand.u32 4294901760, %v12250_v47  ;;  %v9597_v40 = vpack.c.bf16 %v3242_v30, %v3235_v42  ;;  %v10523_v42 = vld [vmem:[#allocation2] sm:$0xff] }
 0x162   :  { %9586 = vmatprep.subr.bf16.mxu1 %v12134_v48  ;;  %v3130_v0 = vand.u32 4294901760, %v3129_v49  ;;  %v12280_v62 = vsub.f32 %v12229_v32, %v14862_v24  ;;  %v3248_v23 = vsub.f32 %v12185_v29, %v14863_v52  ;;  %v3004_v49 = vand.u32 4294901760, %v12259_v39 }
 0x163   :  { %9560 = vmatpush3.bf16.msra.mxu0 %v12097_v28  ;;  %15368 = vst [vmem:[#allocation14_spill] sm:$0xff] %v12264_v44  ;;  %v15369_v5 = vand.u32 4294901760, %v12241_v12  ;;  %v15371_v30 = vand.u32 4294901760, %v12191_v37  ;;  %v15372_v24 = vsub.s32 6, %v15342_v43  ;;  %v12309_v43 = vld [vmem:[#allocation5 + $0x378] sm:$0xff] }
 0x164   :  { %9562 = vmatprep.subr.bf16.mxu0 %v12108_v7  ;;  %2959 = vmatmul.mubr.f32.vlgmr.msra.gmra.mrb[16].mxu1 %v15361_v10 }
 0x165   :  { %9588 = vmatpush3.bf16.msra.mxu1 %v12168_v4  ;;  %v12290_v48 = vsub.f32 %v12241_v12, %v15369_v5  ;;  %v3255_v10 = vsub.f32 %v12191_v37, %v15371_v30  ;;  %v325_v1 = vrot.slane %v10523_v42, %v15372_v24  ;;  %3301 = vmatprep.mubr.f32.mxu1 %v12112_v54  ;;  %v15373_v24 = vand.u32 4294901760, %v12213_v31 }
 0x166   :  { %9590 = vmatprep.subr.bf16.mxu1 %v12176_v34  ;;  %v9599_v4 = vpack.c.bf16 %v3130_v0, %v3123_v36  ;;  %v12303_v5 = vsub.f32 %v12250_v47, %v14865_v61  ;;  %v15374_v36 = vand.u32 4294901760, %v12225_v2  ;;  %v15375_v42 = vand.u32 4294901760, %v12227_v46 }
 0x167   :  { %15370 = vst [vmem:[#allocation27_spill] sm:$0xff] %v12290_v48  ;;  %9564 = vmatpush3.bf16.msra.mxu0 %v12116_v14  ;;  %v3136_v34 = vsub.f32 %v12213_v31, %v15373_v24  ;;  %v15376_v30 = vand.u32 4294901760, %v12246_v11  ;;  %v3249_v54 = vand.u32 4294901760, %v3248_v23  ;;  %v12325_v14 = vsub.f32 %v12259_v39, %v3004_v49 }
 0x168   :  { %9566 = vmatprep.subr.bf16.mxu0 %v12141_v58  ;;  %v3143_v0 = vsub.f32 %v12225_v2, %v15374_v36  ;;  %v3262_v61 = vsub.f32 %v12227_v46, %v15375_v42  ;;  %v12332_v31 = vand.u32 4294901760, %v325_v1  ;;  %v3256_v39 = vand.u32 4294901760, %v3255_v10 }
 0x169   :  { %v3269_v52 = vsub.f32 %v12246_v11, %v15376_v30  ;;  %9592 = vmatpush3.bf16.msra.mxu1 %v12202_v33  ;;  %v15378_v23 = vand.u32 4294901760, %v12270_v63  ;;  %v15379_v33 = vand.u32 4294901760, %v12272_v45  ;;  %v3137_v42 = vand.u32 4294901760, %v3136_v34 }
 0x16a   :  { %15377 = vst [vmem:[#allocation28_spill] sm:$0xff] %v12332_v31  ;;  %9594 = vmatprep.subr.bf16.mxu1 %v12223_v8  ;;  %v3144_v24 = vand.u32 4294901760, %v3143_v0  ;;  %v3263_v58 = vand.u32 4294901760, %v3262_v61  ;;  %v15380_v8 = vand.u32 4294901760, %v12248_v35  ;;  %v15382_v2 = vand.u32 4294901760, %v12307_v21 }
 0x16b   :  { %9568 = vmatpush3.bf16.msra.mxu0 %v12161_v41  ;;  %v12340_v30 = vsub.f32 %v12270_v63, %v15378_v23  ;;  %v12345_v36 = vsub.f32 %v12272_v45, %v15379_v33  ;;  %v3270_v41 = vand.u32 4294901760, %v3269_v52  ;;  %v15381_v23 = vand.u32 4294901760, %v12264_v44 }
 0x16c   :  { %9570 = vmatprep.subr.bf16.mxu0 %v12183_v19  ;;  %v3150_v10 = vsub.f32 %v12248_v35, %v15380_v8  ;;  %v12361_v34 = vsub.f32 %v12307_v21, %v15382_v2  ;;  %v15383_v52 = vand.u32 4294901760, %v12309_v43  ;;  %v12369_v0 = vsub.f32 %v325_v1, %v12332_v31 }
 0x16d   :  { %v3157_v11 = vsub.f32 %v12264_v44, %v15381_v23  ;;  %9596 = vmatpush3.bf16.msra.mxu1 %v12244_v55  ;;  %v15384_v8 = vand.u32 4294901760, %v12280_v62  ;;  %v9601_v55 = vpack.c.bf16 %v3256_v39, %v3249_v54  ;;  %v15385_v33 = vand.u32 4294901760, %v12290_v48 }
 0x16e   :  { %v12366_v61 = vsub.f32 %v12309_v43, %v15383_v52  ;;  %9598 = vmatprep.subr.bf16.mxu1 %v9597_v40  ;;  %v15386_v1 = vand.u32 4294901760, %v12229_v32  ;;  %v15387_v19 = vand.u32 4294901760, %v12241_v12  ;;  %v9603_v54 = vpack.c.bf16 %v3144_v24, %v3137_v42 }
 0x16f   :  { %v3276_v23 = vsub.f32 %v12280_v62, %v15384_v8  ;;  %9572 = vmatpush3.bf16.msra.mxu0 %v12211_v6  ;;  %v3283_v2 = vsub.f32 %v12290_v48, %v15385_v33  ;;  %v15389_v8 = vand.u32 4294901760, %v12250_v47  ;;  %v9605_v39 = vpack.c.bf16 %v3270_v41, %v3263_v58 }
 0x170   :  { %9574 = vmatprep.subr.bf16.mxu0 %v12233_v20  ;;  %v12385_v44 = vpack.c.bf16 %v15387_v19, %v15386_v1  ;;  %v3151_v33 = vand.u32 4294901760, %v3150_v10  ;;  %v3158_v48 = vand.u32 4294901760, %v3157_v11  ;;  %v15390_v46 = vand.u32 4294901760, %v12303_v5 }
 0x171   :  { %v12389_v40 = vpack.c.bf16 %v3004_v49, %v15389_v8  ;;  %v7469_v6 = vpop.f32.mrb[4].mxu0  ;;  %v15391_v20 = vand.u32 4294901760, %v12325_v14  ;;  %9600 = vmatpush3.bf16.msra.mxu1 %v9599_v4  ;;  %v14894_v19 = vand.u32 4294901760, %v12369_v0  ;;  %v3277_v47 = vand.u32 4294901760, %v3276_v23 }
 0x172   :  { %15388 = vst [vmem:[#allocation29_spill] sm:$0xff] %v12385_v44  ;;  %v3164_v52 = vsub.f32 %v12303_v5, %v15390_v46  ;;  %v7470_v12 = vpop.f32.mrb[5].mxu0  ;;  %v14893_v49 = vand.u32 4294901760, %v12361_v34  ;;  %v14892_v58 = vand.u32 4294901760, %v12366_v61  ;;  %9602 = vmatprep.subr.bf16.mxu1 %v9601_v55  ;;  %v3284_v11 = vand.u32 4294901760, %v3283_v2 }
 0x173   :  { %v3171_v32 = vsub.f32 %v12325_v14, %v15391_v20  ;;  %v7471_v41 = vadd.f32 %v7470_v12, %v7469_v6  ;;  %9576 = vmatpush3.bf16.msra.mxu0 %v12255_v27  ;;  %v15392_v46 = vand.u32 4294901760, %v12340_v30  ;;  %v15393_v20 = vand.u32 4294901760, %v12345_v36 }
 0x174   :  { %9578 = vmatprep.subr.bf16.mxu0 %v12385_v44  ;;  %v15394_v42 = vand.u32 4294901760, %v12270_v63  ;;  %v15395_v10 = vand.u32 4294901760, %v12272_v45  ;;  %v3165_v55 = vand.u32 4294901760, %v3164_v52  ;;  %v9607_v1 = vpack.c.bf16 %v3158_v48, %v3151_v33 }
 0x175   :  { %v3290_v24 = vsub.f32 %v12340_v30, %v15392_v46  ;;  %v3297_v4 = vsub.f32 %v12345_v36, %v15393_v20  ;;  %v1133_v6 = vadd.f32 %v7471_v41, %v12208_v51  ;;  %v3172_v2 = vand.u32 4294901760, %v3171_v32  ;;  %9604 = vmatpush3.bf16.msra.mxu1 %v9603_v54 }
 0x176   :  { %v12412_v23 = vpack.c.bf16 %v15395_v10, %v15394_v42  ;;  %v3069_v8 = vsub.f32 %v12369_v0, %v14894_v19  ;;  %v3178_v12 = vsub.f32 %v12361_v34, %v14893_v49  ;;  %v3185_v45 = vsub.f32 %v12366_v61, %v14892_v58  ;;  %9606 = vmatprep.subr.bf16.mxu1 %v9605_v39  ;;  %v7504_v32 = vpop.f32.mrb[4].mxu1  ;;  %v12486_v49 = vld [vmem:[#allocation5 + $0x488] sm:$0xff] }
 0x177   :  { %9580 = vmatpush3.bf16.msra.mxu0 %v12389_v40  ;;  %v15396_v51 = vand.u32 4294901760, %v12307_v21  ;;  %v15397_v63 = vand.u32 4294901760, %v12309_v43  ;;  %v9609_v52 = vpack.c.bf16 %v3284_v11, %v3277_v47  ;;  %v3291_v54 = vand.u32 4294901760, %v3290_v24  ;;  %v7505_v46 = vpop.f32.mrb[5].mxu1 }
 0x178   :  { %v3298_v33 = vand.u32 4294901760, %v3297_v4  ;;  %9582 = vmatprep.subr.bf16.mxu0 %v12412_v23  ;;  %v9617_v41 = vpack.c.bf16 %v11995_v38, %v11993_v25  ;;  %v9611_v20 = vpack.c.bf16 %v3172_v2, %v3165_v55  ;;  %v7506_v42 = vadd.f32 %v7505_v46, %v7504_v32 }
 0x179   :  { %v12429_v48 = vpack.c.bf16 %v15397_v63, %v15396_v51  ;;  %9608 = vmatpush3.bf16.msra.mxu1 %v9607_v1  ;;  %v3070_v39 = vand.u32 4294901760, %v3069_v8  ;;  %v3179_v10 = vand.u32 4294901760, %v3178_v12  ;;  %v3186_v21 = vand.u32 4294901760, %v3185_v45  ;;  %v15399_v12 = vld [vmem:[#allocation22_spill] sm:$0xff]  ;;  %v15401_v51 = vld [vmem:[#allocation16_spill] sm:$0xff] }
 0x17a   :  { %9610 = vmatprep.subr.bf16.mxu1 %v9609_v52  ;;  %v9619_v43 = vpack.c.bf16 %v12069_v15, %v12032_v50  ;;  %v9613_v47 = vpack.c.bf16 %v3298_v33, %v3291_v54  ;;  %v1237_v11 = vadd.f32 %v7506_v42, %v1133_v6  ;;  %v9621_v24 = vpack.c.bf16 %v12076_v26, %v12071_v22  ;;  %v15398_v6 = vld [vmem:[#allocation12_spill] sm:$0xff]  ;;  %v15402_v54 = vld [vmem:[#allocation21_spill] sm:$0xff] }
 0x17b   :  { %9584 = vmatpush3.bf16.msra.mxu0 %v12429_v48  ;;  %v9615_v4 = vpack.c.bf16 %v3186_v21, %v3179_v10  ;;  %v9623_v55 = vpack.c.bf16 %v12101_v57, %v12099_v53  ;;  %v9625_v2 = vpack.c.bf16 %v12114_v16, %v12110_v9  ;;  %v9627_v1 = vpack.c.bf16 %v15398_v6, %v12125_v18  ;;  %v15403_v33 = vld [vmem:[#allocation24_spill] sm:$0xff]  ;;  %v15409_v21 = vld [vmem:[#allocation27_spill] sm:$0xff] }
 0x17c   :  { %9618 = vmatprep.subr.bf16.mxu0 %v9617_v41  ;;  %v9629_v8 = vpack.c.bf16 %v12146_v3, %v12138_v56  ;;  %v15400_v45 = vand.u32 4294901760, %v12144_v13  ;;  %v9631_v63 = vpack.c.bf16 %v12170_v59, %v15401_v51  ;;  %v9633_v52 = vpack.c.bf16 %v12191_v37, %v12185_v29  ;;  %v15405_v41 = vld [vmem:[#allocation19_spill] sm:$0xff]  ;;  %v15407_v42 = vld [vmem:[#allocation20_spill] sm:$0xff] }
 0x17d   :  { %9612 = vmatpush3.bf16.msra.mxu1 %v9611_v20  ;;  %v9635_v32 = vpack.c.bf16 %v15403_v33, %v15402_v54  ;;  %v15406_v20 = vld [vmem:[#allocation13_spill] sm:$0xff] }
 0x17e   :  { %3071 = vmatmul.mubr.f32.vlgmr.msra.gmra.mrb[18].mxu0 %v3070_v39  ;;  %9614 = vmatprep.subr.bf16.mxu1 %v9613_v47  ;;  %v15408_v39 = vld [vmem:[#allocation14_spill] sm:$0xff] }
 0x17f   :  { %9620 = vmatpush3.bf16.msra.mxu0 %v9619_v43  ;;  %3438 = vmatprep.mubr.f32.mxu0 %v12144_v13  ;;  %v15404_v13 = vld [vmem:[#allocation25_spill] sm:$0xff]  ;;  %v9639_v10 = vpack.c.bf16 %v15408_v39, %v12248_v35  ;;  %v9641_v43 = vpack.c.bf16 %v15409_v21, %v12280_v62 }
 0x180   :  { %9622 = vmatprep.subr.bf16.mxu0 %v9621_v24  ;;  %v9637_v46 = vpack.c.bf16 %v15405_v41, %v15404_v13 }
 0x181   :  { %9616 = vmatpush3.bf16.msra.mxu1 %v9615_v4  ;;  %v15410_v4 = vld [vmem:[#allocation18_spill] sm:$0xff] }
 0x182   :  { %9650 = vmatprep.subr.bf16.mxu1 %v12074_v60 }
 0x183   :  { %9624 = vmatpush3.bf16.msra.mxu0 %v9623_v55 }
 0x184   :  { %9626 = vmatprep.subr.bf16.mxu0 %v9625_v2  ;;  %3303 = vmatmul.mubr.f32.vlgmr.msra.gmra.mrb[18].mxu1 %v12332_v31  ;;  %v15411_v2 = vld [vmem:[#allocation23_spill] sm:$0xff]  ;;  %v3878_v31 = vand.u32 4294901760, %v12486_v49 }
 0x185   :  { %9652 = vmatpush3.bf16.msra.mxu1 %v15399_v12  ;;  %3545 = vmatprep.mubr.f32.mxu1 %v15400_v45 }
 0x186   :  { %9654 = vmatprep.subr.bf16.mxu1 %v12089_v17 }
 0x187   :  { %9628 = vmatpush3.bf16.msra.mxu0 %v9627_v1  ;;  %v9643_v1 = vpack.c.bf16 %v12325_v14, %v12303_v5 }
 0x188   :  { %9630 = vmatprep.subr.bf16.mxu0 %v9629_v8  ;;  %v9645_v8 = vpack.c.bf16 %v12345_v36, %v12340_v30 }
 0x189   :  { %9656 = vmatpush3.bf16.msra.mxu1 %v12097_v28 }
 0x18a   :  { %9658 = vmatprep.subr.bf16.mxu1 %v12108_v7 }
 0x18b   :  { %9632 = vmatpush3.bf16.msra.mxu0 %v9631_v63  ;;  %v15412_v63 = vld [vmem:[#allocation26_spill] sm:$0xff] }
 0x18c   :  { %9634 = vmatprep.subr.bf16.mxu0 %v9633_v52  ;;  %v15413_v52 = vld [vmem:[#allocation15_spill] sm:$0xff] }
 0x18d   :  { %9660 = vmatpush3.bf16.msra.mxu1 %v15406_v20 }
 0x18e   :  { %9662 = vmatprep.subr.bf16.mxu1 %v15407_v42 }
 0x18f   :  { %9636 = vmatpush3.bf16.msra.mxu0 %v9635_v32  ;;  %v9647_v32 = vpack.c.bf16 %v12366_v61, %v12361_v34 }
 0x190   :  { %9638 = vmatprep.subr.bf16.mxu0 %v9637_v46 }
 0x191   :  { %v7539_v47 = vpop.f32.mrb[6].mxu0  ;;  %9664 = vmatpush3.bf16.msra.mxu1 %v15410_v4 }
 0x192   :  { %v7540_v24 = vpop.f32.mrb[7].mxu0  ;;  %9666 = vmatprep.subr.bf16.mxu1 %v15411_v2 }
 0x193   :  { %v7541_v55 = vadd.f32 %v7540_v24, %v7539_v47  ;;  %9640 = vmatpush3.bf16.msra.mxu0 %v9639_v10  ;;  %v15414_v10 = vand.u32 4294901760, %v11993_v25  ;;  %v15415_v47 = vand.u32 4294901760, %v11995_v38  ;;  %v15416_v25 = vand.u32 4294901760, %v12032_v50 }
 0x194   :  { %9642 = vmatprep.subr.bf16.mxu0 %v9641_v43  ;;  %v12484_v43 = vld [vmem:[#allocation5 + $0x480] sm:$0xff]  ;;  %v15417_v38 = vand.u32 4294901760, %v12069_v15  ;;  %v15420_v50 = vand.u32 4294901760, %v12099_v53  ;;  %v15421_v15 = vand.u32 4294901760, %v12101_v57  ;;  %v15425_v53 = vand.u32 4294901760, %v12125_v18 }
 0x195   :  { %v1349_v45 = vadd.f32 %v7541_v55, %v1237_v11  ;;  %9668 = vmatpush3.bf16.msra.mxu1 %v15412_v63  ;;  %v9681_v24 = vpack.c.bf16 %v15415_v47, %v15414_v10  ;;  %v12489_v55 = vld [vmem:[#allocation5 + $0x400] sm:$0xff]  ;;  %v3875_v10 = vand.u32 4294901760, %v12484_v43  ;;  %v15426_v57 = vand.u32 4294901760, %v15398_v6 }
 0x196   :  { %9670 = vmatprep.subr.bf16.mxu1 %v15413_v52  ;;  %v7574_v46 = vpop.f32.mrb[6].mxu1  ;;  %v15430_v18 = vand.u32 4294901760, %v12170_v59  ;;  %v15431_v6 = vand.u32 4294901760, %v12185_v29  ;;  %v15435_v59 = vand.u32 4294901760, %v15404_v13  ;;  %v15441_v13 = vand.u32 4294901760, %v12303_v5 }
 0x197   :  { %9644 = vmatpush3.bf16.msra.mxu0 %v9643_v1  ;;  %v7575_v58 = vpop.f32.mrb[7].mxu1  ;;  %v12491_v1 = vld [vmem:[#allocation5 + $0x408] sm:$0xff]  ;;  %v15446_v5 = vand.u32 4294901760, %v12345_v36 }
 0x198   :  { %9646 = vmatprep.subr.bf16.mxu0 %v9645_v8  ;;  %v7576_v11 = vadd.f32 %v7575_v58, %v7574_v46  ;;  %v9683_v8 = vpack.c.bf16 %v15417_v38, %v15416_v25  ;;  %v15418_v58 = vand.u32 4294901760, %v12071_v22  ;;  %v15419_v46 = vand.u32 4294901760, %v12076_v26  ;;  %v15424_v38 = vld [vmem:[#allocation17_spill] sm:$0xff] }
 0x199   :  { %9672 = vmatpush3.bf16.msra.mxu1 %v12255_v27  ;;  %v9687_v22 = vpack.c.bf16 %v15421_v15, %v15420_v50  ;;  %v12516_v26 = vsub.f32 %v12484_v43, %v3875_v10  ;;  %v15429_v50 = vand.u32 4294901760, %v15401_v51  ;;  %v15436_v51 = vand.u32 4294901760, %v15405_v41 }
 0x19a   :  { %9674 = vmatprep.subr.bf16.mxu1 %v12385_v44  ;;  %v12499_v47 = vadd.f32 %v7576_v11, %v1349_v45  ;;  %v9685_v19 = vpack.c.bf16 %v15419_v46, %v15418_v58  ;;  %v3830_v44 = vand.u32 4294901760, %v12491_v1  ;;  %v186_v45 = vld [vmem:[#allocation5 + $0x490] sm:$0xff]  ;;  %v15423_v11 = vand.u32 4294901760, %v12114_v16  ;;  %v187_v58 = vld [vmem:[#allocation5 + $0x498] sm:$0xff] }
 0x19b   :  { %9648 = vmatpush3.bf16.msra.mxu0 %v9647_v32  ;;  %v3827_v32 = vand.u32 4294901760, %v12489_v55  ;;  %v9691_v46 = vpack.c.bf16 %v15426_v57, %v15425_v53  ;;  %v15428_v16 = vand.u32 4294901760, %v12146_v3  ;;  %v9695_v15 = vpack.c.bf16 %v15430_v18, %v15429_v50  ;;  %v171_v53 = vld [vmem:[#allocation5 + $0x418] sm:$0xff] }
 0x19c   :  { %9682 = vmatprep.subr.bf16.mxu0 %v9681_v24  ;;  %v15422_v24 = vand.u32 4294901760, %v12110_v9  ;;  %v15427_v9 = vand.u32 4294901760, %v12138_v56  ;;  %v15433_v56 = vand.u32 4294901760, %v15402_v54  ;;  %v15434_v3 = vand.u32 4294901760, %v15403_v33 }
 0x19d   :  { %9676 = vmatpush3.bf16.msra.mxu1 %v12389_v40  ;;  %v12531_v43 = vsub.f32 %v12489_v55, %v3827_v32  ;;  %v15432_v55 = vand.u32 4294901760, %v12191_v37  ;;  %v12560_v29 = vpack.c.bf16 %v15436_v51, %v15435_v59  ;;  %v3884_v37 = vand.u32 4294901760, %v187_v58 }
 0x19e   :  { %3441 = vmatmul.mubr.f32.vlgmr.msra.gmra.mrb[20].mxu0 %v12369_v0  ;;  %9678 = vmatprep.subr.bf16.mxu1 %v12412_v23  ;;  %v9689_v25 = vpack.c.bf16 %v15423_v11, %v15422_v24  ;;  %v3881_v11 = vand.u32 4294901760, %v186_v45  ;;  %v12554_v57 = vpack.c.bf16 %v15434_v3, %v15433_v56  ;;  %v15439_v54 = vand.u32 4294901760, %v12280_v62  ;;  %v12586_v3 = vld [vmem:[#allocation2 + $0x8] sm:$0xff] }
 0x19f   :  { %9684 = vmatpush3.bf16.msra.mxu0 %v9683_v8  ;;  %3715 = vmatprep.mubr.f32.mxu0 %v15424_v38  ;;  %v12524_v8 = vsub.f32 %v12486_v49, %v3878_v31  ;;  %v9693_v49 = vpack.c.bf16 %v15428_v16, %v15427_v9  ;;  %v9697_v24 = vpack.c.bf16 %v15432_v55, %v15431_v6  ;;  %v14902_v9 = vand.u32 4294901760, %v12516_v26  ;;  %v188_v6 = vld [vmem:[#allocation5 + $0x4a0] sm:$0xff] }
 0x1a0   :  { %9686 = vmatprep.subr.bf16.mxu0 %v9685_v19  ;;  %v12534_v19 = vsub.f32 %v12491_v1, %v3830_v44  ;;  %v170_v1 = vld [vmem:[#allocation5 + $0x410] sm:$0xff]  ;;  %v15440_v33 = vand.u32 4294901760, %v15409_v21  ;;  %v15442_v41 = vand.u32 4294901760, %v12325_v14  ;;  %v3836_v56 = vand.u32 4294901760, %v171_v53  ;;  %15444 = vst [vmem:[#allocation12_spill] sm:$0xff] %v12586_v3 }
 0x1a1   :  { %9680 = vmatpush3.bf16.msra.mxu1 %v12429_v48  ;;  %v3833_v55 = vand.u32 4294901760, %v170_v1  ;;  %v14899_v62 = vand.u32 4294901760, %v12531_v43  ;;  %v15445_v14 = vand.u32 4294901760, %v12340_v30  ;;  %v15447_v51 = vand.u32 4294901760, %v12361_v34  ;;  %v172_v34 = vld [vmem:[#allocation5 + $0x420] sm:$0xff] }
 0x1a2   :  { %9714 = vmatprep.subr.bf16.mxu1 %v12074_v60  ;;  %v15438_v60 = vand.u32 4294901760, %v15408_v39  ;;  %v12573_v50 = vpack.c.bf16 %v15440_v33, %v15439_v54  ;;  %v12579_v18 = vpack.c.bf16 %v15442_v41, %v15441_v13  ;;  %v15443_v39 = vand.u32 4294901760, %v12369_v0  ;;  %v173_v33 = vld [vmem:[#allocation5 + $0x428] sm:$0xff] }
 0x1a3   :  { %9688 = vmatpush3.bf16.msra.mxu0 %v9687_v22  ;;  %v15437_v22 = vand.u32 4294901760, %v12248_v35  ;;  %v14900_v35 = vand.u32 4294901760, %v12524_v8  ;;  %v14898_v21 = vand.u32 4294901760, %v12534_v19  ;;  %v12593_v59 = vpack.c.bf16 %v15446_v5, %v15445_v14 }
 0x1a4   :  { %9690 = vmatprep.subr.bf16.mxu0 %v9689_v25  ;;  %v189_v25 = vld [vmem:[#allocation5 + $0x4a8] sm:$0xff]  ;;  %3549 = vmatmul.mubr.f32.vlgmr.msra.gmra.mrb[20].mxu1 %v15443_v39  ;;  %v15448_v0 = vand.u32 4294901760, %v12366_v61  ;;  %v3887_v30 = vand.u32 4294901760, %v188_v6  ;;  %v4054_v36 = vsub.f32 %v12516_v26, %v14902_v9  ;;  %v12610_v61 = vpack.c.bf16 %v3878_v31, %v3875_v10 }
 0x1a5   :  { %v12567_v16 = vpack.c.bf16 %v15438_v60, %v15437_v22  ;;  %9716 = vmatpush3.bf16.msra.mxu1 %v15399_v12  ;;  %v12601_v60 = vsub.f32 %v186_v45, %v3881_v11  ;;  %3819 = vmatprep.mubr.f32.mxu1 %v15424_v38  ;;  %v12605_v12 = vsub.f32 %v187_v58, %v3884_v37  ;;  %v3890_v54 = vand.u32 4294901760, %v189_v25 }
 0x1a6   :  { %v12599_v22 = vpack.c.bf16 %v15448_v0, %v15447_v51  ;;  %9718 = vmatprep.subr.bf16.mxu1 %v12089_v17  ;;  %v12612_v45 = vpack.c.bf16 %v3830_v44, %v3827_v32  ;;  %v4061_v38 = vsub.f32 %v12524_v8, %v14900_v35  ;;  %v15449_v17 = vld [vmem:[#allocation11_spill] sm:$0xff]  ;;  %v12620_v13 = vpack.c.bf16 %v3884_v37, %v3881_v11  ;;  %v190_v11 = vld [vmem:[#allocation5 + $0x4b0] sm:$0xff]  ;;  %v191_v37 = vld [vmem:[#allocation5 + $0x4b8] sm:$0xff] }
 0x1a7   :  { %9692 = vmatpush3.bf16.msra.mxu0 %v9691_v46  ;;  %v15450_v58 = vsub.s32 1, %v15449_v17  ;;  %v12622_v41 = vpack.c.bf16 %v3836_v56, %v3833_v55  ;;  %v3949_v31 = vsub.f32 %v12534_v19, %v14898_v21  ;;  %v12631_v44 = vsub.f32 %v170_v1, %v3833_v55 }
 0x1a8   :  { %9694 = vmatprep.subr.bf16.mxu0 %v9693_v49  ;;  %v3942_v49 = vsub.f32 %v12531_v43, %v14899_v62  ;;  %v12633_v10 = vsub.f32 %v171_v53, %v3836_v56  ;;  %v3839_v32 = vand.u32 4294901760, %v172_v34  ;;  %v3842_v39 = vand.u32 4294901760, %v173_v33  ;;  %v175_v62 = vld [vmem:[#allocation5 + $0x438] sm:$0xff] }
 0x1a9   :  { %v337_v46 = vrot.slane %v12586_v3, %v15450_v58  ;;  %9720 = vmatpush3.bf16.msra.mxu1 %v12097_v28  ;;  %v12636_v14 = vpack.c.bf16 %v3890_v54, %v3887_v30  ;;  %v4055_v5 = vand.u32 4294901760, %v4054_v36  ;;  %v14901_v51 = vand.u32 4294901760, %v12601_v60 }
 0x1aa   :  { %9722 = vmatprep.subr.bf16.mxu1 %v12108_v7  ;;  %v14905_v0 = vand.u32 4294901760, %v12605_v12  ;;  %v12640_v28 = vsub.f32 %v188_v6, %v3887_v30  ;;  %v12642_v1 = vsub.f32 %v189_v25, %v3890_v54  ;;  %v4062_v53 = vand.u32 4294901760, %v4061_v38  ;;  %v174_v7 = vld [vmem:[#allocation5 + $0x430] sm:$0xff]  ;;  %v192_v25 = vld [vmem:[#allocation5 + $0x4c0] sm:$0xff] }
 0x1ab   :  { %9696 = vmatpush3.bf16.msra.mxu0 %v9695_v15  ;;  %v12644_v55 = vand.u32 4294901760, %v337_v46  ;;  %v3943_v56 = vand.u32 4294901760, %v3942_v49  ;;  %v3950_v58 = vand.u32 4294901760, %v3949_v31  ;;  %v3893_v15 = vand.u32 4294901760, %v190_v11  ;;  %v193_v31 = vld [vmem:[#allocation5 + $0x4c8] sm:$0xff] }
 0x1ac   :  { %9698 = vmatprep.subr.bf16.mxu0 %v9697_v24  ;;  %v3896_v21 = vand.u32 4294901760, %v191_v37  ;;  %v12647_v36 = vpack.c.bf16 %v3842_v39, %v3839_v32  ;;  %v12649_v35 = vsub.f32 %v172_v34, %v3839_v32  ;;  %v14903_v24 = vand.u32 4294901760, %v12631_v44 }
 0x1ad   :  { %15451 = vst [vmem:[#allocation22_spill] sm:$0xff] %v12644_v55  ;;  %9724 = vmatpush3.bf16.msra.mxu1 %v15406_v20  ;;  %v14904_v6 = vand.u32 4294901760, %v12633_v10  ;;  %v12655_v30 = vsub.f32 %v173_v33, %v3842_v39  ;;  %v4068_v54 = vsub.f32 %v12601_v60, %v14901_v51  ;;  %v4075_v20 = vsub.f32 %v12605_v12, %v14905_v0 }
 0x1ae   :  { %15452 = vst [vmem:[#allocation16_spill] sm:$0xff] %v12647_v36  ;;  %15453 = vst [vmem:[#allocation21_spill] sm:$0xff] %v12649_v35  ;;  %9726 = vmatprep.subr.bf16.mxu1 %v15407_v42  ;;  %v12664_v34 = vpack.c.bf16 %v4062_v53, %v4055_v5  ;;  %v3845_v38 = vand.u32 4294901760, %v174_v7  ;;  %v3848_v49 = vand.u32 4294901760, %v175_v62  ;;  %v12669_v33 = vpack.c.bf16 %v3950_v58, %v3943_v56 }
 0x1af   :  { %9700 = vmatpush3.bf16.msra.mxu0 %v12554_v57  ;;  %15454 = vst [vmem:[#allocation24_spill] sm:$0xff] %v12655_v30  ;;  %v12667_v57 = vsub.f32 %v337_v46, %v12644_v55  ;;  %v12671_v32 = vpack.c.bf16 %v3896_v21, %v3893_v15  ;;  %v12673_v39 = vsub.f32 %v190_v11, %v3893_v15  ;;  %v3899_v51 = vand.u32 4294901760, %v192_v25 }
 0x1b0   :  { %9702 = vmatprep.subr.bf16.mxu0 %v12560_v29  ;;  %v3956_v29 = vsub.f32 %v12631_v44, %v14903_v24  ;;  %v3963_v46 = vsub.f32 %v12633_v10, %v14904_v6  ;;  %v14908_v5 = vand.u32 4294901760, %v12640_v28  ;;  %v4069_v11 = vand.u32 4294901760, %v4068_v54 }
 0x1b1   :  { %15455 = vst [vmem:[#allocation25_spill] sm:$0xff] %v12667_v57  ;;  %v7609_v42 = vpop.f32.mrb[8].mxu0  ;;  %15456 = vst [vmem:[#allocation19_spill] sm:$0xff] %v12671_v32  ;;  %9728 = vmatpush3.bf16.msra.mxu1 %v15410_v4  ;;  %v4076_v58 = vand.u32 4294901760, %v4075_v20  ;;  %v3902_v4 = vand.u32 4294901760, %v193_v31  ;;  %v12687_v15 = vsub.f32 %v191_v37, %v3896_v21  ;;  %v14907_v24 = vand.u32 4294901760, %v12649_v35 }
 0x1b2   :  { %v7610_v9 = vpop.f32.mrb[9].mxu0  ;;  %9730 = vmatprep.subr.bf16.mxu1 %v15411_v2  ;;  %v14906_v6 = vand.u32 4294901760, %v12655_v30  ;;  %v14909_v0 = vand.u32 4294901760, %v12667_v57  ;;  %v12697_v2 = vsub.f32 %v175_v62, %v3848_v49  ;;  %v3957_v54 = vand.u32 4294901760, %v3956_v29 }
 0x1b3   :  { %v7611_v56 = vadd.f32 %v7610_v9, %v7609_v42  ;;  %9704 = vmatpush3.bf16.msra.mxu0 %v12567_v16  ;;  %v12693_v9 = vpack.c.bf16 %v3848_v49, %v3845_v38  ;;  %v12695_v16 = vsub.f32 %v174_v7, %v3845_v38  ;;  %v4082_v21 = vsub.f32 %v12640_v28, %v14908_v5  ;;  %v176_v42 = vld [vmem:[#allocation5 + $0x440] sm:$0xff] }
 0x1b4   :  { %9706 = vmatprep.subr.bf16.mxu0 %v12573_v50  ;;  %15459 = vst [vmem:[#allocation14_spill] sm:$0xff] %v12697_v2  ;;  %v3964_v50 = vand.u32 4294901760, %v3963_v46  ;;  %v15460_v37 = vand.u32 4294901760, %v12642_v1  ;;  %v12708_v62 = vpack.c.bf16 %v4076_v58, %v4069_v11  ;;  %v12710_v7 = vpack.c.bf16 %v3902_v4, %v3899_v51  ;;  %v195_v46 = vld [vmem:[#allocation5 + $0x4d8] sm:$0xff] }
 0x1b5   :  { %v1719_v53 = vadd.f32 %v7611_v56, %v12499_v47  ;;  %15457 = vst [vmem:[#allocation13_spill] sm:$0xff] %v12693_v9  ;;  %15458 = vst [vmem:[#allocation20_spill] sm:$0xff] %v12695_v16  ;;  %9732 = vmatpush3.bf16.msra.mxu1 %v15412_v63  ;;  %v177_v47 = vld [vmem:[#allocation5 + $0x448] sm:$0xff]  ;;  %v12712_v63 = vsub.f32 %v192_v25, %v3899_v51  ;;  %v12715_v49 = vsub.f32 %v193_v31, %v3902_v4 }
 0x1b6   :  { %v4089_v20 = vsub.f32 %v12642_v1, %v15460_v37  ;;  %9734 = vmatprep.subr.bf16.mxu1 %v15413_v52  ;;  %15461 = vst [vmem:[#allocation27_spill] sm:$0xff] %v12710_v7  ;;  %v7644_v38 = vpop.f32.mrb[8].mxu1  ;;  %v3970_v29 = vsub.f32 %v12649_v35, %v14907_v24  ;;  %v194_v52 = vld [vmem:[#allocation5 + $0x4d0] sm:$0xff]  ;;  %v3925_v51 = vsub.f32 %v12667_v57, %v14909_v0  ;;  %v3851_v56 = vand.u32 4294901760, %v176_v42  ;;  %v179_v35 = vld [vmem:[#allocation5 + $0x458] sm:$0xff] }
 0x1b7   :  { %9708 = vmatpush3.bf16.msra.mxu0 %v12579_v18  ;;  %v3977_v18 = vsub.f32 %v12655_v30, %v14906_v6  ;;  %v7645_v25 = vpop.f32.mrb[9].mxu1  ;;  %v3854_v11 = vand.u32 4294901760, %v177_v47  ;;  %v12729_v4 = vpack.c.bf16 %v3964_v50, %v3957_v54  ;;  %v4083_v37 = vand.u32 4294901760, %v4082_v21  ;;  %v15462_v24 = vld [vmem:[#allocation29_spill] sm:$0xff] }
 0x1b8   :  { %9710 = vmatprep.subr.bf16.mxu0 %v12593_v59  ;;  %v7646_v58 = vadd.f32 %v7645_v25, %v7644_v38  ;;  %v4090_v6 = vand.u32 4294901760, %v4089_v20  ;;  %v3905_v5 = vand.u32 4294901760, %v194_v52  ;;  %v3908_v0 = vand.u32 4294901760, %v195_v46  ;;  %v178_v30 = vld [vmem:[#allocation5 + $0x450] sm:$0xff] }
 0x1b9   :  { %9736 = vmatpush3.bf16.msra.mxu1 %v12255_v27  ;;  %v14916_v57 = vand.u32 4294901760, %v12695_v16  ;;  %v3971_v27 = vand.u32 4294901760, %v3970_v29  ;;  %v3978_v54 = vand.u32 4294901760, %v3977_v18  ;;  %v3926_v50 = vand.u32 4294901760, %v3925_v51  ;;  %v15466_v59 = vld [vmem:[#allocation28_spill] sm:$0xff] }
 0x1ba   :  { %9738 = vmatprep.subr.bf16.mxu1 %v15462_v24  ;;  %v12735_v31 = vadd.f32 %v7646_v58, %v1719_v53  ;;  %v12738_v21 = vpack.c.bf16 %v3854_v11, %v3851_v56  ;;  %v15464_v24 = vand.u32 4294901760, %v12673_v39  ;;  %v15465_v38 = vand.u32 4294901760, %v12687_v15 }
 0x1bb   :  { %9712 = vmatpush3.bf16.msra.mxu0 %v12599_v22  ;;  %v12740_v22 = vsub.f32 %v176_v42, %v3851_v56  ;;  %v12750_v53 = vpack.c.bf16 %v4090_v6, %v4083_v37  ;;  %v12752_v29 = vsub.f32 %v177_v47, %v3854_v11  ;;  %v3857_v18 = vand.u32 4294901760, %v178_v30  ;;  %v12754_v42 = vld [vmem:[#allocation5 + $0x4e0] sm:$0xff]  ;;  %v12766_v47 = vld [vmem:[#allocation5 + $0x4e8] sm:$0xff] }
 0x1bc   :  { %9746 = vmatprep.subr.bf16.mxu0 %v12610_v61  ;;  %15463 = vst [vmem:[#allocation18_spill] sm:$0xff] %v12738_v21  ;;  %v4096_v20 = vsub.f32 %v12673_v39, %v15464_v24  ;;  %v4103_v25 = vsub.f32 %v12687_v15, %v15465_v38  ;;  %v3860_v51 = vand.u32 4294901760, %v179_v35  ;;  %v12758_v56 = vsub.f32 %v194_v52, %v3905_v5 }
 0x1bd   :  { %9740 = vmatpush3.bf16.msra.mxu1 %v12389_v40  ;;  %v3984_v58 = vsub.f32 %v12695_v16, %v14916_v57  ;;  %v15468_v40 = vand.u32 4294901760, %v12697_v2  ;;  %v12769_v11 = vpack.c.bf16 %v3978_v54, %v3971_v27  ;;  %v12771_v37 = vpack.c.bf16 %v3908_v0, %v3905_v5 }
 0x1be   :  { %3717 = vmatmul.mubr.f32.vlgmr.msra.gmra.mrb[22].mxu0 %v15466_v59  ;;  %9742 = vmatprep.subr.bf16.mxu1 %v12412_v23  ;;  %15467 = vst [vmem:[#allocation23_spill] sm:$0xff] %v12758_v56  ;;  %v12773_v24 = vsub.f32 %v195_v46, %v3908_v0  ;;  %v12775_v23 = vld [vmem:[#allocation5 + $0x460] sm:$0xff]  ;;  %v4097_v52 = vand.u32 4294901760, %v4096_v20  ;;  %v4104_v38 = vand.u32 4294901760, %v4103_v25  ;;  %v14921_v57 = vand.u32 4294901760, %v12754_v42  ;;  %v12786_v46 = vld [vmem:[#allocation5 + $0x468] sm:$0xff] }
 0x1bf   :  { %9748 = vmatpush3.bf16.msra.mxu0 %v12612_v45  ;;  %v3991_v6 = vsub.f32 %v12697_v2, %v15468_v40  ;;  %15469 = vst [vmem:[#allocation26_spill] sm:$0xff] %v12771_v37  ;;  %3927 = vmatprep.mubr.f32.mxu0 %v3926_v50  ;;  %v14922_v16 = vand.u32 4294901760, %v12712_v63  ;;  %v12780_v40 = vpack.c.bf16 %v3860_v51, %v3857_v18  ;;  %v14923_v5 = vand.u32 4294901760, %v12766_v47  ;;  %v12796_v25 = vld [vmem:[#allocation5 + $0x4f0] sm:$0xff]  ;;  %v12836_v20 = vld [vmem:[#allocation5 + $0x478] sm:$0xff] }
 0x1c0   :  { %9750 = vmatprep.subr.bf16.mxu0 %v12620_v13  ;;  %15470 = vst [vmem:[#allocation15_spill] sm:$0xff] %v12773_v24  ;;  %v12782_v2 = vsub.f32 %v178_v30, %v3857_v18  ;;  %v12790_v27 = vsub.f32 %v179_v35, %v3860_v51  ;;  %v3985_v54 = vand.u32 4294901760, %v3984_v58  ;;  %v14929_v30 = vand.u32 4294901760, %v12740_v22  ;;  %v12798_v18 = vld [vmem:[#allocation5 + $0x4f8] sm:$0xff]  ;;  %v12834_v0 = vld [vmem:[#allocation5 + $0x470] sm:$0xff] }
 0x1c1   :  { %9744 = vmatpush3.bf16.msra.mxu1 %v12429_v48  ;;  %v3992_v50 = vand.u32 4294901760, %v3991_v6  ;;  %v14924_v48 = vand.u32 4294901760, %v12775_v23  ;;  %v9789_v35 = vpack.c.bf16 %v4104_v38, %v4097_v52  ;;  %v12806_v51 = vsub.f32 %v12754_v42, %v14921_v57 }
 0x1c2   :  { %9778 = vmatprep.subr.bf16.mxu1 %v12664_v34  ;;  %15471 = vst [vmem:[#allocation17_spill] sm:$0xff] %v12790_v27  ;;  %v4110_v58 = vsub.f32 %v12712_v63, %v14922_v16  ;;  %v3866_v6 = vand.u32 4294901760, %v12786_v46  ;;  %v12816_v34 = vsub.f32 %v12766_v47, %v14923_v5  ;;  %v15474_v38 = vsub.s32 0, %v15449_v17 }
 0x1c3   :  { %9752 = vmatpush3.bf16.msra.mxu0 %v12622_v41  ;;  %v12830_v16 = vsub.f32 %v12775_v23, %v14924_v48 }
 0x1c4   :  { %9754 = vmatprep.subr.bf16.mxu0 %v12636_v14  ;;  %3821 = vmatmul.mubr.f32.vlgmr.msra.gmra.mrb[22].mxu1 %v15466_v59  ;;  %15472 = vst [vmem:[#allocation29_spill] sm:$0xff] %v12816_v34  ;;  %v15473_v59 = vand.u32 4294901760, %v12715_v49  ;;  %v333_v57 = vrot.slane %v12586_v3, %v15474_v38  ;;  %v15476_v38 = vand.u32 4294901760, %v12758_v56  ;;  %v4111_v3 = vand.u32 4294901760, %v4110_v58 }
 0x1c5   :  { %9780 = vmatpush3.bf16.msra.mxu1 %v12669_v33  ;;  %4163 = vmatprep.mubr.f32.mxu1 %v12644_v55  ;;  %v9791_v33 = vpack.c.bf16 %v3992_v50, %v3985_v54  ;;  %v15475_v54 = vand.u32 4294901760, %v12752_v29  ;;  %v12852_v17 = vsub.f32 %v12786_v46, %v3866_v6  ;;  %v15479_v58 = vand.u32 4294901760, %v12796_v25 }
 0x1c6   :  { %v4117_v52 = vsub.f32 %v12715_v49, %v15473_v59  ;;  %9782 = vmatprep.subr.bf16.mxu1 %v12708_v62  ;;  %v3998_v62 = vsub.f32 %v12740_v22, %v14929_v30  ;;  %v4124_v48 = vsub.f32 %v12758_v56, %v15476_v38  ;;  %v15477_v59 = vand.u32 4294901760, %v12773_v24 }
 0x1c7   :  { %9756 = vmatpush3.bf16.msra.mxu0 %v12647_v36  ;;  %v4005_v50 = vsub.f32 %v12752_v29, %v15475_v54  ;;  %v12859_v36 = vand.u32 4294901760, %v333_v57  ;;  %v15491_v56 = vand.u32 4294901760, %v12830_v16 }
 0x1c8   :  { %9758 = vmatprep.subr.bf16.mxu0 %v12671_v32  ;;  %v4131_v5 = vsub.f32 %v12773_v24, %v15477_v59  ;;  %v4118_v46 = vand.u32 4294901760, %v4117_v52  ;;  %v12867_v59 = vsub.f32 %v12796_v25, %v15479_v58  ;;  %v3999_v38 = vand.u32 4294901760, %v3998_v62 }
 0x1c9   :  { %9784 = vmatpush3.bf16.msra.mxu1 %v12729_v4  ;;  %15478 = vst [vmem:[#allocation28_spill] sm:$0xff] %v12859_v36  ;;  %v15480_v4 = vand.u32 4294901760, %v12798_v18  ;;  %v4006_v30 = vand.u32 4294901760, %v4005_v50  ;;  %v4125_v55 = vand.u32 4294901760, %v4124_v48  ;;  %v15482_v58 = vand.u32 4294901760, %v12790_v27 }
 0x1ca   :  { %9786 = vmatprep.subr.bf16.mxu1 %v12750_v53  ;;  %v15481_v53 = vand.u32 4294901760, %v12782_v2  ;;  %v15483_v32 = vand.u32 4294901760, %v12834_v0  ;;  %v12896_v50 = vsub.f32 %v333_v57, %v12859_v36  ;;  %v15487_v57 = vand.u32 4294901760, %v12754_v42 }
 0x1cb   :  { %9760 = vmatpush3.bf16.msra.mxu0 %v12693_v9  ;;  %v12872_v54 = vsub.f32 %v12798_v18, %v15480_v4  ;;  %v4132_v9 = vand.u32 4294901760, %v4131_v5  ;;  %v4019_v24 = vsub.f32 %v12790_v27, %v15482_v58  ;;  %v15484_v5 = vand.u32 4294901760, %v12836_v20 }
 0x1cc   :  { %9762 = vmatprep.subr.bf16.mxu0 %v12710_v7  ;;  %v4012_v52 = vsub.f32 %v12782_v2, %v15481_v53  ;;  %v12888_v62 = vsub.f32 %v12834_v0, %v15483_v32  ;;  %v15485_v53 = vand.u32 4294901760, %v12806_v51  ;;  %v15486_v4 = vand.u32 4294901760, %v12816_v34 }
 0x1cd   :  { %9788 = vmatpush3.bf16.msra.mxu1 %v12769_v11  ;;  %v12893_v48 = vsub.f32 %v12836_v20, %v15484_v5  ;;  %v9793_v11 = vpack.c.bf16 %v4118_v46, %v4111_v3  ;;  %v15488_v7 = vand.u32 4294901760, %v12766_v47  ;;  %v9795_v3 = vpack.c.bf16 %v4006_v30, %v3999_v38 }
 0x1ce   :  { %v4138_v58 = vsub.f32 %v12806_v51, %v15485_v53  ;;  %9790 = vmatprep.subr.bf16.mxu1 %v9789_v35  ;;  %v4145_v32 = vsub.f32 %v12816_v34, %v15486_v4  ;;  %v15490_v53 = vand.u32 4294901760, %v12775_v23  ;;  %v9797_v46 = vpack.c.bf16 %v4132_v9, %v4125_v55 }
 0x1cf   :  { %9764 = vmatpush3.bf16.msra.mxu0 %v12738_v21  ;;  %v12912_v27 = vpack.c.bf16 %v15488_v7, %v15487_v57  ;;  %v4013_v4 = vand.u32 4294901760, %v4012_v52  ;;  %v4020_v34 = vand.u32 4294901760, %v4019_v24  ;;  %v4026_v5 = vsub.f32 %v12830_v16, %v15491_v56 }
 0x1d0   :  { %9766 = vmatprep.subr.bf16.mxu0 %v12771_v37  ;;  %v12916_v35 = vpack.c.bf16 %v3866_v6, %v15490_v53  ;;  %v15492_v37 = vand.u32 4294901760, %v12852_v17  ;;  %v14952_v7 = vand.u32 4294901760, %v12896_v50  ;;  %v4139_v23 = vand.u32 4294901760, %v4138_v58 }
 0x1d1   :  { %15489 = vst [vmem:[#allocation30_spill] sm:$0xff] %v12912_v27  ;;  %v7679_v21 = vpop.f32.mrb[10].mxu0  ;;  %9792 = vmatpush3.bf16.msra.mxu1 %v9791_v33  ;;  %v14951_v6 = vand.u32 4294901760, %v12888_v62  ;;  %v14950_v55 = vand.u32 4294901760, %v12893_v48  ;;  %v4146_v24 = vand.u32 4294901760, %v4145_v32  ;;  %v15493_v56 = vand.u32 4294901760, %v12867_v59 }
 0x1d2   :  { %v4033_v42 = vsub.f32 %v12852_v17, %v15492_v37  ;;  %v7680_v47 = vpop.f32.mrb[11].mxu0  ;;  %9794 = vmatprep.subr.bf16.mxu1 %v9793_v11  ;;  %v15494_v37 = vand.u32 4294901760, %v12872_v54  ;;  %v15495_v38 = vand.u32 4294901760, %v12796_v25  ;;  %v15496_v52 = vand.u32 4294901760, %v12798_v18 }
 0x1d3   :  { %v7681_v9 = vadd.f32 %v7680_v47, %v7679_v21  ;;  %9768 = vmatpush3.bf16.msra.mxu0 %v12780_v40  ;;  %v4152_v30 = vsub.f32 %v12867_v59, %v15493_v56  ;;  %v4027_v11 = vand.u32 4294901760, %v4026_v5  ;;  %v9799_v57 = vpack.c.bf16 %v4020_v34, %v4013_v4 }
 0x1d4   :  { %v4159_v33 = vsub.f32 %v12872_v54, %v15494_v37  ;;  %9770 = vmatprep.subr.bf16.mxu0 %v12912_v27  ;;  %v12939_v58 = vpack.c.bf16 %v15496_v52, %v15495_v38  ;;  %v4034_v32 = vand.u32 4294901760, %v4033_v42  ;;  %v3931_v53 = vsub.f32 %v12896_v50, %v14952_v7 }
 0x1d5   :  { %v1995_v21 = vadd.f32 %v7681_v9, %v12735_v31  ;;  %9796 = vmatpush3.bf16.msra.mxu1 %v9795_v3  ;;  %v4040_v47 = vsub.f32 %v12888_v62, %v14951_v6  ;;  %v4047_v25 = vsub.f32 %v12893_v48, %v14950_v55  ;;  %v15497_v31 = vand.u32 4294901760, %v12834_v0  ;;  %v13013_v6 = vld [vmem:[#allocation5 + $0x588] sm:$0xff] }
 0x1d6   :  { %9798 = vmatprep.subr.bf16.mxu1 %v9797_v46  ;;  %v15498_v18 = vand.u32 4294901760, %v12836_v20  ;;  %v9801_v5 = vpack.c.bf16 %v4146_v24, %v4139_v23  ;;  %v4153_v3 = vand.u32 4294901760, %v4152_v30  ;;  %v4160_v4 = vand.u32 4294901760, %v4159_v33  ;;  %v7714_v42 = vpop.f32.mrb[10].mxu1 }
 0x1d7   :  { %9772 = vmatpush3.bf16.msra.mxu0 %v12916_v35  ;;  %v9809_v9 = vpack.c.bf16 %v12524_v8, %v12516_v26  ;;  %v7715_v56 = vpop.f32.mrb[11].mxu1  ;;  %v9803_v37 = vpack.c.bf16 %v4034_v32, %v4027_v11  ;;  %v3932_v46 = vand.u32 4294901760, %v3931_v53  ;;  %v4041_v52 = vand.u32 4294901760, %v4040_v47  ;;  %v15501_v53 = vld [vmem:[#allocation24_spill] sm:$0xff] }
 0x1d8   :  { %v12956_v34 = vpack.c.bf16 %v15498_v18, %v15497_v31  ;;  %9774 = vmatprep.subr.bf16.mxu0 %v12939_v58  ;;  %v7716_v38 = vadd.f32 %v7715_v56, %v7714_v42  ;;  %v4048_v0 = vand.u32 4294901760, %v4047_v25  ;;  %v9811_v20 = vpack.c.bf16 %v12534_v19, %v12531_v43  ;;  %v15503_v18 = vld [vmem:[#allocation20_spill] sm:$0xff]  ;;  %v15506_v56 = vld [vmem:[#allocation15_spill] sm:$0xff] }
 0x1d9   :  { %9800 = vmatpush3.bf16.msra.mxu1 %v9799_v57  ;;  %v9805_v23 = vpack.c.bf16 %v4160_v4, %v4153_v3  ;;  %v9813_v30 = vpack.c.bf16 %v12605_v12, %v12601_v60  ;;  %v9815_v11 = vpack.c.bf16 %v12633_v10, %v12631_v44  ;;  %v9817_v32 = vpack.c.bf16 %v12642_v1, %v12640_v28  ;;  %v15499_v57 = vld [vmem:[#allocation25_spill] sm:$0xff] }
 0x1da   :  { %9802 = vmatprep.subr.bf16.mxu1 %v9801_v5  ;;  %v2099_v24 = vadd.f32 %v7716_v38, %v1995_v21  ;;  %v9807_v33 = vpack.c.bf16 %v4048_v0, %v4041_v52  ;;  %v15500_v21 = vld [vmem:[#allocation21_spill] sm:$0xff]  ;;  %v9821_v25 = vpack.c.bf16 %v12687_v15, %v12673_v39  ;;  %v15502_v31 = vand.u32 4294901760, %v15499_v57  ;;  %v15504_v5 = vld [vmem:[#allocation14_spill] sm:$0xff]  ;;  %v15507_v38 = vld [vmem:[#allocation16_spill] sm:$0xff] }
 0x1db   :  { %9776 = vmatpush3.bf16.msra.mxu0 %v12956_v34  ;;  %v9819_v47 = vpack.c.bf16 %v15501_v53, %v15500_v21  ;;  %v9823_v3 = vpack.c.bf16 %v15504_v5, %v15503_v18  ;;  %v9825_v4 = vpack.c.bf16 %v12715_v49, %v12712_v63  ;;  %v9827_v42 = vpack.c.bf16 %v12752_v29, %v12740_v22  ;;  %v15509_v52 = vld [vmem:[#allocation17_spill] sm:$0xff] }
 0x1dc   :  { %9810 = vmatprep.subr.bf16.mxu0 %v9809_v9  ;;  %v15505_v9 = vld [vmem:[#allocation23_spill] sm:$0xff]  ;;  %v9831_v0 = vpack.c.bf16 %v15509_v52, %v12782_v2 }
 0x1dd   :  { %9804 = vmatpush3.bf16.msra.mxu1 %v9803_v37  ;;  %v9829_v37 = vpack.c.bf16 %v15506_v56, %v15505_v9 }
 0x1de   :  { %3933 = vmatmul.mubr.f32.vlgmr.msra.gmra.mrb[24].mxu0 %v3932_v46  ;;  %9806 = vmatprep.subr.bf16.mxu1 %v9805_v23  ;;  %v15508_v46 = vld [vmem:[#allocation19_spill] sm:$0xff] }
 0x1df   :  { %9812 = vmatpush3.bf16.msra.mxu0 %v9811_v20  ;;  %4300 = vmatprep.mubr.f32.mxu0 %v15499_v57  ;;  %v15510_v20 = vld [vmem:[#allocation29_spill] sm:$0xff]  ;;  %v15512_v57 = vld [vmem:[#allocation27_spill] sm:$0xff] }
 0x1e0   :  { %9814 = vmatprep.subr.bf16.mxu0 %v9813_v30  ;;  %v9833_v23 = vpack.c.bf16 %v15510_v20, %v12806_v51 }
 0x1e1   :  { %9808 = vmatpush3.bf16.msra.mxu1 %v9807_v33 }
 0x1e2   :  { %9842 = vmatprep.subr.bf16.mxu1 %v12610_v61 }
 0x1e3   :  { %9816 = vmatpush3.bf16.msra.mxu0 %v9815_v11  ;;  %v15511_v11 = vld [vmem:[#allocation13_spill] sm:$0xff] }
 0x1e4   :  { %9818 = vmatprep.subr.bf16.mxu0 %v9817_v32  ;;  %4165 = vmatmul.mubr.f32.vlgmr.msra.gmra.mrb[24].mxu1 %v12859_v36  ;;  %v4740_v36 = vand.u32 4294901760, %v13013_v6 }
 0x1e5   :  { %9844 = vmatpush3.bf16.msra.mxu1 %v12612_v45  ;;  %4407 = vmatprep.mubr.f32.mxu1 %v15502_v31 }
 0x1e6   :  { %9846 = vmatprep.subr.bf16.mxu1 %v12620_v13 }
 0x1e7   :  { %9820 = vmatpush3.bf16.msra.mxu0 %v9819_v47  ;;  %v9835_v47 = vpack.c.bf16 %v12852_v17, %v12830_v16 }
 0x1e8   :  { %9822 = vmatprep.subr.bf16.mxu0 %v9821_v25  ;;  %v9837_v25 = vpack.c.bf16 %v12872_v54, %v12867_v59 }
 0x1e9   :  { %9848 = vmatpush3.bf16.msra.mxu1 %v12622_v41 }
 0x1ea   :  { %9850 = vmatprep.subr.bf16.mxu1 %v12636_v14 }
 0x1eb   :  { %9824 = vmatpush3.bf16.msra.mxu0 %v9823_v3  ;;  %v15513_v3 = vld [vmem:[#allocation18_spill] sm:$0xff] }
 0x1ec   :  { %9826 = vmatprep.subr.bf16.mxu0 %v9825_v4  ;;  %v15514_v4 = vld [vmem:[#allocation26_spill] sm:$0xff] }
 0x1ed   :  { %9852 = vmatpush3.bf16.msra.mxu1 %v15507_v38 }
 0x1ee   :  { %9854 = vmatprep.subr.bf16.mxu1 %v15508_v46 }
 0x1ef   :  { %9828 = vmatpush3.bf16.msra.mxu0 %v9827_v42  ;;  %v9839_v42 = vpack.c.bf16 %v12893_v48, %v12888_v62 }
 0x1f0   :  { %9830 = vmatprep.subr.bf16.mxu0 %v9829_v37 }
 0x1f1   :  { %v7749_v30 = vpop.f32.mrb[12].mxu0  ;;  %9856 = vmatpush3.bf16.msra.mxu1 %v15511_v11 }
 0x1f2   :  { %v7750_v33 = vpop.f32.mrb[13].mxu0  ;;  %9858 = vmatprep.subr.bf16.mxu1 %v15512_v57 }
 0x1f3   :  { %v7751_v32 = vadd.f32 %v7750_v33, %v7749_v30  ;;  %9832 = vmatpush3.bf16.msra.mxu0 %v9831_v0  ;;  %v15515_v0 = vand.u32 4294901760, %v12516_v26  ;;  %v15516_v30 = vand.u32 4294901760, %v12524_v8  ;;  %v15517_v26 = vand.u32 4294901760, %v12531_v43 }
 0x1f4   :  { %9834 = vmatprep.subr.bf16.mxu0 %v9833_v23  ;;  %v13011_v23 = vld [vmem:[#allocation5 + $0x580] sm:$0xff]  ;;  %v15518_v8 = vand.u32 4294901760, %v12534_v19  ;;  %v15521_v43 = vand.u32 4294901760, %v12631_v44  ;;  %v15522_v19 = vand.u32 4294901760, %v12633_v10  ;;  %v15526_v44 = vand.u32 4294901760, %v15500_v21 }
 0x1f5   :  { %v2211_v31 = vadd.f32 %v7751_v32, %v2099_v24  ;;  %9860 = vmatpush3.bf16.msra.mxu1 %v15513_v3  ;;  %v9873_v33 = vpack.c.bf16 %v15516_v30, %v15515_v0  ;;  %v13016_v32 = vld [vmem:[#allocation5 + $0x500] sm:$0xff]  ;;  %v4737_v0 = vand.u32 4294901760, %v13011_v23  ;;  %v15527_v10 = vand.u32 4294901760, %v15501_v53 }
 0x1f6   :  { %9862 = vmatprep.subr.bf16.mxu1 %v15514_v4  ;;  %v7784_v37 = vpop.f32.mrb[12].mxu1  ;;  %v15531_v21 = vand.u32 4294901760, %v15504_v5  ;;  %v15532_v53 = vand.u32 4294901760, %v12712_v63  ;;  %v15537_v5 = vand.u32 4294901760, %v15506_v56  ;;  %v15543_v56 = vand.u32 4294901760, %v12852_v17 }
 0x1f7   :  { %9836 = vmatpush3.bf16.msra.mxu0 %v9835_v47  ;;  %v7785_v55 = vpop.f32.mrb[13].mxu1  ;;  %v13018_v47 = vld [vmem:[#allocation5 + $0x508] sm:$0xff]  ;;  %v15546_v17 = vand.u32 4294901760, %v12872_v54 }
 0x1f8   :  { %9838 = vmatprep.subr.bf16.mxu0 %v9837_v25  ;;  %v7786_v24 = vadd.f32 %v7785_v55, %v7784_v37  ;;  %v9875_v25 = vpack.c.bf16 %v15518_v8, %v15517_v26  ;;  %v15519_v55 = vand.u32 4294901760, %v12601_v60  ;;  %v15520_v37 = vand.u32 4294901760, %v12605_v12  ;;  %v15525_v8 = vld [vmem:[#allocation22_spill] sm:$0xff] }
 0x1f9   :  { %9864 = vmatpush3.bf16.msra.mxu1 %v12780_v40  ;;  %v9879_v60 = vpack.c.bf16 %v15522_v19, %v15521_v43  ;;  %v13043_v12 = vsub.f32 %v13011_v23, %v4737_v0  ;;  %v15530_v43 = vand.u32 4294901760, %v15503_v18  ;;  %v15536_v18 = vand.u32 4294901760, %v15505_v9 }
 0x1fa   :  { %9866 = vmatprep.subr.bf16.mxu1 %v12912_v27  ;;  %v13026_v30 = vadd.f32 %v7786_v24, %v2211_v31  ;;  %v9877_v7 = vpack.c.bf16 %v15520_v37, %v15519_v55  ;;  %v4692_v27 = vand.u32 4294901760, %v13018_v47  ;;  %v218_v31 = vld [vmem:[#allocation5 + $0x590] sm:$0xff]  ;;  %v15524_v24 = vand.u32 4294901760, %v12642_v1  ;;  %v219_v55 = vld [vmem:[#allocation5 + $0x598] sm:$0xff] }
 0x1fb   :  { %9840 = vmatpush3.bf16.msra.mxu0 %v9839_v42  ;;  %v4689_v42 = vand.u32 4294901760, %v13016_v32  ;;  %v9883_v37 = vpack.c.bf16 %v15527_v10, %v15526_v44  ;;  %v15529_v1 = vand.u32 4294901760, %v12687_v15  ;;  %v9887_v19 = vpack.c.bf16 %v15531_v21, %v15530_v43  ;;  %v203_v44 = vld [vmem:[#allocation5 + $0x518] sm:$0xff] }
 0x1fc   :  { %9874 = vmatprep.subr.bf16.mxu0 %v9873_v33  ;;  %v15523_v33 = vand.u32 4294901760, %v12640_v28  ;;  %v15528_v28 = vand.u32 4294901760, %v12673_v39  ;;  %v15534_v39 = vand.u32 4294901760, %v12740_v22  ;;  %v15535_v15 = vand.u32 4294901760, %v12752_v29 }
 0x1fd   :  { %9868 = vmatpush3.bf16.msra.mxu1 %v12916_v35  ;;  %v13058_v23 = vsub.f32 %v13016_v32, %v4689_v42  ;;  %v15533_v32 = vand.u32 4294901760, %v12715_v49  ;;  %v13087_v63 = vpack.c.bf16 %v15537_v5, %v15536_v18  ;;  %v4746_v49 = vand.u32 4294901760, %v219_v55 }
 0x1fe   :  { %4303 = vmatmul.mubr.f32.vlgmr.msra.gmra.mrb[26].mxu0 %v12896_v50  ;;  %9870 = vmatprep.subr.bf16.mxu1 %v12939_v58  ;;  %v9881_v26 = vpack.c.bf16 %v15524_v24, %v15523_v33  ;;  %v4743_v24 = vand.u32 4294901760, %v218_v31  ;;  %v13081_v10 = vpack.c.bf16 %v15535_v15, %v15534_v39  ;;  %v15540_v22 = vand.u32 4294901760, %v12806_v51 }
 0x1ff   :  { %9876 = vmatpush3.bf16.msra.mxu0 %v9875_v25  ;;  %4577 = vmatprep.mubr.f32.mxu0 %v15525_v8  ;;  %v13051_v25 = vsub.f32 %v13013_v6, %v4740_v36  ;;  %v9885_v6 = vpack.c.bf16 %v15529_v1, %v15528_v28  ;;  %v9889_v33 = vpack.c.bf16 %v15533_v32, %v15532_v53  ;;  %v14963_v28 = vand.u32 4294901760, %v13043_v12  ;;  %v220_v53 = vld [vmem:[#allocation5 + $0x5a0] sm:$0xff] }
 0x200   :  { %9878 = vmatprep.subr.bf16.mxu0 %v9877_v7  ;;  %v13061_v7 = vsub.f32 %v13018_v47, %v4692_v27  ;;  %v202_v47 = vld [vmem:[#allocation5 + $0x510] sm:$0xff]  ;;  %v15541_v29 = vand.u32 4294901760, %v15510_v20  ;;  %v15542_v9 = vand.u32 4294901760, %v12830_v16  ;;  %v4698_v39 = vand.u32 4294901760, %v203_v44 }
 0x201   :  { %9872 = vmatpush3.bf16.msra.mxu1 %v12956_v34  ;;  %v4695_v32 = vand.u32 4294901760, %v202_v47  ;;  %v14957_v51 = vand.u32 4294901760, %v13058_v23  ;;  %v15545_v16 = vand.u32 4294901760, %v12867_v59  ;;  %v15547_v18 = vand.u32 4294901760, %v12888_v62  ;;  %v204_v62 = vld [vmem:[#allocation5 + $0x520] sm:$0xff] }
 0x202   :  { %9906 = vmatprep.subr.bf16.mxu1 %v12610_v61  ;;  %v15539_v61 = vand.u32 4294901760, %v15509_v52  ;;  %v13100_v43 = vpack.c.bf16 %v15541_v29, %v15540_v22  ;;  %v13106_v21 = vpack.c.bf16 %v15543_v56, %v15542_v9  ;;  %v15544_v52 = vand.u32 4294901760, %v12896_v50  ;;  %v205_v22 = vld [vmem:[#allocation5 + $0x528] sm:$0xff] }
 0x203   :  { %9880 = vmatpush3.bf16.msra.mxu0 %v9879_v60  ;;  %v15538_v60 = vand.u32 4294901760, %v12782_v2  ;;  %v14959_v2 = vand.u32 4294901760, %v13051_v25  ;;  %v14956_v20 = vand.u32 4294901760, %v13061_v7  ;;  %v13118_v15 = vpack.c.bf16 %v15546_v17, %v15545_v16 }
 0x204   :  { %9882 = vmatprep.subr.bf16.mxu0 %v9881_v26  ;;  %v221_v26 = vld [vmem:[#allocation5 + $0x5a8] sm:$0xff]  ;;  %4411 = vmatmul.mubr.f32.vlgmr.msra.gmra.mrb[26].mxu1 %v15544_v52  ;;  %v15548_v5 = vand.u32 4294901760, %v12893_v48  ;;  %v4749_v59 = vand.u32 4294901760, %v220_v53  ;;  %v4916_v54 = vsub.f32 %v13043_v12, %v14963_v28  ;;  %v13135_v48 = vpack.c.bf16 %v4740_v36, %v4737_v0 }
 0x205   :  { %v13094_v1 = vpack.c.bf16 %v15539_v61, %v15538_v60  ;;  %9908 = vmatpush3.bf16.msra.mxu1 %v12612_v45  ;;  %v13126_v60 = vsub.f32 %v218_v31, %v4743_v24  ;;  %4681 = vmatprep.mubr.f32.mxu1 %v15525_v8  ;;  %v13130_v45 = vsub.f32 %v219_v55, %v4746_v49  ;;  %v4752_v61 = vand.u32 4294901760, %v221_v26 }
 0x206   :  { %v13124_v50 = vpack.c.bf16 %v15548_v5, %v15547_v18  ;;  %9910 = vmatprep.subr.bf16.mxu1 %v12620_v13  ;;  %v13137_v31 = vpack.c.bf16 %v4692_v27, %v4689_v42  ;;  %v4923_v8 = vsub.f32 %v13051_v25, %v14959_v2  ;;  %v15549_v13 = vld [vmem:[#allocation11_spill] sm:$0xff]  ;;  %v13145_v9 = vpack.c.bf16 %v4746_v49, %v4743_v24  ;;  %v222_v24 = vld [vmem:[#allocation5 + $0x5b0] sm:$0xff]  ;;  %v223_v49 = vld [vmem:[#allocation5 + $0x5b8] sm:$0xff] }
 0x207   :  { %9884 = vmatpush3.bf16.msra.mxu0 %v9883_v37  ;;  %v15550_v55 = vsub.s32 3, %v15549_v13  ;;  %v15551_v37 = vld [vmem:[#allocation12_spill] sm:$0xff]  ;;  %v13147_v56 = vpack.c.bf16 %v4698_v39, %v4695_v32  ;;  %v4811_v36 = vsub.f32 %v13061_v7, %v14956_v20  ;;  %v13156_v27 = vsub.f32 %v202_v47, %v4695_v32  ;;  %v207_v20 = vld [vmem:[#allocation5 + $0x538] sm:$0xff] }
 0x208   :  { %9886 = vmatprep.subr.bf16.mxu0 %v9885_v6  ;;  %v4804_v6 = vsub.f32 %v13058_v23, %v14957_v51  ;;  %v13158_v0 = vsub.f32 %v203_v44, %v4698_v39  ;;  %v4701_v42 = vand.u32 4294901760, %v204_v62  ;;  %v4704_v52 = vand.u32 4294901760, %v205_v22 }
 0x209   :  { %v345_v29 = vrot.slane %v15551_v37, %v15550_v55  ;;  %9912 = vmatpush3.bf16.msra.mxu1 %v12622_v41  ;;  %v13161_v16 = vpack.c.bf16 %v4752_v61, %v4749_v59  ;;  %v4917_v17 = vand.u32 4294901760, %v4916_v54  ;;  %v14958_v18 = vand.u32 4294901760, %v13126_v60 }
 0x20a   :  { %9914 = vmatprep.subr.bf16.mxu1 %v12636_v14  ;;  %v14962_v5 = vand.u32 4294901760, %v13130_v45  ;;  %v13165_v41 = vsub.f32 %v220_v53, %v4749_v59  ;;  %v13167_v47 = vsub.f32 %v221_v26, %v4752_v61  ;;  %v4924_v44 = vand.u32 4294901760, %v4923_v8  ;;  %v206_v14 = vld [vmem:[#allocation5 + $0x530] sm:$0xff]  ;;  %v224_v26 = vld [vmem:[#allocation5 + $0x5c0] sm:$0xff] }
 0x20b   :  { %9888 = vmatpush3.bf16.msra.mxu0 %v9887_v19  ;;  %v13169_v32 = vand.u32 4294901760, %v345_v29  ;;  %v4805_v39 = vand.u32 4294901760, %v4804_v6  ;;  %v4812_v55 = vand.u32 4294901760, %v4811_v36  ;;  %v4755_v19 = vand.u32 4294901760, %v222_v24  ;;  %v225_v36 = vld [vmem:[#allocation5 + $0x5c8] sm:$0xff] }
 0x20c   :  { %9890 = vmatprep.subr.bf16.mxu0 %v9889_v33  ;;  %v4758_v37 = vand.u32 4294901760, %v223_v49  ;;  %v13172_v54 = vpack.c.bf16 %v4704_v52, %v4701_v42  ;;  %v13174_v51 = vsub.f32 %v204_v62, %v4701_v42  ;;  %v14960_v33 = vand.u32 4294901760, %v13156_v27 }
 0x20d   :  { %15552 = vst [vmem:[#allocation25_spill] sm:$0xff] %v13169_v32  ;;  %9916 = vmatpush3.bf16.msra.mxu1 %v15507_v38  ;;  %v14961_v53 = vand.u32 4294901760, %v13158_v0  ;;  %v13180_v59 = vsub.f32 %v205_v22, %v4704_v52  ;;  %v4930_v61 = vsub.f32 %v13126_v60, %v14958_v18  ;;  %v4937_v38 = vsub.f32 %v13130_v45, %v14962_v5 }
 0x20e   :  { %15553 = vst [vmem:[#allocation21_spill] sm:$0xff] %v13172_v54  ;;  %15554 = vst [vmem:[#allocation24_spill] sm:$0xff] %v13174_v51  ;;  %9918 = vmatprep.subr.bf16.mxu1 %v15508_v46  ;;  %v13189_v62 = vpack.c.bf16 %v4924_v44, %v4917_v17  ;;  %v4707_v8 = vand.u32 4294901760, %v206_v14  ;;  %v4710_v6 = vand.u32 4294901760, %v207_v20  ;;  %v13194_v22 = vpack.c.bf16 %v4812_v55, %v4805_v39 }
 0x20f   :  { %9892 = vmatpush3.bf16.msra.mxu0 %v13081_v10  ;;  %15555 = vst [vmem:[#allocation20_spill] sm:$0xff] %v13180_v59  ;;  %v13192_v10 = vsub.f32 %v345_v29, %v13169_v32  ;;  %v13196_v42 = vpack.c.bf16 %v4758_v37, %v4755_v19  ;;  %v13198_v52 = vsub.f32 %v222_v24, %v4755_v19  ;;  %v4761_v18 = vand.u32 4294901760, %v224_v26 }
 0x210   :  { %9894 = vmatprep.subr.bf16.mxu0 %v13087_v63  ;;  %v4818_v63 = vsub.f32 %v13156_v27, %v14960_v33  ;;  %v4825_v29 = vsub.f32 %v13158_v0, %v14961_v53  ;;  %v14967_v17 = vand.u32 4294901760, %v13165_v41  ;;  %v14966_v44 = vand.u32 4294901760, %v13167_v47 }
 0x211   :  { %v7819_v46 = vpop.f32.mrb[14].mxu0  ;;  %15556 = vst [vmem:[#allocation14_spill] sm:$0xff] %v13196_v42  ;;  %9920 = vmatpush3.bf16.msra.mxu1 %v15511_v11  ;;  %v4931_v24 = vand.u32 4294901760, %v4930_v61  ;;  %v4938_v55 = vand.u32 4294901760, %v4937_v38  ;;  %v4764_v11 = vand.u32 4294901760, %v225_v36  ;;  %v13212_v19 = vsub.f32 %v223_v49, %v4758_v37  ;;  %v208_v38 = vld [vmem:[#allocation5 + $0x540] sm:$0xff] }
 0x212   :  { %v7820_v2 = vpop.f32.mrb[15].mxu0  ;;  %9922 = vmatprep.subr.bf16.mxu1 %v15512_v57  ;;  %v14965_v33 = vand.u32 4294901760, %v13174_v51  ;;  %v14964_v53 = vand.u32 4294901760, %v13180_v59  ;;  %v14968_v5 = vand.u32 4294901760, %v13192_v10  ;;  %v13222_v57 = vsub.f32 %v207_v20, %v4710_v6 }
 0x213   :  { %v7821_v39 = vadd.f32 %v7820_v2, %v7819_v46  ;;  %9896 = vmatpush3.bf16.msra.mxu0 %v13094_v1  ;;  %v13218_v2 = vpack.c.bf16 %v4710_v6, %v4707_v8  ;;  %v13220_v1 = vsub.f32 %v206_v14, %v4707_v8  ;;  %v4819_v61 = vand.u32 4294901760, %v4818_v63  ;;  %v227_v63 = vld [vmem:[#allocation5 + $0x5d8] sm:$0xff] }
 0x214   :  { %9898 = vmatprep.subr.bf16.mxu0 %v13100_v43  ;;  %15559 = vst [vmem:[#allocation16_spill] sm:$0xff] %v13222_v57  ;;  %v4826_v43 = vand.u32 4294901760, %v4825_v29  ;;  %v4944_v49 = vsub.f32 %v13165_v41, %v14967_v17  ;;  %v4951_v37 = vsub.f32 %v13167_v47, %v14966_v44  ;;  %v13233_v20 = vpack.c.bf16 %v4938_v55, %v4931_v24 }
 0x215   :  { %v2581_v28 = vadd.f32 %v7821_v39, %v13026_v30  ;;  %15557 = vst [vmem:[#allocation23_spill] sm:$0xff] %v13218_v2  ;;  %15558 = vst [vmem:[#allocation15_spill] sm:$0xff] %v13220_v1  ;;  %9924 = vmatpush3.bf16.msra.mxu1 %v15513_v3  ;;  %v209_v30 = vld [vmem:[#allocation5 + $0x548] sm:$0xff]  ;;  %v13235_v14 = vpack.c.bf16 %v4764_v11, %v4761_v18  ;;  %v13237_v3 = vsub.f32 %v224_v26, %v4761_v18 }
 0x216   :  { %9926 = vmatprep.subr.bf16.mxu1 %v15514_v4  ;;  %v13240_v6 = vsub.f32 %v225_v36, %v4764_v11  ;;  %v4832_v46 = vsub.f32 %v13174_v51, %v14965_v33  ;;  %v226_v4 = vld [vmem:[#allocation5 + $0x5d0] sm:$0xff]  ;;  %v4787_v18 = vsub.f32 %v13192_v10, %v14968_v5  ;;  %v4713_v29 = vand.u32 4294901760, %v208_v38  ;;  %v15561_v33 = vld [vmem:[#allocation30_spill] sm:$0xff] }
 0x217   :  { %9900 = vmatpush3.bf16.msra.mxu0 %v13106_v21  ;;  %15560 = vst [vmem:[#allocation19_spill] sm:$0xff] %v13235_v14  ;;  %v7854_v8 = vpop.f32.mrb[14].mxu1  ;;  %v4839_v21 = vsub.f32 %v13180_v59, %v14964_v53  ;;  %v4716_v39 = vand.u32 4294901760, %v209_v30  ;;  %v13254_v55 = vpack.c.bf16 %v4826_v43, %v4819_v61  ;;  %v4945_v11 = vand.u32 4294901760, %v4944_v49  ;;  %v210_v5 = vld [vmem:[#allocation5 + $0x550] sm:$0xff]  ;;  %v211_v59 = vld [vmem:[#allocation5 + $0x558] sm:$0xff] }
 0x218   :  { %9902 = vmatprep.subr.bf16.mxu0 %v13118_v15  ;;  %v7855_v26 = vpop.f32.mrb[15].mxu1  ;;  %v4952_v53 = vand.u32 4294901760, %v4951_v37  ;;  %v4767_v44 = vand.u32 4294901760, %v226_v4  ;;  %v4770_v17 = vand.u32 4294901760, %v227_v63  ;;  %v14973_v51 = vand.u32 4294901760, %v13220_v1  ;;  %v15565_v15 = vld [vmem:[#allocation28_spill] sm:$0xff] }
 0x219   :  { %v7856_v24 = vadd.f32 %v7855_v26, %v7854_v8  ;;  %9928 = vmatpush3.bf16.msra.mxu1 %v12780_v40  ;;  %v4833_v40 = vand.u32 4294901760, %v4832_v46  ;;  %v4840_v61 = vand.u32 4294901760, %v4839_v21  ;;  %v4788_v43 = vand.u32 4294901760, %v4787_v18 }
 0x21a   :  { %9930 = vmatprep.subr.bf16.mxu1 %v15561_v33  ;;  %v13263_v49 = vpack.c.bf16 %v4716_v39, %v4713_v29  ;;  %v15563_v33 = vand.u32 4294901760, %v13198_v52  ;;  %v15564_v8 = vand.u32 4294901760, %v13212_v19  ;;  %v13277_v46 = vsub.f32 %v209_v30, %v4716_v39  ;;  %v13291_v30 = vld [vmem:[#allocation5 + $0x5e8] sm:$0xff] }
 0x21b   :  { %9904 = vmatpush3.bf16.msra.mxu0 %v13124_v50  ;;  %v13260_v36 = vadd.f32 %v7856_v24, %v2581_v28  ;;  %v13265_v50 = vsub.f32 %v208_v38, %v4713_v29  ;;  %v13275_v28 = vpack.c.bf16 %v4952_v53, %v4945_v11  ;;  %v4719_v21 = vand.u32 4294901760, %v210_v5  ;;  %v13279_v38 = vld [vmem:[#allocation5 + $0x5e0] sm:$0xff] }
 0x21c   :  { %9938 = vmatprep.subr.bf16.mxu0 %v13135_v48  ;;  %15562 = vst [vmem:[#allocation17_spill] sm:$0xff] %v13263_v49  ;;  %v4958_v37 = vsub.f32 %v13198_v52, %v15563_v33  ;;  %v4965_v26 = vsub.f32 %v13212_v19, %v15564_v8  ;;  %15566 = vst [vmem:[#allocation29_spill] sm:$0xff] %v13277_v46  ;;  %v4722_v18 = vand.u32 4294901760, %v211_v59 }
 0x21d   :  { %9932 = vmatpush3.bf16.msra.mxu1 %v12916_v35  ;;  %v13283_v29 = vsub.f32 %v226_v4, %v4767_v44  ;;  %v4846_v24 = vsub.f32 %v13220_v1, %v14973_v51  ;;  %v15568_v35 = vand.u32 4294901760, %v13222_v57  ;;  %v13294_v39 = vpack.c.bf16 %v4840_v61, %v4833_v40 }
 0x21e   :  { %4579 = vmatmul.mubr.f32.vlgmr.msra.gmra.mrb[28].mxu0 %v15565_v15  ;;  %9934 = vmatprep.subr.bf16.mxu1 %v12939_v58  ;;  %v13296_v11 = vpack.c.bf16 %v4770_v17, %v4767_v44  ;;  %v13298_v33 = vsub.f32 %v227_v63, %v4770_v17  ;;  %v13300_v58 = vld [vmem:[#allocation5 + $0x560] sm:$0xff]  ;;  %v4959_v4 = vand.u32 4294901760, %v4958_v37  ;;  %v4966_v8 = vand.u32 4294901760, %v4965_v26  ;;  %v13311_v63 = vld [vmem:[#allocation5 + $0x568] sm:$0xff]  ;;  %v13321_v26 = vld [vmem:[#allocation5 + $0x5f0] sm:$0xff] }
 0x21f   :  { %9940 = vmatpush3.bf16.msra.mxu0 %v13137_v31  ;;  %15567 = vst [vmem:[#allocation13_spill] sm:$0xff] %v13283_v29  ;;  %v4853_v53 = vsub.f32 %v13222_v57, %v15568_v35  ;;  %4789 = vmatprep.mubr.f32.mxu0 %v4788_v43  ;;  %v14978_v51 = vand.u32 4294901760, %v13279_v38  ;;  %v14979_v1 = vand.u32 4294901760, %v13237_v3  ;;  %v13305_v35 = vpack.c.bf16 %v4722_v18, %v4719_v21  ;;  %v13361_v37 = vld [vmem:[#allocation5 + $0x570] sm:$0xff] }
 0x220   :  { %9942 = vmatprep.subr.bf16.mxu0 %v13145_v9  ;;  %15569 = vst [vmem:[#allocation27_spill] sm:$0xff] %v13296_v11  ;;  %15570 = vst [vmem:[#allocation18_spill] sm:$0xff] %v13298_v33  ;;  %v13307_v57 = vsub.f32 %v210_v5, %v4719_v21  ;;  %v14980_v44 = vand.u32 4294901760, %v13291_v30  ;;  %v13315_v40 = vsub.f32 %v211_v59, %v4722_v18  ;;  %v4847_v61 = vand.u32 4294901760, %v4846_v24  ;;  %v13323_v21 = vld [vmem:[#allocation5 + $0x5f8] sm:$0xff] }
 0x221   :  { %9936 = vmatpush3.bf16.msra.mxu1 %v12956_v34  ;;  %v4854_v43 = vand.u32 4294901760, %v4853_v53  ;;  %v14981_v34 = vand.u32 4294901760, %v13300_v58  ;;  %v9981_v59 = vpack.c.bf16 %v4966_v8, %v4959_v4  ;;  %v13331_v18 = vsub.f32 %v13279_v38, %v14978_v51  ;;  %v13346_v8 = vld [vmem:[#allocation2 + $0x8] sm:$0xff] }
 0x222   :  { %9970 = vmatprep.subr.bf16.mxu1 %v13189_v62  ;;  %15571 = vst [vmem:[#allocation26_spill] sm:$0xff] %v13315_v40  ;;  %v4972_v24 = vsub.f32 %v13237_v3, %v14979_v1  ;;  %v4728_v53 = vand.u32 4294901760, %v13311_v63  ;;  %v13341_v62 = vsub.f32 %v13291_v30, %v14980_v44  ;;  %15574 = vst [vmem:[#allocation12_spill] sm:$0xff] %v13346_v8  ;;  %v15575_v51 = vsub.s32 2, %v15549_v13  ;;  %v13363_v5 = vld [vmem:[#allocation5 + $0x578] sm:$0xff] }
 0x223   :  { %9944 = vmatpush3.bf16.msra.mxu0 %v13147_v56  ;;  %v13357_v1 = vsub.f32 %v13300_v58, %v14981_v34  ;;  %v15578_v34 = vand.u32 4294901760, %v13283_v29  ;;  %v15579_v44 = vand.u32 4294901760, %v13298_v33 }
 0x224   :  { %9946 = vmatprep.subr.bf16.mxu0 %v13161_v16  ;;  %4683 = vmatmul.mubr.f32.vlgmr.msra.gmra.mrb[28].mxu1 %v15565_v15  ;;  %15572 = vst [vmem:[#allocation22_spill] sm:$0xff] %v13341_v62  ;;  %v15573_v15 = vand.u32 4294901760, %v13240_v6  ;;  %v341_v17 = vrot.slane %v13346_v8, %v15575_v51  ;;  %v15576_v51 = vand.u32 4294901760, %v13265_v50  ;;  %v4973_v13 = vand.u32 4294901760, %v4972_v24 }
 0x225   :  { %9972 = vmatpush3.bf16.msra.mxu1 %v13194_v22  ;;  %5025 = vmatprep.mubr.f32.mxu1 %v13169_v32  ;;  %v9983_v22 = vpack.c.bf16 %v4854_v43, %v4847_v61  ;;  %v15577_v61 = vand.u32 4294901760, %v13277_v46  ;;  %v4993_v8 = vsub.f32 %v13298_v33, %v15579_v44  ;;  %v13379_v32 = vsub.f32 %v13311_v63, %v4728_v53 }
 0x226   :  { %v4979_v4 = vsub.f32 %v13240_v6, %v15573_v15  ;;  %9974 = vmatprep.subr.bf16.mxu1 %v13233_v20  ;;  %v4860_v20 = vsub.f32 %v13265_v50, %v15576_v51  ;;  %v4986_v15 = vsub.f32 %v13283_v29, %v15578_v34  ;;  %v15581_v63 = vand.u32 4294901760, %v13321_v26 }
 0x227   :  { %9948 = vmatpush3.bf16.msra.mxu0 %v13172_v54  ;;  %v4867_v43 = vsub.f32 %v13277_v46, %v15577_v61  ;;  %v13386_v46 = vand.u32 4294901760, %v341_v17  ;;  %v15585_v54 = vand.u32 4294901760, %v13361_v37  ;;  %v15593_v29 = vand.u32 4294901760, %v13357_v1 }
 0x228   :  { %9950 = vmatprep.subr.bf16.mxu0 %v13196_v42  ;;  %v4980_v44 = vand.u32 4294901760, %v4979_v4  ;;  %v13394_v24 = vsub.f32 %v13321_v26, %v15581_v63  ;;  %v4861_v34 = vand.u32 4294901760, %v4860_v20  ;;  %v4987_v42 = vand.u32 4294901760, %v4986_v15 }
 0x229   :  { %9976 = vmatpush3.bf16.msra.mxu1 %v13254_v55  ;;  %15580 = vst [vmem:[#allocation30_spill] sm:$0xff] %v13386_v46  ;;  %v15582_v55 = vand.u32 4294901760, %v13323_v21  ;;  %v4868_v51 = vand.u32 4294901760, %v4867_v43  ;;  %v15584_v63 = vand.u32 4294901760, %v13315_v40  ;;  %v13415_v20 = vsub.f32 %v13361_v37, %v15585_v54 }
 0x22a   :  { %9978 = vmatprep.subr.bf16.mxu1 %v13275_v28  ;;  %v15583_v28 = vand.u32 4294901760, %v13307_v57  ;;  %v13423_v43 = vsub.f32 %v341_v17, %v13386_v46  ;;  %v15589_v17 = vand.u32 4294901760, %v13279_v38 }
 0x22b   :  { %9952 = vmatpush3.bf16.msra.mxu0 %v13218_v2  ;;  %v13399_v61 = vsub.f32 %v13323_v21, %v15582_v55  ;;  %v4994_v2 = vand.u32 4294901760, %v4993_v8  ;;  %v4881_v33 = vsub.f32 %v13315_v40, %v15584_v63  ;;  %v15586_v8 = vand.u32 4294901760, %v13363_v5 }
 0x22c   :  { %9954 = vmatprep.subr.bf16.mxu0 %v13235_v14  ;;  %v4874_v4 = vsub.f32 %v13307_v57, %v15583_v28  ;;  %v15587_v28 = vand.u32 4294901760, %v13331_v18  ;;  %v15588_v55 = vand.u32 4294901760, %v13341_v62  ;;  %v15590_v14 = vand.u32 4294901760, %v13291_v30 }
 0x22d   :  { %9980 = vmatpush3.bf16.msra.mxu1 %v13294_v39  ;;  %v13420_v15 = vsub.f32 %v13363_v5, %v15586_v8  ;;  %v9985_v39 = vpack.c.bf16 %v4980_v44, %v4973_v13  ;;  %v9987_v13 = vpack.c.bf16 %v4868_v51, %v4861_v34  ;;  %v9989_v44 = vpack.c.bf16 %v4994_v2, %v4987_v42 }
 0x22e   :  { %v5000_v63 = vsub.f32 %v13331_v18, %v15587_v28  ;;  %9982 = vmatprep.subr.bf16.mxu1 %v9981_v59  ;;  %v5007_v54 = vsub.f32 %v13341_v62, %v15588_v55  ;;  %v13439_v40 = vpack.c.bf16 %v15590_v14, %v15589_v17  ;;  %v15592_v28 = vand.u32 4294901760, %v13300_v58 }
 0x22f   :  { %9956 = vmatpush3.bf16.msra.mxu0 %v13263_v49  ;;  %v4875_v55 = vand.u32 4294901760, %v4874_v4  ;;  %v4882_v62 = vand.u32 4294901760, %v4881_v33  ;;  %v4888_v8 = vsub.f32 %v13357_v1, %v15593_v29  ;;  %v15011_v14 = vand.u32 4294901760, %v13423_v43 }
 0x230   :  { %9958 = vmatprep.subr.bf16.mxu0 %v13296_v11  ;;  %15591 = vst [vmem:[#allocation28_spill] sm:$0xff] %v13439_v40  ;;  %v13443_v59 = vpack.c.bf16 %v4728_v53, %v15592_v28  ;;  %v15594_v11 = vand.u32 4294901760, %v13379_v32  ;;  %v5001_v58 = vand.u32 4294901760, %v5000_v63  ;;  %v15010_v53 = vand.u32 4294901760, %v13415_v20 }
 0x231   :  { %v7889_v49 = vpop.f32.mrb[16].mxu0  ;;  %9984 = vmatpush3.bf16.msra.mxu1 %v9983_v22  ;;  %v15009_v42 = vand.u32 4294901760, %v13420_v15  ;;  %v5008_v33 = vand.u32 4294901760, %v5007_v54  ;;  %v15595_v29 = vand.u32 4294901760, %v13394_v24  ;;  %v15597_v34 = vand.u32 4294901760, %v13321_v26 }
 0x232   :  { %v4895_v38 = vsub.f32 %v13379_v32, %v15594_v11  ;;  %v7890_v30 = vpop.f32.mrb[17].mxu0  ;;  %9986 = vmatprep.subr.bf16.mxu1 %v9985_v39  ;;  %v15596_v11 = vand.u32 4294901760, %v13399_v61  ;;  %v15598_v4 = vand.u32 4294901760, %v13323_v21  ;;  %v4889_v39 = vand.u32 4294901760, %v4888_v8 }
 0x233   :  { %v7891_v2 = vadd.f32 %v7890_v30, %v7889_v49  ;;  %9960 = vmatpush3.bf16.msra.mxu0 %v13305_v35  ;;  %v5014_v51 = vsub.f32 %v13394_v24, %v15595_v29  ;;  %v9991_v17 = vpack.c.bf16 %v4882_v62, %v4875_v55  ;;  %v4793_v28 = vsub.f32 %v13423_v43, %v15011_v14 }
 0x234   :  { %v5021_v22 = vsub.f32 %v13399_v61, %v15596_v11  ;;  %9962 = vmatprep.subr.bf16.mxu0 %v13439_v40  ;;  %v13466_v63 = vpack.c.bf16 %v15598_v4, %v15597_v34  ;;  %v4896_v54 = vand.u32 4294901760, %v4895_v38  ;;  %v4902_v30 = vsub.f32 %v13415_v20, %v15010_v53  ;;  %v13540_v53 = vld [vmem:[#allocation5 + $0x688] sm:$0xff] }
 0x235   :  { %v2857_v49 = vadd.f32 %v7891_v2, %v13260_v36  ;;  %9988 = vmatpush3.bf16.msra.mxu1 %v9987_v13  ;;  %v4909_v26 = vsub.f32 %v13420_v15, %v15009_v42  ;;  %v15599_v36 = vand.u32 4294901760, %v13361_v37  ;;  %v15600_v21 = vand.u32 4294901760, %v13363_v5 }
 0x236   :  { %9990 = vmatprep.subr.bf16.mxu1 %v9989_v44  ;;  %v9993_v8 = vpack.c.bf16 %v5008_v33, %v5001_v58  ;;  %v5015_v13 = vand.u32 4294901760, %v5014_v51  ;;  %v5022_v55 = vand.u32 4294901760, %v5021_v22  ;;  %v10001_v2 = vpack.c.bf16 %v13051_v25, %v13043_v12 }
 0x237   :  { %9964 = vmatpush3.bf16.msra.mxu0 %v13443_v59  ;;  %v13483_v62 = vpack.c.bf16 %v15600_v21, %v15599_v36  ;;  %v7924_v38 = vpop.f32.mrb[16].mxu1  ;;  %v9995_v11 = vpack.c.bf16 %v4896_v54, %v4889_v39  ;;  %v4794_v44 = vand.u32 4294901760, %v4793_v28  ;;  %v4903_v4 = vand.u32 4294901760, %v4902_v30  ;;  %v15604_v36 = vld [vmem:[#allocation15_spill] sm:$0xff]  ;;  %v15605_v21 = vld [vmem:[#allocation16_spill] sm:$0xff] }
 0x238   :  { %9966 = vmatprep.subr.bf16.mxu0 %v13466_v63  ;;  %v7925_v29 = vpop.f32.mrb[17].mxu1  ;;  %v4910_v37 = vand.u32 4294901760, %v4909_v26  ;;  %v10003_v5 = vpack.c.bf16 %v13061_v7, %v13058_v23  ;;  %v9997_v58 = vpack.c.bf16 %v5022_v55, %v5015_v13  ;;  %v10005_v51 = vpack.c.bf16 %v13130_v45, %v13126_v60  ;;  %v15606_v55 = vld [vmem:[#allocation29_spill] sm:$0xff] }
 0x239   :  { %v7926_v34 = vadd.f32 %v7925_v29, %v7924_v38  ;;  %9992 = vmatpush3.bf16.msra.mxu1 %v9991_v17  ;;  %v10007_v39 = vpack.c.bf16 %v13158_v0, %v13156_v27  ;;  %v10009_v54 = vpack.c.bf16 %v13167_v47, %v13165_v41  ;;  %v15602_v17 = vld [vmem:[#allocation20_spill] sm:$0xff]  ;;  %v10013_v30 = vpack.c.bf16 %v13212_v19, %v13198_v52 }
 0x23a   :  { %9994 = vmatprep.subr.bf16.mxu1 %v9993_v8  ;;  %v9999_v22 = vpack.c.bf16 %v4910_v37, %v4903_v4  ;;  %v15603_v26 = vand.u32 4294901760, %v13192_v10  ;;  %v10015_v8 = vpack.c.bf16 %v15605_v21, %v15604_v36  ;;  %v10017_v13 = vpack.c.bf16 %v13240_v6, %v13237_v3  ;;  %v15612_v37 = vld [vmem:[#allocation22_spill] sm:$0xff] }
 0x23b   :  { %9968 = vmatpush3.bf16.msra.mxu0 %v13483_v62  ;;  %v2961_v33 = vadd.f32 %v7926_v34, %v2857_v49  ;;  %v15601_v49 = vld [vmem:[#allocation24_spill] sm:$0xff]  ;;  %v10019_v38 = vpack.c.bf16 %v15606_v55, %v13265_v50  ;;  %v15610_v34 = vld [vmem:[#allocation14_spill] sm:$0xff] }
 0x23c   :  { %10002 = vmatprep.subr.bf16.mxu0 %v10001_v2  ;;  %v10011_v28 = vpack.c.bf16 %v15602_v17, %v15601_v49  ;;  %v15608_v2 = vld [vmem:[#allocation18_spill] sm:$0xff] }
 0x23d   :  { %9996 = vmatpush3.bf16.msra.mxu1 %v9995_v11  ;;  %v15609_v11 = vld [vmem:[#allocation21_spill] sm:$0xff] }
 0x23e   :  { %4795 = vmatmul.mubr.f32.vlgmr.msra.gmra.mrb[30].mxu0 %v4794_v44  ;;  %9998 = vmatprep.subr.bf16.mxu1 %v9997_v58  ;;  %v15611_v44 = vld [vmem:[#allocation26_spill] sm:$0xff] }
 0x23f   :  { %10004 = vmatpush3.bf16.msra.mxu0 %v10003_v5  ;;  %5162 = vmatprep.mubr.f32.mxu0 %v13192_v10  ;;  %v15607_v10 = vld [vmem:[#allocation13_spill] sm:$0xff]  ;;  %v10023_v4 = vpack.c.bf16 %v15611_v44, %v13307_v57  ;;  %v10025_v5 = vpack.c.bf16 %v15612_v37, %v13331_v18 }
 0x240   :  { %10006 = vmatprep.subr.bf16.mxu0 %v10005_v51  ;;  %v10021_v29 = vpack.c.bf16 %v15608_v2, %v15607_v10 }
 0x241   :  { %10000 = vmatpush3.bf16.msra.mxu1 %v9999_v22  ;;  %v15613_v22 = vld [vmem:[#allocation23_spill] sm:$0xff] }
 0x242   :  { %10034 = vmatprep.subr.bf16.mxu1 %v13135_v48 }
 0x243   :  { %10008 = vmatpush3.bf16.msra.mxu0 %v10007_v39 }
 0x244   :  { %10010 = vmatprep.subr.bf16.mxu0 %v10009_v54  ;;  %5027 = vmatmul.mubr.f32.vlgmr.msra.gmra.mrb[30].mxu1 %v13386_v46  ;;  %v15614_v54 = vld [vmem:[#allocation19_spill] sm:$0xff]  ;;  %v5602_v46 = vand.u32 4294901760, %v13540_v53 }
 0x245   :  { %10036 = vmatpush3.bf16.msra.mxu1 %v13137_v31  ;;  %5269 = vmatprep.mubr.f32.mxu1 %v15603_v26 }
 0x246   :  { %10038 = vmatprep.subr.bf16.mxu1 %v13145_v9 }
 0x247   :  { %10012 = vmatpush3.bf16.msra.mxu0 %v10011_v28  ;;  %v10027_v28 = vpack.c.bf16 %v13379_v32, %v13357_v1 }
 0x248   :  { %10014 = vmatprep.subr.bf16.mxu0 %v10013_v30  ;;  %v10029_v30 = vpack.c.bf16 %v13399_v61, %v13394_v24 }
 0x249   :  { %10040 = vmatpush3.bf16.msra.mxu1 %v13147_v56 }
 0x24a   :  { %10042 = vmatprep.subr.bf16.mxu1 %v13161_v16 }
 0x24b   :  { %10016 = vmatpush3.bf16.msra.mxu0 %v10015_v8  ;;  %v15615_v8 = vld [vmem:[#allocation17_spill] sm:$0xff] }
 0x24c   :  { %10018 = vmatprep.subr.bf16.mxu0 %v10017_v13  ;;  %v15616_v13 = vld [vmem:[#allocation27_spill] sm:$0xff] }
 0x24d   :  { %10044 = vmatpush3.bf16.msra.mxu1 %v15609_v11 }
 0x24e   :  { %10046 = vmatprep.subr.bf16.mxu1 %v15610_v34 }
 0x24f   :  { %10020 = vmatpush3.bf16.msra.mxu0 %v10019_v38  ;;  %v10031_v38 = vpack.c.bf16 %v13420_v15, %v13415_v20 }
 0x250   :  { %10022 = vmatprep.subr.bf16.mxu0 %v10021_v29 }
 0x251   :  { %v7959_v58 = vpop.f32.mrb[18].mxu0  ;;  %10048 = vmatpush3.bf16.msra.mxu1 %v15613_v22 }
 0x252   :  { %v7960_v51 = vpop.f32.mrb[19].mxu0  ;;  %10050 = vmatprep.subr.bf16.mxu1 %v15614_v54 }
 0x253   :  { %v7961_v39 = vadd.f32 %v7960_v51, %v7959_v58  ;;  %10024 = vmatpush3.bf16.msra.mxu0 %v10023_v4  ;;  %v15617_v4 = vand.u32 4294901760, %v13043_v12  ;;  %v15618_v58 = vand.u32 4294901760, %v13051_v25  ;;  %v15619_v12 = vand.u32 4294901760, %v13058_v23 }
 0x254   :  { %10026 = vmatprep.subr.bf16.mxu0 %v10025_v5  ;;  %v13538_v5 = vld [vmem:[#allocation5 + $0x680] sm:$0xff]  ;;  %v15620_v25 = vand.u32 4294901760, %v13061_v7  ;;  %v15623_v23 = vand.u32 4294901760, %v13156_v27  ;;  %v15624_v7 = vand.u32 4294901760, %v13158_v0  ;;  %v15628_v27 = vand.u32 4294901760, %v15601_v49 }
 0x255   :  { %v3073_v26 = vadd.f32 %v7961_v39, %v2961_v33  ;;  %10052 = vmatpush3.bf16.msra.mxu1 %v15615_v8  ;;  %v10065_v51 = vpack.c.bf16 %v15618_v58, %v15617_v4  ;;  %v13543_v39 = vld [vmem:[#allocation5 + $0x600] sm:$0xff]  ;;  %v5599_v4 = vand.u32 4294901760, %v13538_v5  ;;  %v15629_v0 = vand.u32 4294901760, %v15602_v17 }
 0x256   :  { %10054 = vmatprep.subr.bf16.mxu1 %v15616_v13  ;;  %v15633_v49 = vand.u32 4294901760, %v15605_v21  ;;  %v15634_v17 = vand.u32 4294901760, %v13237_v3  ;;  %v15639_v21 = vand.u32 4294901760, %v15608_v2  ;;  %v15645_v2 = vand.u32 4294901760, %v13379_v32 }
 0x257   :  { %10028 = vmatpush3.bf16.msra.mxu0 %v10027_v28  ;;  %v7994_v29 = vpop.f32.mrb[18].mxu1  ;;  %v13545_v28 = vld [vmem:[#allocation5 + $0x608] sm:$0xff]  ;;  %v15648_v32 = vand.u32 4294901760, %v13399_v61 }
 0x258   :  { %10030 = vmatprep.subr.bf16.mxu0 %v10029_v30  ;;  %v7995_v42 = vpop.f32.mrb[19].mxu1  ;;  %v10067_v30 = vpack.c.bf16 %v15620_v25, %v15619_v12  ;;  %v15627_v25 = vld [vmem:[#allocation25_spill] sm:$0xff] }
 0x259   :  { %v7996_v33 = vadd.f32 %v7995_v42, %v7994_v29  ;;  %10056 = vmatpush3.bf16.msra.mxu1 %v13305_v35  ;;  %v15621_v42 = vand.u32 4294901760, %v13126_v60  ;;  %v15622_v29 = vand.u32 4294901760, %v13130_v45  ;;  %v10071_v60 = vpack.c.bf16 %v15624_v7, %v15623_v23 }
 0x25a   :  { %10058 = vmatprep.subr.bf16.mxu1 %v13439_v40  ;;  %v5554_v40 = vand.u32 4294901760, %v13545_v28  ;;  %v13570_v45 = vsub.f32 %v13538_v5, %v5599_v4  ;;  %v15632_v23 = vand.u32 4294901760, %v15604_v36  ;;  %v15638_v36 = vand.u32 4294901760, %v15607_v10 }
 0x25b   :  { %10032 = vmatpush3.bf16.msra.mxu0 %v10031_v38  ;;  %v13553_v58 = vadd.f32 %v7996_v33, %v3073_v26  ;;  %v10069_v14 = vpack.c.bf16 %v15622_v29, %v15621_v42  ;;  %v5551_v38 = vand.u32 4294901760, %v13543_v39  ;;  %v250_v26 = vld [vmem:[#allocation5 + $0x690] sm:$0xff]  ;;  %v15626_v33 = vand.u32 4294901760, %v13167_v47  ;;  %v251_v42 = vld [vmem:[#allocation5 + $0x698] sm:$0xff] }
 0x25c   :  { %10066 = vmatprep.subr.bf16.mxu0 %v10065_v51  ;;  %v15625_v51 = vand.u32 4294901760, %v13165_v41  ;;  %v10075_v29 = vpack.c.bf16 %v15629_v0, %v15628_v27  ;;  %v15630_v41 = vand.u32 4294901760, %v13198_v52  ;;  %v15631_v47 = vand.u32 4294901760, %v13212_v19  ;;  %v235_v27 = vld [vmem:[#allocation5 + $0x618] sm:$0xff] }
 0x25d   :  { %10060 = vmatpush3.bf16.msra.mxu1 %v13443_v59  ;;  %v13585_v5 = vsub.f32 %v13543_v39, %v5551_v38  ;;  %v10079_v7 = vpack.c.bf16 %v15633_v49, %v15632_v23  ;;  %v15635_v39 = vand.u32 4294901760, %v13240_v6  ;;  %v15636_v52 = vand.u32 4294901760, %v13265_v50 }
 0x25e   :  { %5165 = vmatmul.mubr.f32.vlgmr.msra.gmra.mrb[32].mxu0 %v13423_v43  ;;  %10062 = vmatprep.subr.bf16.mxu1 %v13466_v63  ;;  %v10073_v12 = vpack.c.bf16 %v15626_v33, %v15625_v51  ;;  %v5605_v33 = vand.u32 4294901760, %v250_v26  ;;  %v15637_v19 = vand.u32 4294901760, %v15606_v55  ;;  %v13614_v3 = vpack.c.bf16 %v15639_v21, %v15638_v36 }
 0x25f   :  { %10068 = vmatpush3.bf16.msra.mxu0 %v10067_v30  ;;  %5439 = vmatprep.mubr.f32.mxu0 %v15627_v25  ;;  %v13578_v30 = vsub.f32 %v13540_v53, %v5602_v46  ;;  %v10077_v53 = vpack.c.bf16 %v15631_v47, %v15630_v41  ;;  %v10081_v51 = vpack.c.bf16 %v15635_v39, %v15634_v17  ;;  %v5608_v6 = vand.u32 4294901760, %v251_v42  ;;  %v252_v17 = vld [vmem:[#allocation5 + $0x6a0] sm:$0xff] }
 0x260   :  { %10070 = vmatprep.subr.bf16.mxu0 %v10069_v14  ;;  %v13588_v14 = vsub.f32 %v13545_v28, %v5554_v40  ;;  %v234_v28 = vld [vmem:[#allocation5 + $0x610] sm:$0xff]  ;;  %v13608_v0 = vpack.c.bf16 %v15637_v19, %v15636_v52  ;;  %v15019_v41 = vand.u32 4294901760, %v13570_v45  ;;  %v15642_v50 = vand.u32 4294901760, %v13331_v18 }
 0x261   :  { %10064 = vmatpush3.bf16.msra.mxu1 %v13483_v62  ;;  %v15643_v55 = vand.u32 4294901760, %v15612_v37  ;;  %v15644_v10 = vand.u32 4294901760, %v13357_v1  ;;  %v5557_v39 = vand.u32 4294901760, %v234_v28  ;;  %v5560_v52 = vand.u32 4294901760, %v235_v27 }
 0x262   :  { %10098 = vmatprep.subr.bf16.mxu1 %v13135_v48  ;;  %v15641_v48 = vand.u32 4294901760, %v15611_v44  ;;  %v15646_v44 = vand.u32 4294901760, %v13423_v43  ;;  %v15016_v18 = vand.u32 4294901760, %v13585_v5  ;;  %v15015_v37 = vand.u32 4294901760, %v13588_v14 }
 0x263   :  { %10072 = vmatpush3.bf16.msra.mxu0 %v10071_v60  ;;  %v15640_v60 = vand.u32 4294901760, %v13307_v57  ;;  %v13627_v23 = vpack.c.bf16 %v15643_v55, %v15642_v50  ;;  %v13633_v49 = vpack.c.bf16 %v15645_v2, %v15644_v10  ;;  %v15017_v57 = vand.u32 4294901760, %v13578_v30  ;;  %v237_v50 = vld [vmem:[#allocation5 + $0x628] sm:$0xff] }
 0x264   :  { %10074 = vmatprep.subr.bf16.mxu0 %v10073_v12  ;;  %v253_v12 = vld [vmem:[#allocation5 + $0x6a8] sm:$0xff]  ;;  %5273 = vmatmul.mubr.f32.vlgmr.msra.gmra.mrb[32].mxu1 %v15646_v44  ;;  %v15647_v1 = vand.u32 4294901760, %v13394_v24  ;;  %v15649_v36 = vand.u32 4294901760, %v13415_v20  ;;  %v15650_v21 = vand.u32 4294901760, %v13420_v15  ;;  %v5611_v24 = vand.u32 4294901760, %v252_v17  ;;  %v236_v20 = vld [vmem:[#allocation5 + $0x620] sm:$0xff] }
 0x265   :  { %v13621_v47 = vpack.c.bf16 %v15641_v48, %v15640_v60  ;;  %10100 = vmatpush3.bf16.msra.mxu1 %v13137_v31  ;;  %v13653_v60 = vsub.f32 %v250_v26, %v5605_v33  ;;  %5543 = vmatprep.mubr.f32.mxu1 %v15627_v25  ;;  %v13657_v31 = vsub.f32 %v251_v42, %v5608_v6  ;;  %v5614_v48 = vand.u32 4294901760, %v253_v12 }
 0x266   :  { %v13645_v19 = vpack.c.bf16 %v15648_v32, %v15647_v1  ;;  %v13651_v43 = vpack.c.bf16 %v15650_v21, %v15649_v36  ;;  %10102 = vmatprep.subr.bf16.mxu1 %v13145_v9  ;;  %v5778_v61 = vsub.f32 %v13570_v45, %v15019_v41  ;;  %v13662_v15 = vpack.c.bf16 %v5602_v46, %v5599_v4  ;;  %v15651_v9 = vld [vmem:[#allocation11_spill] sm:$0xff] }
 0x267   :  { %10076 = vmatpush3.bf16.msra.mxu0 %v10075_v29  ;;  %v13664_v26 = vpack.c.bf16 %v5554_v40, %v5551_v38  ;;  %v5785_v25 = vsub.f32 %v13578_v30, %v15017_v57  ;;  %v15652_v42 = vsub.s32 5, %v15651_v9  ;;  %v15653_v29 = vld [vmem:[#allocation12_spill] sm:$0xff]  ;;  %v13672_v10 = vpack.c.bf16 %v5608_v6, %v5605_v33  ;;  %v255_v6 = vld [vmem:[#allocation5 + $0x6b8] sm:$0xff] }
 0x268   :  { %10078 = vmatprep.subr.bf16.mxu0 %v10077_v53  ;;  %v13674_v2 = vpack.c.bf16 %v5560_v52, %v5557_v39  ;;  %v5666_v53 = vsub.f32 %v13585_v5, %v15016_v18  ;;  %v5673_v46 = vsub.f32 %v13588_v14, %v15015_v37  ;;  %v13683_v40 = vsub.f32 %v234_v28, %v5557_v39  ;;  %v254_v33 = vld [vmem:[#allocation5 + $0x6b0] sm:$0xff]  ;;  %v239_v18 = vld [vmem:[#allocation5 + $0x638] sm:$0xff] }
 0x269   :  { %v353_v55 = vrot.slane %v15653_v29, %v15652_v42  ;;  %10104 = vmatpush3.bf16.msra.mxu1 %v13147_v56  ;;  %v13685_v4 = vsub.f32 %v235_v27, %v5560_v52  ;;  %v5563_v38 = vand.u32 4294901760, %v236_v20  ;;  %v5566_v44 = vand.u32 4294901760, %v237_v50 }
 0x26a   :  { %10106 = vmatprep.subr.bf16.mxu1 %v13161_v16  ;;  %v13688_v1 = vpack.c.bf16 %v5614_v48, %v5611_v24  ;;  %v5779_v32 = vand.u32 4294901760, %v5778_v61  ;;  %v15018_v36 = vand.u32 4294901760, %v13653_v60  ;;  %v15022_v21 = vand.u32 4294901760, %v13657_v31  ;;  %v238_v16 = vld [vmem:[#allocation5 + $0x630] sm:$0xff] }
 0x26b   :  { %10080 = vmatpush3.bf16.msra.mxu0 %v10079_v7  ;;  %v13692_v56 = vsub.f32 %v252_v17, %v5611_v24  ;;  %v13694_v28 = vsub.f32 %v253_v12, %v5614_v48  ;;  %v5786_v27 = vand.u32 4294901760, %v5785_v25  ;;  %v13696_v39 = vand.u32 4294901760, %v353_v55  ;;  %v256_v12 = vld [vmem:[#allocation5 + $0x6c0] sm:$0xff] }
 0x26c   :  { %10082 = vmatprep.subr.bf16.mxu0 %v10081_v51  ;;  %v5667_v52 = vand.u32 4294901760, %v5666_v53  ;;  %v5674_v42 = vand.u32 4294901760, %v5673_v46  ;;  %v5617_v7 = vand.u32 4294901760, %v254_v33  ;;  %v5620_v37 = vand.u32 4294901760, %v255_v6  ;;  %v257_v46 = vld [vmem:[#allocation5 + $0x6c8] sm:$0xff] }
 0x26d   :  { %15654 = vst [vmem:[#allocation24_spill] sm:$0xff] %v13696_v39  ;;  %10108 = vmatpush3.bf16.msra.mxu1 %v15609_v11  ;;  %v13699_v61 = vpack.c.bf16 %v5566_v44, %v5563_v38  ;;  %v13701_v57 = vsub.f32 %v236_v20, %v5563_v38  ;;  %v15020_v51 = vand.u32 4294901760, %v13683_v40  ;;  %v15021_v17 = vand.u32 4294901760, %v13685_v4 }
 0x26e   :  { %10110 = vmatprep.subr.bf16.mxu1 %v15610_v34  ;;  %v13707_v24 = vsub.f32 %v237_v50, %v5566_v44  ;;  %v5792_v48 = vsub.f32 %v13653_v60, %v15018_v36  ;;  %v5799_v11 = vsub.f32 %v13657_v31, %v15022_v21  ;;  %v13716_v20 = vpack.c.bf16 %v5786_v27, %v5779_v32 }
 0x26f   :  { %15655 = vst [vmem:[#allocation20_spill] sm:$0xff] %v13699_v61  ;;  %15656 = vst [vmem:[#allocation15_spill] sm:$0xff] %v13701_v57  ;;  %10084 = vmatpush3.bf16.msra.mxu0 %v13608_v0  ;;  %v5569_v25 = vand.u32 4294901760, %v238_v16  ;;  %v5572_v53 = vand.u32 4294901760, %v239_v18  ;;  %v13719_v0 = vsub.f32 %v353_v55, %v13696_v39  ;;  %v13721_v50 = vpack.c.bf16 %v5674_v42, %v5667_v52 }
 0x270   :  { %15657 = vst [vmem:[#allocation16_spill] sm:$0xff] %v13707_v24  ;;  %10086 = vmatprep.subr.bf16.mxu0 %v13614_v3  ;;  %v13723_v38 = vpack.c.bf16 %v5620_v37, %v5617_v7  ;;  %v13725_v44 = vsub.f32 %v254_v33, %v5617_v7  ;;  %v5623_v36 = vand.u32 4294901760, %v256_v12  ;;  %v5680_v3 = vsub.f32 %v13683_v40, %v15020_v51 }
 0x271   :  { %15658 = vst [vmem:[#allocation29_spill] sm:$0xff] %v13719_v0  ;;  %v8029_v34 = vpop.f32.mrb[20].mxu0  ;;  %10112 = vmatpush3.bf16.msra.mxu1 %v15613_v22  ;;  %v5687_v55 = vsub.f32 %v13685_v4, %v15021_v17  ;;  %v15025_v32 = vand.u32 4294901760, %v13692_v56  ;;  %v5793_v33 = vand.u32 4294901760, %v5792_v48  ;;  %v5800_v42 = vand.u32 4294901760, %v5799_v11 }
 0x272   :  { %15659 = vst [vmem:[#allocation13_spill] sm:$0xff] %v13723_v38  ;;  %v8030_v41 = vpop.f32.mrb[21].mxu0  ;;  %10114 = vmatprep.subr.bf16.mxu1 %v15614_v54  ;;  %v5626_v22 = vand.u32 4294901760, %v257_v46  ;;  %v13739_v7 = vsub.f32 %v255_v6, %v5620_v37  ;;  %v15024_v51 = vand.u32 4294901760, %v13701_v57  ;;  %v15023_v17 = vand.u32 4294901760, %v13707_v24 }
 0x273   :  { %v8031_v52 = vadd.f32 %v8030_v41, %v8029_v34  ;;  %10088 = vmatpush3.bf16.msra.mxu0 %v13621_v47  ;;  %v15026_v21 = vand.u32 4294901760, %v13719_v0  ;;  %v13745_v41 = vpack.c.bf16 %v5572_v53, %v5569_v25  ;;  %v13747_v47 = vsub.f32 %v238_v16, %v5569_v25  ;;  %v240_v34 = vld [vmem:[#allocation5 + $0x640] sm:$0xff] }
 0x274   :  { %10090 = vmatprep.subr.bf16.mxu0 %v13627_v23  ;;  %v13749_v54 = vsub.f32 %v239_v18, %v5572_v53  ;;  %v5681_v48 = vand.u32 4294901760, %v5680_v3  ;;  %v5688_v23 = vand.u32 4294901760, %v5687_v55  ;;  %v5806_v37 = vsub.f32 %v13692_v56, %v15025_v32  ;;  %v259_v55 = vld [vmem:[#allocation5 + $0x6d8] sm:$0xff] }
 0x275   :  { %v3443_v27 = vadd.f32 %v8031_v52, %v13553_v58  ;;  %15660 = vst [vmem:[#allocation18_spill] sm:$0xff] %v13745_v41  ;;  %15661 = vst [vmem:[#allocation21_spill] sm:$0xff] %v13747_v47  ;;  %10116 = vmatpush3.bf16.msra.mxu1 %v15615_v8  ;;  %v15663_v6 = vand.u32 4294901760, %v13694_v28  ;;  %v241_v58 = vld [vmem:[#allocation5 + $0x648] sm:$0xff]  ;;  %v13760_v18 = vpack.c.bf16 %v5800_v42, %v5793_v33  ;;  %v5575_v52 = vand.u32 4294901760, %v240_v34 }
 0x276   :  { %15662 = vst [vmem:[#allocation14_spill] sm:$0xff] %v13749_v54  ;;  %10118 = vmatprep.subr.bf16.mxu1 %v15616_v13  ;;  %v13762_v16 = vpack.c.bf16 %v5626_v22, %v5623_v36  ;;  %v13764_v8 = vsub.f32 %v256_v12, %v5623_v36  ;;  %v13767_v53 = vsub.f32 %v257_v46, %v5626_v22  ;;  %v258_v13 = vld [vmem:[#allocation5 + $0x6d0] sm:$0xff]  ;;  %v5578_v33 = vand.u32 4294901760, %v241_v58 }
 0x277   :  { %v5813_v11 = vsub.f32 %v13694_v28, %v15663_v6  ;;  %10092 = vmatpush3.bf16.msra.mxu0 %v13633_v49  ;;  %v8064_v25 = vpop.f32.mrb[20].mxu1  ;;  %v5694_v3 = vsub.f32 %v13701_v57, %v15024_v51  ;;  %v5701_v49 = vsub.f32 %v13707_v24, %v15023_v17  ;;  %v5649_v36 = vsub.f32 %v13719_v0, %v15026_v21  ;;  %v15665_v51 = vld [vmem:[#allocation28_spill] sm:$0xff]  ;;  %v243_v57 = vld [vmem:[#allocation5 + $0x658] sm:$0xff] }
 0x278   :  { %15664 = vst [vmem:[#allocation26_spill] sm:$0xff] %v13762_v16  ;;  %10094 = vmatprep.subr.bf16.mxu0 %v13645_v19  ;;  %v8065_v12 = vpop.f32.mrb[21].mxu1  ;;  %v13781_v22 = vpack.c.bf16 %v5688_v23, %v5681_v48  ;;  %v5807_v6 = vand.u32 4294901760, %v5806_v37  ;;  %v5629_v32 = vand.u32 4294901760, %v258_v13  ;;  %v5632_v21 = vand.u32 4294901760, %v259_v55  ;;  %v242_v24 = vld [vmem:[#allocation5 + $0x650] sm:$0xff] }
 0x279   :  { %v8066_v42 = vadd.f32 %v8065_v12, %v8064_v25  ;;  %10120 = vmatpush3.bf16.msra.mxu1 %v13305_v35  ;;  %v5814_v17 = vand.u32 4294901760, %v5813_v11  ;;  %v15033_v0 = vand.u32 4294901760, %v13747_v47  ;;  %v5695_v35 = vand.u32 4294901760, %v5694_v3  ;;  %v15669_v19 = vld [vmem:[#allocation30_spill] sm:$0xff] }
 0x27a   :  { %10122 = vmatprep.subr.bf16.mxu1 %v15665_v51  ;;  %v5702_v48 = vand.u32 4294901760, %v5701_v49  ;;  %v5650_v23 = vand.u32 4294901760, %v5649_v36  ;;  %v13790_v37 = vpack.c.bf16 %v5578_v33, %v5575_v52  ;;  %v15667_v51 = vand.u32 4294901760, %v13725_v44 }
 0x27b   :  { %10096 = vmatpush3.bf16.msra.mxu0 %v13651_v43  ;;  %v13787_v46 = vadd.f32 %v8066_v42, %v3443_v27  ;;  %v13792_v43 = vsub.f32 %v240_v34, %v5575_v52  ;;  %v15668_v25 = vand.u32 4294901760, %v13739_v7  ;;  %v13802_v27 = vpack.c.bf16 %v5814_v17, %v5807_v6  ;;  %v13806_v34 = vld [vmem:[#allocation5 + $0x6e0] sm:$0xff] }
 0x27c   :  { %10130 = vmatprep.subr.bf16.mxu0 %v13662_v15  ;;  %15666 = vst [vmem:[#allocation22_spill] sm:$0xff] %v13790_v37  ;;  %v5820_v11 = vsub.f32 %v13725_v44, %v15667_v51  ;;  %v13804_v3 = vsub.f32 %v241_v58, %v5578_v33  ;;  %v5581_v49 = vand.u32 4294901760, %v242_v24  ;;  %v5584_v36 = vand.u32 4294901760, %v243_v57  ;;  %v13818_v58 = vld [vmem:[#allocation5 + $0x6e8] sm:$0xff] }
 0x27d   :  { %v5827_v12 = vsub.f32 %v13739_v7, %v15668_v25  ;;  %10124 = vmatpush3.bf16.msra.mxu1 %v13443_v59  ;;  %v13810_v52 = vsub.f32 %v258_v13, %v5629_v32  ;;  %v5708_v42 = vsub.f32 %v13747_v47, %v15033_v0  ;;  %v15671_v59 = vand.u32 4294901760, %v13749_v54 }
 0x27e   :  { %5441 = vmatmul.mubr.f32.vlgmr.msra.gmra.mrb[34].mxu0 %v15669_v19  ;;  %10126 = vmatprep.subr.bf16.mxu1 %v13466_v63  ;;  %v13821_v33 = vpack.c.bf16 %v5702_v48, %v5695_v35  ;;  %v13823_v6 = vpack.c.bf16 %v5632_v21, %v5629_v32  ;;  %v13825_v51 = vsub.f32 %v259_v55, %v5632_v21  ;;  %v13827_v63 = vld [vmem:[#allocation5 + $0x660] sm:$0xff]  ;;  %v5821_v13 = vand.u32 4294901760, %v5820_v11  ;;  %v13838_v55 = vld [vmem:[#allocation5 + $0x668] sm:$0xff]  ;;  %v13886_v21 = vld [vmem:[#allocation5 + $0x670] sm:$0xff] }
 0x27f   :  { %10132 = vmatpush3.bf16.msra.mxu0 %v13664_v26  ;;  %15670 = vst [vmem:[#allocation23_spill] sm:$0xff] %v13810_v52  ;;  %v5715_v17 = vsub.f32 %v13749_v54, %v15671_v59  ;;  %5651 = vmatprep.mubr.f32.mxu0 %v5650_v23  ;;  %v5828_v25 = vand.u32 4294901760, %v5827_v12  ;;  %v15038_v0 = vand.u32 4294901760, %v13806_v34  ;;  %v15039_v47 = vand.u32 4294901760, %v13764_v8  ;;  %v13848_v12 = vld [vmem:[#allocation5 + $0x6f0] sm:$0xff]  ;;  %v13888_v11 = vld [vmem:[#allocation5 + $0x678] sm:$0xff] }
 0x280   :  { %10134 = vmatprep.subr.bf16.mxu0 %v13672_v10  ;;  %15672 = vst [vmem:[#allocation19_spill] sm:$0xff] %v13823_v6  ;;  %15673 = vst [vmem:[#allocation17_spill] sm:$0xff] %v13825_v51  ;;  %v13832_v59 = vpack.c.bf16 %v5584_v36, %v5581_v49  ;;  %v13834_v54 = vsub.f32 %v242_v24, %v5581_v49  ;;  %v15040_v32 = vand.u32 4294901760, %v13818_v58  ;;  %v5709_v48 = vand.u32 4294901760, %v5708_v42  ;;  %v13850_v49 = vld [vmem:[#allocation5 + $0x6f8] sm:$0xff] }
 0x281   :  { %10128 = vmatpush3.bf16.msra.mxu1 %v13483_v62  ;;  %v13842_v35 = vsub.f32 %v243_v57, %v5584_v36  ;;  %v5716_v23 = vand.u32 4294901760, %v5715_v17  ;;  %v15041_v62 = vand.u32 4294901760, %v13827_v63  ;;  %v15045_v24 = vand.u32 4294901760, %v13792_v43 }
 0x282   :  { %10162 = vmatprep.subr.bf16.mxu1 %v13716_v20  ;;  %v10173_v57 = vpack.c.bf16 %v5828_v25, %v5821_v13  ;;  %v13858_v36 = vsub.f32 %v13806_v34, %v15038_v0  ;;  %v5834_v42 = vsub.f32 %v13764_v8, %v15039_v47  ;;  %v5590_v17 = vand.u32 4294901760, %v13838_v55 }
 0x283   :  { %10136 = vmatpush3.bf16.msra.mxu0 %v13674_v2  ;;  %15674 = vst [vmem:[#allocation27_spill] sm:$0xff] %v13842_v35  ;;  %v13868_v20 = vsub.f32 %v13818_v58, %v15040_v32  ;;  %v15677_v25 = vsub.s32 4, %v15651_v9  ;;  %v13882_v47 = vsub.f32 %v13827_v63, %v15041_v62  ;;  %v15680_v62 = vand.u32 4294901760, %v13825_v51 }
 0x284   :  { %10138 = vmatprep.subr.bf16.mxu0 %v13688_v1  ;;  %5545 = vmatmul.mubr.f32.vlgmr.msra.gmra.mrb[34].mxu1 %v15669_v19  ;;  %v15676_v19 = vand.u32 4294901760, %v13767_v53  ;;  %v5835_v32 = vand.u32 4294901760, %v5834_v42  ;;  %v13904_v9 = vsub.f32 %v13838_v55, %v5590_v17 }
 0x285   :  { %10164 = vmatpush3.bf16.msra.mxu1 %v13721_v50  ;;  %15675 = vst [vmem:[#allocation25_spill] sm:$0xff] %v13868_v20  ;;  %v349_v0 = vrot.slane %v15653_v29, %v15677_v25  ;;  %5887 = vmatprep.mubr.f32.mxu1 %v13696_v39  ;;  %v10175_v50 = vpack.c.bf16 %v5716_v23, %v5709_v48  ;;  %v15679_v23 = vand.u32 4294901760, %v13810_v52 }
 0x286   :  { %v5841_v13 = vsub.f32 %v13767_v53, %v15676_v19  ;;  %10166 = vmatprep.subr.bf16.mxu1 %v13760_v18  ;;  %v5722_v29 = vsub.f32 %v13792_v43, %v15045_v24  ;;  %v15678_v18 = vand.u32 4294901760, %v13804_v3  ;;  %v5855_v19 = vsub.f32 %v13825_v51, %v15680_v62 }
 0x287   :  { %10140 = vmatpush3.bf16.msra.mxu0 %v13699_v61  ;;  %v5848_v25 = vsub.f32 %v13810_v52, %v15679_v23  ;;  %v13911_v61 = vand.u32 4294901760, %v349_v0  ;;  %v15682_v62 = vand.u32 4294901760, %v13848_v12  ;;  %v15694_v52 = vand.u32 4294901760, %v13882_v47 }
 0x288   :  { %10142 = vmatprep.subr.bf16.mxu0 %v13723_v38  ;;  %v5729_v48 = vsub.f32 %v13804_v3, %v15678_v18  ;;  %v5842_v55 = vand.u32 4294901760, %v5841_v13  ;;  %v5723_v23 = vand.u32 4294901760, %v5722_v29  ;;  %v15686_v38 = vand.u32 4294901760, %v13886_v21 }
 0x289   :  { %10168 = vmatpush3.bf16.msra.mxu1 %v13781_v22  ;;  %15681 = vst [vmem:[#allocation12_spill] sm:$0xff] %v13911_v61  ;;  %v13919_v42 = vsub.f32 %v13848_v12, %v15682_v62  ;;  %v15683_v22 = vand.u32 4294901760, %v13850_v49  ;;  %v5849_v39 = vand.u32 4294901760, %v5848_v25  ;;  %v15685_v62 = vand.u32 4294901760, %v13842_v35 }
 0x28a   :  { %10170 = vmatprep.subr.bf16.mxu1 %v13802_v27  ;;  %v5730_v24 = vand.u32 4294901760, %v5729_v48  ;;  %v15684_v27 = vand.u32 4294901760, %v13834_v54  ;;  %v13940_v29 = vsub.f32 %v13886_v21, %v15686_v38  ;;  %v13948_v25 = vsub.f32 %v349_v0, %v13911_v61 }
 0x28b   :  { %10144 = vmatpush3.bf16.msra.mxu0 %v13745_v41  ;;  %v13924_v18 = vsub.f32 %v13850_v49, %v15683_v22  ;;  %v5856_v41 = vand.u32 4294901760, %v5855_v19  ;;  %v5743_v51 = vsub.f32 %v13842_v35, %v15685_v62  ;;  %v15687_v19 = vand.u32 4294901760, %v13888_v11 }
 0x28c   :  { %10146 = vmatprep.subr.bf16.mxu0 %v13762_v16  ;;  %v5736_v13 = vsub.f32 %v13834_v54, %v15684_v27  ;;  %v15688_v27 = vand.u32 4294901760, %v13858_v36  ;;  %v15689_v22 = vand.u32 4294901760, %v13868_v20  ;;  %v15690_v0 = vand.u32 4294901760, %v13806_v34 }
 0x28d   :  { %10172 = vmatpush3.bf16.msra.mxu1 %v13821_v33  ;;  %v13945_v48 = vsub.f32 %v13888_v11, %v15687_v19  ;;  %v10177_v33 = vpack.c.bf16 %v5842_v55, %v5835_v32  ;;  %v15691_v16 = vand.u32 4294901760, %v13818_v58  ;;  %v10179_v32 = vpack.c.bf16 %v5730_v24, %v5723_v23 }
 0x28e   :  { %v5862_v62 = vsub.f32 %v13858_v36, %v15688_v27  ;;  %10174 = vmatprep.subr.bf16.mxu1 %v10173_v57  ;;  %v5869_v38 = vsub.f32 %v13868_v20, %v15689_v22  ;;  %v15693_v27 = vand.u32 4294901760, %v13827_v63  ;;  %v10181_v55 = vpack.c.bf16 %v5856_v41, %v5849_v39 }
 0x28f   :  { %10148 = vmatpush3.bf16.msra.mxu0 %v13790_v37  ;;  %v13964_v35 = vpack.c.bf16 %v15691_v16, %v15690_v0  ;;  %v5737_v22 = vand.u32 4294901760, %v5736_v13  ;;  %v5744_v20 = vand.u32 4294901760, %v5743_v51  ;;  %v5750_v19 = vsub.f32 %v13882_v47, %v15694_v52 }
 0x290   :  { %10150 = vmatprep.subr.bf16.mxu0 %v13823_v6  ;;  %v13968_v57 = vpack.c.bf16 %v5590_v17, %v15693_v27  ;;  %v15695_v6 = vand.u32 4294901760, %v13904_v9  ;;  %v15068_v16 = vand.u32 4294901760, %v13948_v25  ;;  %v5863_v63 = vand.u32 4294901760, %v5862_v62 }
 0x291   :  { %15692 = vst [vmem:[#allocation28_spill] sm:$0xff] %v13964_v35  ;;  %v8099_v37 = vpop.f32.mrb[22].mxu0  ;;  %10176 = vmatpush3.bf16.msra.mxu1 %v10175_v50  ;;  %v15067_v17 = vand.u32 4294901760, %v13940_v29  ;;  %v15066_v39 = vand.u32 4294901760, %v13945_v48  ;;  %v5870_v51 = vand.u32 4294901760, %v5869_v38  ;;  %v15696_v52 = vand.u32 4294901760, %v13919_v42 }
 0x292   :  { %v5757_v34 = vsub.f32 %v13904_v9, %v15695_v6  ;;  %v8100_v58 = vpop.f32.mrb[23].mxu0  ;;  %10178 = vmatprep.subr.bf16.mxu1 %v10177_v33  ;;  %v15697_v6 = vand.u32 4294901760, %v13924_v18  ;;  %v15698_v23 = vand.u32 4294901760, %v13848_v12  ;;  %v15699_v13 = vand.u32 4294901760, %v13850_v49 }
 0x293   :  { %v8101_v41 = vadd.f32 %v8100_v58, %v8099_v37  ;;  %10152 = vmatpush3.bf16.msra.mxu0 %v13832_v59  ;;  %v5876_v24 = vsub.f32 %v13919_v42, %v15696_v52  ;;  %v5751_v33 = vand.u32 4294901760, %v5750_v19  ;;  %v10183_v0 = vpack.c.bf16 %v5744_v20, %v5737_v22 }
 0x294   :  { %v5883_v50 = vsub.f32 %v13924_v18, %v15697_v6  ;;  %10154 = vmatprep.subr.bf16.mxu0 %v13964_v35  ;;  %v13991_v62 = vpack.c.bf16 %v15699_v13, %v15698_v23  ;;  %v5758_v38 = vand.u32 4294901760, %v5757_v34  ;;  %v5655_v27 = vsub.f32 %v13948_v25, %v15068_v16 }
 0x295   :  { %v3719_v37 = vadd.f32 %v8101_v41, %v13787_v46  ;;  %10180 = vmatpush3.bf16.msra.mxu1 %v10179_v32  ;;  %v5764_v58 = vsub.f32 %v13940_v29, %v15067_v17  ;;  %v5771_v12 = vsub.f32 %v13945_v48, %v15066_v39  ;;  %v15700_v46 = vand.u32 4294901760, %v13886_v21  ;;  %v14065_v17 = vld [vmem:[#allocation5 + $0x788] sm:$0xff] }
 0x296   :  { %10182 = vmatprep.subr.bf16.mxu1 %v10181_v55  ;;  %v15701_v49 = vand.u32 4294901760, %v13888_v11  ;;  %v10185_v19 = vpack.c.bf16 %v5870_v51, %v5863_v63  ;;  %v5877_v32 = vand.u32 4294901760, %v5876_v24  ;;  %v5884_v22 = vand.u32 4294901760, %v5883_v50 }
 0x297   :  { %10156 = vmatpush3.bf16.msra.mxu0 %v13968_v57  ;;  %v8134_v34 = vpop.f32.mrb[22].mxu1  ;;  %v10193_v41 = vpack.c.bf16 %v13578_v30, %v13570_v45  ;;  %v10187_v6 = vpack.c.bf16 %v5758_v38, %v5751_v33  ;;  %v5656_v55 = vand.u32 4294901760, %v5655_v27  ;;  %v5765_v13 = vand.u32 4294901760, %v5764_v58  ;;  %v15704_v27 = vld [vmem:[#allocation16_spill] sm:$0xff] }
 0x298   :  { %v14008_v20 = vpack.c.bf16 %v15701_v49, %v15700_v46  ;;  %10158 = vmatprep.subr.bf16.mxu0 %v13991_v62  ;;  %v8135_v52 = vpop.f32.mrb[23].mxu1  ;;  %v5772_v21 = vand.u32 4294901760, %v5771_v12  ;;  %v10195_v11 = vpack.c.bf16 %v13588_v14, %v13585_v5  ;;  %v10189_v63 = vpack.c.bf16 %v5884_v22, %v5877_v32  ;;  %v15706_v49 = vld [vmem:[#allocation21_spill] sm:$0xff] }
 0x299   :  { %v8136_v23 = vadd.f32 %v8135_v52, %v8134_v34  ;;  %10184 = vmatpush3.bf16.msra.mxu1 %v10183_v0  ;;  %v10197_v24 = vpack.c.bf16 %v13657_v31, %v13653_v60  ;;  %v10199_v33 = vpack.c.bf16 %v13685_v4, %v13683_v40  ;;  %v10201_v38 = vpack.c.bf16 %v13694_v28, %v13692_v56  ;;  %v15702_v0 = vld [vmem:[#allocation29_spill] sm:$0xff] }
 0x29a   :  { %10186 = vmatprep.subr.bf16.mxu1 %v10185_v19  ;;  %v10191_v50 = vpack.c.bf16 %v5772_v21, %v5765_v13  ;;  %v10205_v12 = vpack.c.bf16 %v13739_v7, %v13725_v44  ;;  %v15705_v46 = vand.u32 4294901760, %v15702_v0  ;;  %v15707_v19 = vld [vmem:[#allocation14_spill] sm:$0xff]  ;;  %v10209_v22 = vpack.c.bf16 %v13767_v53, %v13764_v8  ;;  %v15709_v52 = vld [vmem:[#allocation17_spill] sm:$0xff]  ;;  %v15712_v13 = vld [vmem:[#allocation27_spill] sm:$0xff] }
 0x29b   :  { %10160 = vmatpush3.bf16.msra.mxu0 %v14008_v20  ;;  %v3823_v51 = vadd.f32 %v8136_v23, %v3719_v37  ;;  %v15703_v37 = vld [vmem:[#allocation15_spill] sm:$0xff]  ;;  %v10207_v32 = vpack.c.bf16 %v15707_v19, %v15706_v49  ;;  %v10211_v34 = vpack.c.bf16 %v13804_v3, %v13792_v43  ;;  %v15710_v23 = vld [vmem:[#allocation20_spill] sm:$0xff]  ;;  %v10215_v21 = vpack.c.bf16 %v15712_v13, %v13834_v54 }
 0x29c   :  { %10194 = vmatprep.subr.bf16.mxu0 %v10193_v41  ;;  %v10203_v58 = vpack.c.bf16 %v15704_v27, %v15703_v37  ;;  %v15708_v41 = vld [vmem:[#allocation23_spill] sm:$0xff] }
 0x29d   :  { %10188 = vmatpush3.bf16.msra.mxu1 %v10187_v6  ;;  %v10213_v6 = vpack.c.bf16 %v15709_v52, %v15708_v41 }
 0x29e   :  { %5657 = vmatmul.mubr.f32.vlgmr.msra.gmra.mrb[36].mxu0 %v5656_v55  ;;  %10190 = vmatprep.subr.bf16.mxu1 %v10189_v63  ;;  %v15711_v55 = vld [vmem:[#allocation13_spill] sm:$0xff] }
 0x29f   :  { %10196 = vmatpush3.bf16.msra.mxu0 %v10195_v11  ;;  %6024 = vmatprep.mubr.f32.mxu0 %v15702_v0  ;;  %v15713_v11 = vld [vmem:[#allocation25_spill] sm:$0xff]  ;;  %v15715_v0 = vld [vmem:[#allocation26_spill] sm:$0xff] }
 0x2a0   :  { %10198 = vmatprep.subr.bf16.mxu0 %v10197_v24  ;;  %v10217_v63 = vpack.c.bf16 %v15713_v11, %v13858_v36 }
 0x2a1   :  { %10192 = vmatpush3.bf16.msra.mxu1 %v10191_v50 }
 0x2a2   :  { %10226 = vmatprep.subr.bf16.mxu1 %v13662_v15 }
 0x2a3   :  { %10200 = vmatpush3.bf16.msra.mxu0 %v10199_v33  ;;  %v15714_v33 = vld [vmem:[#allocation18_spill] sm:$0xff] }
 0x2a4   :  { %10202 = vmatprep.subr.bf16.mxu0 %v10201_v38  ;;  %5889 = vmatmul.mubr.f32.vlgmr.msra.gmra.mrb[36].mxu1 %v13911_v61  ;;  %v6464_v61 = vand.u32 4294901760, %v14065_v17 }
 0x2a5   :  { %10228 = vmatpush3.bf16.msra.mxu1 %v13664_v26  ;;  %6131 = vmatprep.mubr.f32.mxu1 %v15705_v46 }
 0x2a6   :  { %10230 = vmatprep.subr.bf16.mxu1 %v13672_v10 }
 0x2a7   :  { %10204 = vmatpush3.bf16.msra.mxu0 %v10203_v58  ;;  %v10219_v58 = vpack.c.bf16 %v13904_v9, %v13882_v47 }
 0x2a8   :  { %10206 = vmatprep.subr.bf16.mxu0 %v10205_v12  ;;  %v10221_v12 = vpack.c.bf16 %v13924_v18, %v13919_v42 }
 0x2a9   :  { %10232 = vmatpush3.bf16.msra.mxu1 %v13674_v2 }
 0x2aa   :  { %10234 = vmatprep.subr.bf16.mxu1 %v13688_v1 }
 0x2ab   :  { %10208 = vmatpush3.bf16.msra.mxu0 %v10207_v32  ;;  %v15716_v32 = vld [vmem:[#allocation22_spill] sm:$0xff] }
 0x2ac   :  { %10210 = vmatprep.subr.bf16.mxu0 %v10209_v22  ;;  %v15717_v22 = vld [vmem:[#allocation19_spill] sm:$0xff] }
 0x2ad   :  { %10236 = vmatpush3.bf16.msra.mxu1 %v15710_v23 }
 0x2ae   :  { %10238 = vmatprep.subr.bf16.mxu1 %v15711_v55 }
 0x2af   :  { %10212 = vmatpush3.bf16.msra.mxu0 %v10211_v34  ;;  %v10223_v34 = vpack.c.bf16 %v13945_v48, %v13940_v29 }
 0x2b0   :  { %10214 = vmatprep.subr.bf16.mxu0 %v10213_v6 }
 0x2b1   :  { %v8169_v24 = vpop.f32.mrb[24].mxu0  ;;  %10240 = vmatpush3.bf16.msra.mxu1 %v15714_v33 }
 0x2b2   :  { %v8170_v50 = vpop.f32.mrb[25].mxu0  ;;  %10242 = vmatprep.subr.bf16.mxu1 %v15715_v0 }
 0x2b3   :  { %v8171_v38 = vadd.f32 %v8170_v50, %v8169_v24  ;;  %10216 = vmatpush3.bf16.msra.mxu0 %v10215_v21  ;;  %v15718_v21 = vand.u32 4294901760, %v13570_v45  ;;  %v15719_v24 = vand.u32 4294901760, %v13578_v30  ;;  %v15720_v45 = vand.u32 4294901760, %v13585_v5 }
 0x2b4   :  { %10218 = vmatprep.subr.bf16.mxu0 %v10217_v63  ;;  %v14063_v63 = vld [vmem:[#allocation5 + $0x780] sm:$0xff]  ;;  %v15721_v30 = vand.u32 4294901760, %v13588_v14  ;;  %v15724_v5 = vand.u32 4294901760, %v13683_v40  ;;  %v15725_v14 = vand.u32 4294901760, %v13685_v4  ;;  %v15729_v40 = vand.u32 4294901760, %v15703_v37 }
 0x2b5   :  { %v3935_v46 = vadd.f32 %v8171_v38, %v3823_v51  ;;  %10244 = vmatpush3.bf16.msra.mxu1 %v15716_v32  ;;  %v10257_v50 = vpack.c.bf16 %v15719_v24, %v15718_v21  ;;  %v14068_v38 = vld [vmem:[#allocation5 + $0x700] sm:$0xff]  ;;  %v6461_v21 = vand.u32 4294901760, %v14063_v63  ;;  %v15730_v4 = vand.u32 4294901760, %v15704_v27 }
 0x2b6   :  { %10246 = vmatprep.subr.bf16.mxu1 %v15717_v22  ;;  %v15734_v37 = vand.u32 4294901760, %v15707_v19  ;;  %v15735_v27 = vand.u32 4294901760, %v13764_v8  ;;  %v15740_v19 = vand.u32 4294901760, %v15709_v52  ;;  %v15746_v52 = vand.u32 4294901760, %v13904_v9 }
 0x2b7   :  { %10220 = vmatpush3.bf16.msra.mxu0 %v10219_v58  ;;  %v8204_v6 = vpop.f32.mrb[24].mxu1  ;;  %v14070_v58 = vld [vmem:[#allocation5 + $0x708] sm:$0xff]  ;;  %v15749_v9 = vand.u32 4294901760, %v13924_v18 }
 0x2b8   :  { %10222 = vmatprep.subr.bf16.mxu0 %v10221_v12  ;;  %v8205_v39 = vpop.f32.mrb[25].mxu1  ;;  %v10259_v12 = vpack.c.bf16 %v15721_v30, %v15720_v45  ;;  %v15728_v30 = vld [vmem:[#allocation24_spill] sm:$0xff] }
 0x2b9   :  { %v8206_v51 = vadd.f32 %v8205_v39, %v8204_v6  ;;  %10248 = vmatpush3.bf16.msra.mxu1 %v13832_v59  ;;  %v15722_v39 = vand.u32 4294901760, %v13653_v60  ;;  %v15723_v6 = vand.u32 4294901760, %v13657_v31  ;;  %v10263_v60 = vpack.c.bf16 %v15725_v14, %v15724_v5 }
 0x2ba   :  { %10250 = vmatprep.subr.bf16.mxu1 %v13964_v35  ;;  %v6416_v35 = vand.u32 4294901760, %v14070_v58  ;;  %v14095_v31 = vsub.f32 %v14063_v63, %v6461_v21  ;;  %v15733_v5 = vand.u32 4294901760, %v15706_v49  ;;  %v15739_v49 = vand.u32 4294901760, %v15708_v41 }
 0x2bb   :  { %10224 = vmatpush3.bf16.msra.mxu0 %v10223_v34  ;;  %v14078_v24 = vadd.f32 %v8206_v51, %v3935_v46  ;;  %v10261_v16 = vpack.c.bf16 %v15723_v6, %v15722_v39  ;;  %v6413_v34 = vand.u32 4294901760, %v14068_v38  ;;  %v282_v46 = vld [vmem:[#allocation5 + $0x790] sm:$0xff]  ;;  %v15727_v51 = vand.u32 4294901760, %v13694_v28  ;;  %v283_v39 = vld [vmem:[#allocation5 + $0x798] sm:$0xff] }
 0x2bc   :  { %10258 = vmatprep.subr.bf16.mxu0 %v10257_v50  ;;  %v15726_v50 = vand.u32 4294901760, %v13692_v56  ;;  %v10267_v6 = vpack.c.bf16 %v15730_v4, %v15729_v40  ;;  %v15731_v56 = vand.u32 4294901760, %v13725_v44  ;;  %v15732_v28 = vand.u32 4294901760, %v13739_v7  ;;  %v267_v40 = vld [vmem:[#allocation5 + $0x718] sm:$0xff] }
 0x2bd   :  { %10252 = vmatpush3.bf16.msra.mxu1 %v13968_v57  ;;  %v14110_v63 = vsub.f32 %v14068_v38, %v6413_v34  ;;  %v10271_v14 = vpack.c.bf16 %v15734_v37, %v15733_v5  ;;  %v15736_v38 = vand.u32 4294901760, %v13767_v53  ;;  %v15737_v44 = vand.u32 4294901760, %v13792_v43 }
 0x2be   :  { %6027 = vmatmul.mubr.f32.vlgmr.msra.gmra.mrb[38].mxu0 %v13948_v25  ;;  %10254 = vmatprep.subr.bf16.mxu1 %v13991_v62  ;;  %v10265_v45 = vpack.c.bf16 %v15727_v51, %v15726_v50  ;;  %v6467_v51 = vand.u32 4294901760, %v282_v46  ;;  %v15738_v7 = vand.u32 4294901760, %v13804_v3  ;;  %v14139_v8 = vpack.c.bf16 %v15740_v19, %v15739_v49 }
 0x2bf   :  { %10260 = vmatpush3.bf16.msra.mxu0 %v10259_v12  ;;  %6301 = vmatprep.mubr.f32.mxu0 %v15728_v30  ;;  %v14103_v12 = vsub.f32 %v14065_v17, %v6464_v61  ;;  %v10269_v17 = vpack.c.bf16 %v15732_v28, %v15731_v56  ;;  %v10273_v50 = vpack.c.bf16 %v15736_v38, %v15735_v27  ;;  %v6470_v53 = vand.u32 4294901760, %v283_v39  ;;  %v284_v27 = vld [vmem:[#allocation5 + $0x7a0] sm:$0xff] }
 0x2c0   :  { %10262 = vmatprep.subr.bf16.mxu0 %v10261_v16  ;;  %v14113_v16 = vsub.f32 %v14070_v58, %v6416_v35  ;;  %v266_v58 = vld [vmem:[#allocation5 + $0x710] sm:$0xff]  ;;  %v14133_v4 = vpack.c.bf16 %v15738_v7, %v15737_v44  ;;  %v15076_v56 = vand.u32 4294901760, %v14095_v31  ;;  %v15743_v43 = vand.u32 4294901760, %v13858_v36 }
 0x2c1   :  { %10256 = vmatpush3.bf16.msra.mxu1 %v14008_v20  ;;  %v15744_v3 = vand.u32 4294901760, %v15713_v11  ;;  %v15745_v41 = vand.u32 4294901760, %v13882_v47  ;;  %v6419_v38 = vand.u32 4294901760, %v266_v58  ;;  %v6422_v44 = vand.u32 4294901760, %v267_v40 }
 0x2c2   :  { %10290 = vmatprep.subr.bf16.mxu1 %v13662_v15  ;;  %v15742_v15 = vand.u32 4294901760, %v15712_v13  ;;  %v15747_v13 = vand.u32 4294901760, %v13948_v25  ;;  %v15073_v36 = vand.u32 4294901760, %v14110_v63  ;;  %v15072_v11 = vand.u32 4294901760, %v14113_v16 }
 0x2c3   :  { %10264 = vmatpush3.bf16.msra.mxu0 %v10263_v60  ;;  %v15741_v60 = vand.u32 4294901760, %v13834_v54  ;;  %v14152_v5 = vpack.c.bf16 %v15744_v3, %v15743_v43  ;;  %v14158_v37 = vpack.c.bf16 %v15746_v52, %v15745_v41  ;;  %v15074_v54 = vand.u32 4294901760, %v14103_v12  ;;  %v269_v43 = vld [vmem:[#allocation5 + $0x728] sm:$0xff] }
 0x2c4   :  { %10266 = vmatprep.subr.bf16.mxu0 %v10265_v45  ;;  %v285_v45 = vld [vmem:[#allocation5 + $0x7a8] sm:$0xff]  ;;  %6135 = vmatmul.mubr.f32.vlgmr.msra.gmra.mrb[38].mxu1 %v15747_v13  ;;  %v15748_v47 = vand.u32 4294901760, %v13919_v42  ;;  %v15750_v49 = vand.u32 4294901760, %v13940_v29  ;;  %v15751_v19 = vand.u32 4294901760, %v13945_v48  ;;  %v6473_v42 = vand.u32 4294901760, %v284_v27  ;;  %v268_v29 = vld [vmem:[#allocation5 + $0x720] sm:$0xff] }
 0x2c5   :  { %v14146_v28 = vpack.c.bf16 %v15742_v15, %v15741_v60  ;;  %10292 = vmatpush3.bf16.msra.mxu1 %v13664_v26  ;;  %v14178_v60 = vsub.f32 %v282_v46, %v6467_v51  ;;  %6405 = vmatprep.mubr.f32.mxu1 %v15728_v30  ;;  %v14182_v26 = vsub.f32 %v283_v39, %v6470_v53  ;;  %v6476_v15 = vand.u32 4294901760, %v285_v45  ;;  %v15752_v39 = vld [vmem:[#allocation11_spill] sm:$0xff] }
 0x2c6   :  { %v14170_v7 = vpack.c.bf16 %v15749_v9, %v15748_v47  ;;  %v14176_v25 = vpack.c.bf16 %v15751_v19, %v15750_v49  ;;  %10294 = vmatprep.subr.bf16.mxu1 %v13672_v10  ;;  %v6640_v18 = vsub.f32 %v14095_v31, %v15076_v56  ;;  %v14187_v48 = vpack.c.bf16 %v6464_v61, %v6461_v21  ;;  %v14194_v10 = vld [vmem:[#allocation2 + $0x8] sm:$0xff] }
 0x2c7   :  { %10268 = vmatpush3.bf16.msra.mxu0 %v10267_v6  ;;  %v14189_v46 = vpack.c.bf16 %v6416_v35, %v6413_v34  ;;  %v6647_v30 = vsub.f32 %v14103_v12, %v15074_v54  ;;  %v15753_v6 = vsub.s32 7, %v15752_v39  ;;  %v14199_v41 = vpack.c.bf16 %v6470_v53, %v6467_v51  ;;  %v286_v51 = vld [vmem:[#allocation5 + $0x7b0] sm:$0xff]  ;;  %v287_v53 = vld [vmem:[#allocation5 + $0x7b8] sm:$0xff] }
 0x2c8   :  { %10270 = vmatprep.subr.bf16.mxu0 %v10269_v17  ;;  %v14201_v52 = vpack.c.bf16 %v6422_v44, %v6419_v38  ;;  %v6528_v61 = vsub.f32 %v14110_v63, %v15073_v36  ;;  %v6535_v35 = vsub.f32 %v14113_v16, %v15072_v11  ;;  %v14210_v21 = vsub.f32 %v266_v58, %v6419_v38  ;;  %v271_v36 = vld [vmem:[#allocation5 + $0x738] sm:$0xff] }
 0x2c9   :  { %v361_v3 = vrot.slane %v14194_v10, %v15753_v6  ;;  %10296 = vmatpush3.bf16.msra.mxu1 %v13674_v2  ;;  %v14212_v34 = vsub.f32 %v267_v40, %v6422_v44  ;;  %v6425_v17 = vand.u32 4294901760, %v268_v29  ;;  %v6428_v13 = vand.u32 4294901760, %v269_v43 }
 0x2ca   :  { %10298 = vmatprep.subr.bf16.mxu1 %v13688_v1  ;;  %v14215_v47 = vpack.c.bf16 %v6476_v15, %v6473_v42  ;;  %v6641_v9 = vand.u32 4294901760, %v6640_v18  ;;  %v15075_v49 = vand.u32 4294901760, %v14178_v60  ;;  %v15079_v19 = vand.u32 4294901760, %v14182_v26  ;;  %v270_v1 = vld [vmem:[#allocation5 + $0x730] sm:$0xff] }
 0x2cb   :  { %10272 = vmatpush3.bf16.msra.mxu0 %v10271_v14  ;;  %v14219_v2 = vsub.f32 %v284_v27, %v6473_v42  ;;  %v14221_v58 = vsub.f32 %v285_v45, %v6476_v15  ;;  %v6648_v40 = vand.u32 4294901760, %v6647_v30  ;;  %v14223_v38 = vand.u32 4294901760, %v361_v3  ;;  %v288_v45 = vld [vmem:[#allocation5 + $0x7c0] sm:$0xff] }
 0x2cc   :  { %10274 = vmatprep.subr.bf16.mxu0 %v10273_v50  ;;  %v6529_v44 = vand.u32 4294901760, %v6528_v61  ;;  %v6536_v6 = vand.u32 4294901760, %v6535_v35  ;;  %v6479_v14 = vand.u32 4294901760, %v286_v51  ;;  %v6482_v11 = vand.u32 4294901760, %v287_v53  ;;  %v289_v35 = vld [vmem:[#allocation5 + $0x7c8] sm:$0xff] }
 0x2cd   :  { %15754 = vst [vmem:[#allocation30_spill] sm:$0xff] %v14223_v38  ;;  %10300 = vmatpush3.bf16.msra.mxu1 %v15710_v23  ;;  %v14226_v18 = vpack.c.bf16 %v6428_v13, %v6425_v17  ;;  %v14228_v54 = vsub.f32 %v268_v29, %v6425_v17  ;;  %v15077_v50 = vand.u32 4294901760, %v14210_v21  ;;  %v15078_v27 = vand.u32 4294901760, %v14212_v34 }
 0x2ce   :  { %10302 = vmatprep.subr.bf16.mxu1 %v15711_v55  ;;  %v14234_v42 = vsub.f32 %v269_v43, %v6428_v13  ;;  %v6654_v15 = vsub.f32 %v14178_v60, %v15075_v49  ;;  %v6661_v23 = vsub.f32 %v14182_v26, %v15079_v19  ;;  %v14243_v29 = vpack.c.bf16 %v6648_v40, %v6641_v9 }
 0x2cf   :  { %15755 = vst [vmem:[#allocation29_spill] sm:$0xff] %v14226_v18  ;;  %15756 = vst [vmem:[#allocation15_spill] sm:$0xff] %v14228_v54  ;;  %10276 = vmatpush3.bf16.msra.mxu0 %v14133_v4  ;;  %v6431_v30 = vand.u32 4294901760, %v270_v1  ;;  %v6434_v61 = vand.u32 4294901760, %v271_v36  ;;  %v14246_v4 = vsub.f32 %v361_v3, %v14223_v38  ;;  %v14248_v43 = vpack.c.bf16 %v6536_v6, %v6529_v44 }
 0x2d0   :  { %15757 = vst [vmem:[#allocation16_spill] sm:$0xff] %v14234_v42  ;;  %10278 = vmatprep.subr.bf16.mxu0 %v14139_v8  ;;  %v14250_v17 = vpack.c.bf16 %v6482_v11, %v6479_v14  ;;  %v14252_v13 = vsub.f32 %v286_v51, %v6479_v14  ;;  %v6485_v49 = vand.u32 4294901760, %v288_v45  ;;  %v6542_v8 = vsub.f32 %v14210_v21, %v15077_v50 }
 0x2d1   :  { %15758 = vst [vmem:[#allocation21_spill] sm:$0xff] %v14246_v4  ;;  %v8239_v55 = vpop.f32.mrb[26].mxu0  ;;  %10304 = vmatpush3.bf16.msra.mxu1 %v15714_v33  ;;  %v6549_v3 = vsub.f32 %v14212_v34, %v15078_v27  ;;  %v15082_v9 = vand.u32 4294901760, %v14219_v2  ;;  %v6655_v51 = vand.u32 4294901760, %v6654_v15  ;;  %v6662_v6 = vand.u32 4294901760, %v6661_v23 }
 0x2d2   :  { %15759 = vst [vmem:[#allocation14_spill] sm:$0xff] %v14250_v17  ;;  %v8240_v56 = vpop.f32.mrb[27].mxu0  ;;  %10306 = vmatprep.subr.bf16.mxu1 %v15715_v0  ;;  %v6488_v33 = vand.u32 4294901760, %v289_v35  ;;  %v14266_v14 = vsub.f32 %v287_v53, %v6482_v11  ;;  %v15081_v50 = vand.u32 4294901760, %v14228_v54  ;;  %v15080_v27 = vand.u32 4294901760, %v14234_v42 }
 0x2d3   :  { %v8241_v44 = vadd.f32 %v8240_v56, %v8239_v55  ;;  %10280 = vmatpush3.bf16.msra.mxu0 %v14146_v28  ;;  %v15083_v19 = vand.u32 4294901760, %v14246_v4  ;;  %v14272_v56 = vpack.c.bf16 %v6434_v61, %v6431_v30  ;;  %v14274_v28 = vsub.f32 %v270_v1, %v6431_v30  ;;  %v272_v55 = vld [vmem:[#allocation5 + $0x740] sm:$0xff] }
 0x2d4   :  { %10282 = vmatprep.subr.bf16.mxu0 %v14152_v5  ;;  %v14276_v0 = vsub.f32 %v271_v36, %v6434_v61  ;;  %v6543_v15 = vand.u32 4294901760, %v6542_v8  ;;  %v6550_v5 = vand.u32 4294901760, %v6549_v3  ;;  %v6668_v11 = vsub.f32 %v14219_v2, %v15082_v9  ;;  %v291_v3 = vld [vmem:[#allocation5 + $0x7d8] sm:$0xff] }
 0x2d5   :  { %v4305_v40 = vadd.f32 %v8241_v44, %v14078_v24  ;;  %15760 = vst [vmem:[#allocation23_spill] sm:$0xff] %v14272_v56  ;;  %15761 = vst [vmem:[#allocation17_spill] sm:$0xff] %v14274_v28  ;;  %10308 = vmatpush3.bf16.msra.mxu1 %v15716_v32  ;;  %v15763_v53 = vand.u32 4294901760, %v14221_v58  ;;  %v273_v24 = vld [vmem:[#allocation5 + $0x748] sm:$0xff]  ;;  %v14287_v36 = vpack.c.bf16 %v6662_v6, %v6655_v51  ;;  %v6437_v44 = vand.u32 4294901760, %v272_v55 }
 0x2d6   :  { %15762 = vst [vmem:[#allocation20_spill] sm:$0xff] %v14276_v0  ;;  %10310 = vmatprep.subr.bf16.mxu1 %v15717_v22  ;;  %v14289_v1 = vpack.c.bf16 %v6488_v33, %v6485_v49  ;;  %v14291_v32 = vsub.f32 %v288_v45, %v6485_v49  ;;  %v14294_v61 = vsub.f32 %v289_v35, %v6488_v33  ;;  %v290_v22 = vld [vmem:[#allocation5 + $0x7d0] sm:$0xff]  ;;  %v6440_v51 = vand.u32 4294901760, %v273_v24 }
 0x2d7   :  { %v6675_v23 = vsub.f32 %v14221_v58, %v15763_v53  ;;  %10284 = vmatpush3.bf16.msra.mxu0 %v14158_v37  ;;  %v8274_v30 = vpop.f32.mrb[26].mxu1  ;;  %v6556_v8 = vsub.f32 %v14228_v54, %v15081_v50  ;;  %v6563_v37 = vsub.f32 %v14234_v42, %v15080_v27  ;;  %v6511_v49 = vsub.f32 %v14246_v4, %v15083_v19  ;;  %v15765_v50 = vld [vmem:[#allocation28_spill] sm:$0xff]  ;;  %v275_v54 = vld [vmem:[#allocation5 + $0x758] sm:$0xff] }
 0x2d8   :  { %15764 = vst [vmem:[#allocation13_spill] sm:$0xff] %v14289_v1  ;;  %10286 = vmatprep.subr.bf16.mxu0 %v14170_v7  ;;  %v8275_v45 = vpop.f32.mrb[27].mxu1  ;;  %v14308_v33 = vpack.c.bf16 %v6550_v5, %v6543_v15  ;;  %v6669_v53 = vand.u32 4294901760, %v6668_v11  ;;  %v6491_v9 = vand.u32 4294901760, %v290_v22  ;;  %v6494_v19 = vand.u32 4294901760, %v291_v3  ;;  %v274_v42 = vld [vmem:[#allocation5 + $0x750] sm:$0xff] }
 0x2d9   :  { %v8276_v6 = vadd.f32 %v8275_v45, %v8274_v30  ;;  %10312 = vmatpush3.bf16.msra.mxu1 %v13832_v59  ;;  %v6676_v27 = vand.u32 4294901760, %v6675_v23  ;;  %v15090_v4 = vand.u32 4294901760, %v14274_v28  ;;  %v6557_v59 = vand.u32 4294901760, %v6556_v8  ;;  %v15769_v7 = vld [vmem:[#allocation12_spill] sm:$0xff] }
 0x2da   :  { %10314 = vmatprep.subr.bf16.mxu1 %v15765_v50  ;;  %v6564_v15 = vand.u32 4294901760, %v6563_v37  ;;  %v6512_v5 = vand.u32 4294901760, %v6511_v49  ;;  %v14317_v11 = vpack.c.bf16 %v6440_v51, %v6437_v44  ;;  %v15767_v50 = vand.u32 4294901760, %v14252_v13 }
 0x2db   :  { %10288 = vmatpush3.bf16.msra.mxu0 %v14176_v25  ;;  %v14314_v35 = vadd.f32 %v8276_v6, %v4305_v40  ;;  %v14319_v25 = vsub.f32 %v272_v55, %v6437_v44  ;;  %v15768_v30 = vand.u32 4294901760, %v14266_v14  ;;  %v14329_v40 = vpack.c.bf16 %v6676_v27, %v6669_v53  ;;  %v14333_v55 = vld [vmem:[#allocation5 + $0x7e0] sm:$0xff] }
 0x2dc   :  { %10322 = vmatprep.subr.bf16.mxu0 %v14187_v48  ;;  %15766 = vst [vmem:[#allocation27_spill] sm:$0xff] %v14317_v11  ;;  %v6682_v23 = vsub.f32 %v14252_v13, %v15767_v50  ;;  %v14331_v8 = vsub.f32 %v273_v24, %v6440_v51  ;;  %v6443_v37 = vand.u32 4294901760, %v274_v42  ;;  %v6446_v49 = vand.u32 4294901760, %v275_v54  ;;  %v14345_v24 = vld [vmem:[#allocation5 + $0x7e8] sm:$0xff] }
 0x2dd   :  { %v6689_v45 = vsub.f32 %v14266_v14, %v15768_v30  ;;  %10316 = vmatpush3.bf16.msra.mxu1 %v13968_v57  ;;  %v14337_v44 = vsub.f32 %v290_v22, %v6491_v9  ;;  %v6570_v6 = vsub.f32 %v14274_v28, %v15090_v4  ;;  %v15771_v57 = vand.u32 4294901760, %v14276_v0 }
 0x2de   :  { %6303 = vmatmul.mubr.f32.vlgmr.msra.gmra.mrb[40].mxu0 %v15769_v7  ;;  %10318 = vmatprep.subr.bf16.mxu1 %v13991_v62  ;;  %v14348_v51 = vpack.c.bf16 %v6564_v15, %v6557_v59  ;;  %v14350_v53 = vpack.c.bf16 %v6494_v19, %v6491_v9  ;;  %v14352_v50 = vsub.f32 %v291_v3, %v6494_v19  ;;  %v14354_v62 = vld [vmem:[#allocation5 + $0x760] sm:$0xff]  ;;  %v6683_v22 = vand.u32 4294901760, %v6682_v23  ;;  %v14365_v3 = vld [vmem:[#allocation5 + $0x768] sm:$0xff]  ;;  %v14413_v19 = vld [vmem:[#allocation5 + $0x770] sm:$0xff] }
 0x2df   :  { %10324 = vmatpush3.bf16.msra.mxu0 %v14189_v46  ;;  %15770 = vst [vmem:[#allocation25_spill] sm:$0xff] %v14337_v44  ;;  %v6577_v27 = vsub.f32 %v14276_v0, %v15771_v57  ;;  %6513 = vmatprep.mubr.f32.mxu0 %v6512_v5  ;;  %v6690_v30 = vand.u32 4294901760, %v6689_v45  ;;  %v15095_v4 = vand.u32 4294901760, %v14333_v55  ;;  %v15096_v28 = vand.u32 4294901760, %v14291_v32  ;;  %v14375_v45 = vld [vmem:[#allocation5 + $0x7f0] sm:$0xff] }
 0x2e0   :  { %10326 = vmatprep.subr.bf16.mxu0 %v14199_v41  ;;  %15772 = vst [vmem:[#allocation18_spill] sm:$0xff] %v14350_v53  ;;  %15773 = vst [vmem:[#allocation26_spill] sm:$0xff] %v14352_v50  ;;  %v14359_v57 = vpack.c.bf16 %v6446_v49, %v6443_v37  ;;  %v14361_v0 = vsub.f32 %v274_v42, %v6443_v37  ;;  %v15097_v9 = vand.u32 4294901760, %v14345_v24  ;;  %v6571_v15 = vand.u32 4294901760, %v6570_v6  ;;  %v14377_v37 = vld [vmem:[#allocation5 + $0x7f8] sm:$0xff] }
 0x2e1   :  { %10320 = vmatpush3.bf16.msra.mxu1 %v14008_v20  ;;  %v14369_v59 = vsub.f32 %v275_v54, %v6446_v49  ;;  %v6578_v5 = vand.u32 4294901760, %v6577_v27  ;;  %v15098_v20 = vand.u32 4294901760, %v14354_v62  ;;  %v15101_v42 = vand.u32 4294901760, %v14319_v25 }
 0x2e2   :  { %10354 = vmatprep.subr.bf16.mxu1 %v14243_v29  ;;  %v15102_v23 = vand.u32 4294901760, %v14331_v8  ;;  %v10365_v54 = vpack.c.bf16 %v6690_v30, %v6683_v22  ;;  %v14385_v49 = vsub.f32 %v14333_v55, %v15095_v4  ;;  %v6696_v6 = vsub.f32 %v14291_v32, %v15096_v28 }
 0x2e3   :  { %10328 = vmatpush3.bf16.msra.mxu0 %v14201_v52  ;;  %15774 = vst [vmem:[#allocation22_spill] sm:$0xff] %v14369_v59  ;;  %v6452_v27 = vand.u32 4294901760, %v14365_v3  ;;  %v14395_v29 = vsub.f32 %v14345_v24, %v15097_v9  ;;  %v15777_v30 = vsub.s32 6, %v15752_v39  ;;  %v14409_v28 = vsub.f32 %v14354_v62, %v15098_v20  ;;  %v14415_v39 = vld [vmem:[#allocation5 + $0x778] sm:$0xff] }
 0x2e4   :  { %10330 = vmatprep.subr.bf16.mxu0 %v14215_v47  ;;  %6407 = vmatmul.mubr.f32.vlgmr.msra.gmra.mrb[40].mxu1 %v15769_v7  ;;  %v15776_v7 = vand.u32 4294901760, %v14294_v61 }
 0x2e5   :  { %10356 = vmatpush3.bf16.msra.mxu1 %v14248_v43  ;;  %15775 = vst [vmem:[#allocation19_spill] sm:$0xff] %v14395_v29  ;;  %v357_v4 = vrot.slane %v14194_v10, %v15777_v30  ;;  %6749 = vmatprep.mubr.f32.mxu1 %v14223_v38  ;;  %v10367_v43 = vpack.c.bf16 %v6578_v5, %v6571_v15  ;;  %v15778_v15 = vand.u32 4294901760, %v14337_v44  ;;  %v15779_v30 = vand.u32 4294901760, %v14352_v50 }
 0x2e6   :  { %v6703_v22 = vsub.f32 %v14294_v61, %v15776_v7  ;;  %10358 = vmatprep.subr.bf16.mxu1 %v14287_v36  ;;  %v6584_v10 = vsub.f32 %v14319_v25, %v15101_v42  ;;  %v6591_v36 = vsub.f32 %v14331_v8, %v15102_v23  ;;  %v6697_v7 = vand.u32 4294901760, %v6696_v6 }
 0x2e7   :  { %10332 = vmatpush3.bf16.msra.mxu0 %v14226_v18  ;;  %v6710_v5 = vsub.f32 %v14337_v44, %v15778_v15  ;;  %v6717_v20 = vsub.f32 %v14352_v50, %v15779_v30  ;;  %v14431_v9 = vsub.f32 %v14365_v3, %v6452_v27  ;;  %v14438_v18 = vand.u32 4294901760, %v357_v4 }
 0x2e8   :  { %10334 = vmatprep.subr.bf16.mxu0 %v14250_v17  ;;  %v6704_v3 = vand.u32 4294901760, %v6703_v22  ;;  %v15780_v6 = vand.u32 4294901760, %v14375_v45  ;;  %v6585_v15 = vand.u32 4294901760, %v6584_v10  ;;  %v6592_v42 = vand.u32 4294901760, %v6591_v36 }
 0x2e9   :  { %10360 = vmatpush3.bf16.msra.mxu1 %v14308_v33  ;;  %v15781_v33 = vand.u32 4294901760, %v14377_v37  ;;  %v6711_v38 = vand.u32 4294901760, %v6710_v5  ;;  %v15784_v17 = vand.u32 4294901760, %v14413_v19  ;;  %v14475_v5 = vsub.f32 %v357_v4, %v14438_v18 }
 0x2ea   :  { %10362 = vmatprep.subr.bf16.mxu1 %v14329_v40  ;;  %v14446_v30 = vsub.f32 %v14375_v45, %v15780_v6  ;;  %v15782_v40 = vand.u32 4294901760, %v14361_v0  ;;  %v15783_v6 = vand.u32 4294901760, %v14369_v59  ;;  %v15788_v4 = vand.u32 4294901760, %v14333_v55 }
 0x2eb   :  { %10336 = vmatpush3.bf16.msra.mxu0 %v14272_v56  ;;  %v14451_v23 = vsub.f32 %v14377_v37, %v15781_v33  ;;  %v6718_v56 = vand.u32 4294901760, %v6717_v20  ;;  %v14467_v10 = vsub.f32 %v14413_v19, %v15784_v17  ;;  %v15785_v20 = vand.u32 4294901760, %v14415_v39 }
 0x2ec   :  { %10338 = vmatprep.subr.bf16.mxu0 %v14289_v1  ;;  %v6598_v22 = vsub.f32 %v14361_v0, %v15782_v40  ;;  %v6605_v50 = vsub.f32 %v14369_v59, %v15783_v6  ;;  %v15786_v40 = vand.u32 4294901760, %v14385_v49  ;;  %v15787_v33 = vand.u32 4294901760, %v14395_v29 }
 0x2ed   :  { %10364 = vmatpush3.bf16.msra.mxu1 %v14348_v51  ;;  %v14472_v36 = vsub.f32 %v14415_v39, %v15785_v20  ;;  %v10369_v51 = vpack.c.bf16 %v6704_v3, %v6697_v7  ;;  %v15789_v1 = vand.u32 4294901760, %v14345_v24  ;;  %v10371_v7 = vpack.c.bf16 %v6592_v42, %v6585_v15 }
 0x2ee   :  { %v6724_v6 = vsub.f32 %v14385_v49, %v15786_v40  ;;  %10366 = vmatprep.subr.bf16.mxu1 %v10365_v54  ;;  %v6731_v17 = vsub.f32 %v14395_v29, %v15787_v33  ;;  %v15790_v40 = vand.u32 4294901760, %v14354_v62  ;;  %v10373_v3 = vpack.c.bf16 %v6718_v56, %v6711_v38 }
 0x2ef   :  { %10340 = vmatpush3.bf16.msra.mxu0 %v14317_v11  ;;  %v14491_v59 = vpack.c.bf16 %v15789_v1, %v15788_v4  ;;  %v6599_v33 = vand.u32 4294901760, %v6598_v22  ;;  %v6606_v29 = vand.u32 4294901760, %v6605_v50  ;;  %v15791_v44 = vand.u32 4294901760, %v14409_v28 }
 0x2f0   :  { %10342 = vmatprep.subr.bf16.mxu0 %v14350_v53  ;;  %v14495_v54 = vpack.c.bf16 %v6452_v27, %v15790_v40  ;;  %v15792_v53 = vand.u32 4294901760, %v14431_v9  ;;  %v6516_v1 = vand.u32 4294901760, %v14475_v5  ;;  %v6725_v62 = vand.u32 4294901760, %v6724_v6 }
 0x2f1   :  { %v8309_v11 = vpop.f32.mrb[28].mxu0  ;;  %v6612_v20 = vsub.f32 %v14409_v28, %v15791_v44  ;;  %10368 = vmatpush3.bf16.msra.mxu1 %v10367_v43  ;;  %v15124_v27 = vand.u32 4294901760, %v14467_v10  ;;  %v15123_v38 = vand.u32 4294901760, %v14472_v36  ;;  %v6732_v50 = vand.u32 4294901760, %v6731_v17 }
 0x2f2   :  { %v6619_v55 = vsub.f32 %v14431_v9, %v15792_v53  ;;  %v8310_v24 = vpop.f32.mrb[29].mxu0  ;;  %10370 = vmatprep.subr.bf16.mxu1 %v10369_v51  ;;  %v15793_v44 = vand.u32 4294901760, %v14446_v30  ;;  %v15794_v53 = vand.u32 4294901760, %v14451_v23  ;;  %v15795_v15 = vand.u32 4294901760, %v14375_v45 }
 0x2f3   :  { %v8311_v56 = vadd.f32 %v8310_v24, %v8309_v11  ;;  %10344 = vmatpush3.bf16.msra.mxu0 %v14359_v57  ;;  %v15796_v22 = vand.u32 4294901760, %v14377_v37  ;;  %v6613_v51 = vand.u32 4294901760, %v6612_v20  ;;  %v10375_v4 = vpack.c.bf16 %v6606_v29, %v6599_v33 }
 0x2f4   :  { %v6738_v42 = vsub.f32 %v14446_v30, %v15793_v44  ;;  %v6745_v43 = vsub.f32 %v14451_v23, %v15794_v53  ;;  %10346 = vmatprep.subr.bf16.mxu0 %v14491_v59  ;;  %v6620_v17 = vand.u32 4294901760, %v6619_v55  ;;  %v6517_v40 = vsub.f32 %v14475_v5, %v6516_v1 }
 0x2f5   :  { %v14518_v6 = vpack.c.bf16 %v15796_v22, %v15795_v15  ;;  %v4581_v11 = vadd.f32 %v8311_v56, %v14314_v35  ;;  %10372 = vmatpush3.bf16.msra.mxu1 %v10371_v7  ;;  %v6626_v24 = vsub.f32 %v14467_v10, %v15124_v27  ;;  %v6633_v45 = vsub.f32 %v14472_v36, %v15123_v38 }
 0x2f6   :  { %10374 = vmatprep.subr.bf16.mxu1 %v10373_v3  ;;  %v15797_v35 = vand.u32 4294901760, %v14413_v19  ;;  %v15798_v37 = vand.u32 4294901760, %v14415_v39  ;;  %v10377_v20 = vpack.c.bf16 %v6732_v50, %v6725_v62  ;;  %v6739_v7 = vand.u32 4294901760, %v6738_v42 }
 0x2f7   :  { %10348 = vmatpush3.bf16.msra.mxu0 %v14495_v54  ;;  %v6746_v33 = vand.u32 4294901760, %v6745_v43  ;;  %v8344_v55 = vpop.f32.mrb[28].mxu1  ;;  %v10385_v56 = vpack.c.bf16 %v14103_v12, %v14095_v31  ;;  %v10379_v53 = vpack.c.bf16 %v6620_v17, %v6613_v51  ;;  %v6518_v3 = vand.u32 4294901760, %v6517_v40  ;;  %v15801_v40 = vld [vmem:[#allocation16_spill] sm:$0xff] }
 0x2f8   :  { %v14535_v29 = vpack.c.bf16 %v15798_v37, %v15797_v35  ;;  %10350 = vmatprep.subr.bf16.mxu0 %v14518_v6  ;;  %v8345_v44 = vpop.f32.mrb[29].mxu1  ;;  %v6627_v22 = vand.u32 4294901760, %v6626_v24  ;;  %v6634_v19 = vand.u32 4294901760, %v6633_v45  ;;  %v10387_v39 = vpack.c.bf16 %v14113_v16, %v14110_v63  ;;  %v15803_v37 = vld [vmem:[#allocation17_spill] sm:$0xff] }
 0x2f9   :  { %v8346_v15 = vadd.f32 %v8345_v44, %v8344_v55  ;;  %10376 = vmatpush3.bf16.msra.mxu1 %v10375_v4  ;;  %v10381_v62 = vpack.c.bf16 %v6746_v33, %v6739_v7  ;;  %v10389_v42 = vpack.c.bf16 %v14182_v26, %v14178_v60  ;;  %v10391_v51 = vpack.c.bf16 %v14212_v34, %v14210_v21  ;;  %v15799_v4 = vld [vmem:[#allocation21_spill] sm:$0xff]  ;;  %v15806_v44 = vld [vmem:[#allocation26_spill] sm:$0xff] }
 0x2fa   :  { %10378 = vmatprep.subr.bf16.mxu1 %v10377_v20  ;;  %v10383_v43 = vpack.c.bf16 %v6634_v19, %v6627_v22  ;;  %v10393_v17 = vpack.c.bf16 %v14221_v58, %v14219_v2  ;;  %v10397_v45 = vpack.c.bf16 %v14266_v14, %v14252_v13  ;;  %v15802_v35 = vand.u32 4294901760, %v15799_v4  ;;  %v15804_v20 = vld [vmem:[#allocation20_spill] sm:$0xff]  ;;  %v15809_v22 = vld [vmem:[#allocation22_spill] sm:$0xff] }
 0x2fb   :  { %10352 = vmatpush3.bf16.msra.mxu0 %v14535_v29  ;;  %v4685_v50 = vadd.f32 %v8346_v15, %v4581_v11  ;;  %v15800_v11 = vld [vmem:[#allocation15_spill] sm:$0xff]  ;;  %v10399_v7 = vpack.c.bf16 %v15804_v20, %v15803_v37  ;;  %v10401_v33 = vpack.c.bf16 %v14294_v61, %v14291_v32  ;;  %v10403_v55 = vpack.c.bf16 %v14331_v8, %v14319_v25  ;;  %v15807_v15 = vld [vmem:[#allocation29_spill] sm:$0xff] }
 0x2fc   :  { %10386 = vmatprep.subr.bf16.mxu0 %v10385_v56  ;;  %v10395_v24 = vpack.c.bf16 %v15801_v40, %v15800_v11  ;;  %v15805_v56 = vld [vmem:[#allocation25_spill] sm:$0xff]  ;;  %v10407_v19 = vpack.c.bf16 %v15809_v22, %v14361_v0 }
 0x2fd   :  { %10380 = vmatpush3.bf16.msra.mxu1 %v10379_v53  ;;  %v10405_v53 = vpack.c.bf16 %v15806_v44, %v15805_v56 }
 0x2fe   :  { %6519 = vmatmul.mubr.f32.vlgmr.msra.gmra.mrb[42].mxu0 %v6518_v3  ;;  %10382 = vmatprep.subr.bf16.mxu1 %v10381_v62  ;;  %v15808_v3 = vld [vmem:[#allocation14_spill] sm:$0xff] }
 0x2ff   :  { %10388 = vmatpush3.bf16.msra.mxu0 %v10387_v39  ;;  %6886 = vmatprep.mubr.f32.mxu0 %v15799_v4  ;;  %v15810_v39 = vld [vmem:[#allocation19_spill] sm:$0xff]  ;;  %v15812_v4 = vld [vmem:[#allocation13_spill] sm:$0xff] }
 0x300   :  { %10390 = vmatprep.subr.bf16.mxu0 %v10389_v42  ;;  %v10409_v62 = vpack.c.bf16 %v15810_v39, %v14385_v49 }
 0x301   :  { %10384 = vmatpush3.bf16.msra.mxu1 %v10383_v43 }
 0x302   :  { %10418 = vmatprep.subr.bf16.mxu1 %v14187_v48 }
 0x303   :  { %10392 = vmatpush3.bf16.msra.mxu0 %v10391_v51  ;;  %v15811_v51 = vld [vmem:[#allocation23_spill] sm:$0xff] }
 0x304   :  { %10394 = vmatprep.subr.bf16.mxu0 %v10393_v17  ;;  %6751 = vmatmul.mubr.f32.vlgmr.msra.gmra.mrb[42].mxu1 %v14438_v18 }
 0x305   :  { %10420 = vmatpush3.bf16.msra.mxu1 %v14189_v46  ;;  %6993 = vmatprep.mubr.f32.mxu1 %v15802_v35 }
 0x306   :  { %10422 = vmatprep.subr.bf16.mxu1 %v14199_v41 }
 0x307   :  { %10396 = vmatpush3.bf16.msra.mxu0 %v10395_v24  ;;  %v10411_v24 = vpack.c.bf16 %v14431_v9, %v14409_v28 }
 0x308   :  { %10398 = vmatprep.subr.bf16.mxu0 %v10397_v45  ;;  %v10413_v45 = vpack.c.bf16 %v14451_v23, %v14446_v30 }
 0x309   :  { %10424 = vmatpush3.bf16.msra.mxu1 %v14201_v52 }
 0x30a   :  { %10426 = vmatprep.subr.bf16.mxu1 %v14215_v47 }
 0x30b   :  { %10400 = vmatpush3.bf16.msra.mxu0 %v10399_v7  ;;  %v15813_v7 = vld [vmem:[#allocation27_spill] sm:$0xff] }
 0x30c   :  { %10402 = vmatprep.subr.bf16.mxu0 %v10401_v33  ;;  %v15814_v33 = vld [vmem:[#allocation18_spill] sm:$0xff] }
 0x30d   :  { %10428 = vmatpush3.bf16.msra.mxu1 %v15807_v15 }
 0x30e   :  { %10430 = vmatprep.subr.bf16.mxu1 %v15808_v3 }
 0x30f   :  { %10404 = vmatpush3.bf16.msra.mxu0 %v10403_v55  ;;  %v10415_v55 = vpack.c.bf16 %v14472_v36, %v14467_v10 }
 0x310   :  { %10406 = vmatprep.subr.bf16.mxu0 %v10405_v53 }
 0x311   :  { %v8379_v42 = vpop.f32.mrb[30].mxu0  ;;  %10432 = vmatpush3.bf16.msra.mxu1 %v15811_v51 }
 0x312   :  { %v8380_v43 = vpop.f32.mrb[31].mxu0  ;;  %10434 = vmatprep.subr.bf16.mxu1 %v15812_v4 }
 0x313   :  { %v8381_v17 = vadd.f32 %v8380_v43, %v8379_v42  ;;  %10408 = vmatpush3.bf16.msra.mxu0 %v10407_v19  ;;  %v15815_v19 = vand.u32 4294901760, %v14095_v31  ;;  %v15816_v42 = vand.u32 4294901760, %v14103_v12  ;;  %v15820_v31 = vand.u32 4294901760, %v14182_v26  ;;  %v15825_v26 = vld [vmem:[#allocation30_spill] sm:$0xff] }
 0x314   :  { %10410 = vmatprep.subr.bf16.mxu0 %v10409_v62 }
 0x315   :  { %v4797_v35 = vadd.f32 %v8381_v17, %v4685_v50  ;;  %10436 = vmatpush3.bf16.msra.mxu1 %v15813_v7  ;;  %v10449_v43 = vpack.c.bf16 %v15816_v42, %v15815_v19  ;;  %v15817_v50 = vand.u32 4294901760, %v14110_v63  ;;  %v15818_v17 = vand.u32 4294901760, %v14113_v16 }
 0x316   :  { %10438 = vmatprep.subr.bf16.mxu1 %v15814_v33  ;;  %v15822_v63 = vand.u32 4294901760, %v14212_v34  ;;  %v15828_v34 = vand.u32 4294901760, %v14252_v13  ;;  %v15832_v13 = vand.u32 4294901760, %v14291_v32 }
 0x317   :  { %10412 = vmatpush3.bf16.msra.mxu0 %v10411_v24  ;;  %v8414_v53 = vpop.f32.mrb[30].mxu1  ;;  %v10451_v24 = vpack.c.bf16 %v15818_v17, %v15817_v50 }
 0x318   :  { %10414 = vmatprep.subr.bf16.mxu0 %v10413_v45  ;;  %v8415_v62 = vpop.f32.mrb[31].mxu1  ;;  %v15819_v45 = vand.u32 4294901760, %v14178_v60  ;;  %v15824_v60 = vand.u32 4294901760, %v14221_v58  ;;  %v15831_v58 = vand.u32 4294901760, %v15804_v20 }
 0x319   :  { %v8416_v38 = vadd.f32 %v8415_v62, %v8414_v53  ;;  %10440 = vmatpush3.bf16.msra.mxu1 %v14359_v57  ;;  %v15826_v53 = vand.u32 4294901760, %v15800_v11 }
 0x31a   :  { %10442 = vmatprep.subr.bf16.mxu1 %v14491_v59  ;;  %v10453_v12 = vpack.c.bf16 %v15820_v31, %v15819_v45 }
 0x31b   :  { %10416 = vmatpush3.bf16.msra.mxu0 %v10415_v55  ;;  %v5029_v27 = vadd.f32 %v8416_v38, %v4797_v35  ;;  %v15821_v55 = vand.u32 4294901760, %v14210_v21  ;;  %v15823_v38 = vand.u32 4294901760, %v14219_v2  ;;  %v15827_v21 = vand.u32 4294901760, %v15801_v40 }
 0x31c   :  { %10450 = vmatprep.subr.bf16.mxu0 %v10449_v43  ;;  %v15829_v2 = vand.u32 4294901760, %v14266_v14  ;;  %v15833_v14 = vand.u32 4294901760, %v14294_v61  ;;  %v15840_v61 = vand.u32 4294901760, %v14385_v49  ;;  %v15845_v49 = vand.u32 4294901760, %v14451_v23 }
 0x31d   :  { %10444 = vmatpush3.bf16.msra.mxu1 %v14495_v54  ;;  %v10455_v16 = vpack.c.bf16 %v15822_v63, %v15821_v55  ;;  %v10457_v35 = vpack.c.bf16 %v15824_v60, %v15823_v38  ;;  %v10459_v19 = vpack.c.bf16 %v15827_v21, %v15826_v53 }
 0x31e   :  { %6889 = vmatmul.mubr.f32.vlgmr.msra.gmra.mrb[44].mxu0 %v14475_v5  ;;  %10446 = vmatprep.subr.bf16.mxu1 %v14518_v6  ;;  %v10461_v42 = vpack.c.bf16 %v15829_v2, %v15828_v34  ;;  %v10465_v40 = vpack.c.bf16 %v15833_v14, %v15832_v13 }
 0x31f   :  { %10452 = vmatpush3.bf16.msra.mxu0 %v10451_v24  ;;  %7163 = vmatprep.mubr.f32.mxu0 %v15825_v26 }
 0x320   :  { %10454 = vmatprep.subr.bf16.mxu0 %v10453_v12 }
 0x321   :  { %10448 = vmatpush3.bf16.msra.mxu1 %v14535_v29 }
 0x322   :  { %10482 = vmatprep.subr.bf16.mxu1 %v14187_v48  ;;  %v15830_v48 = vand.u32 4294901760, %v15803_v37  ;;  %v15837_v37 = vand.u32 4294901760, %v15806_v44 }
 0x323   :  { %10456 = vmatpush3.bf16.msra.mxu0 %v10455_v16 }
 0x324   :  { %10458 = vmatprep.subr.bf16.mxu0 %v10457_v35  ;;  %6997 = vmatmul.mubr.f32.vlgmr.msra.gmra.mrb[44].mxu1 %v6516_v1  ;;  %v10463_v11 = vpack.c.bf16 %v15831_v58, %v15830_v48  ;;  %v15836_v1 = vand.u32 4294901760, %v15805_v56 }
 0x325   :  { %10484 = vmatpush3.bf16.msra.mxu1 %v14189_v46  ;;  %7267 = vmatprep.mubr.f32.mxu1 %v15825_v26  ;;  %v15834_v46 = vand.u32 4294901760, %v14319_v25  ;;  %v15841_v25 = vand.u32 4294901760, %v15810_v39 }
 0x326   :  { %10486 = vmatprep.subr.bf16.mxu1 %v14199_v41  ;;  %v15835_v41 = vand.u32 4294901760, %v14331_v8  ;;  %v10469_v20 = vpack.c.bf16 %v15837_v37, %v15836_v1 }
 0x327   :  { %10460 = vmatpush3.bf16.msra.mxu0 %v10459_v19  ;;  %v10473_v8 = vpack.c.bf16 %v15841_v25, %v15840_v61 }
 0x328   :  { %10462 = vmatprep.subr.bf16.mxu0 %v10461_v42  ;;  %v10467_v5 = vpack.c.bf16 %v15835_v41, %v15834_v46 }
 0x329   :  { %10488 = vmatpush3.bf16.msra.mxu1 %v14201_v52  ;;  %v15838_v52 = vand.u32 4294901760, %v14361_v0  ;;  %v15843_v0 = vand.u32 4294901760, %v14431_v9 }
 0x32a   :  { %10490 = vmatprep.subr.bf16.mxu1 %v14215_v47  ;;  %v15839_v47 = vand.u32 4294901760, %v15809_v22  ;;  %v15844_v22 = vand.u32 4294901760, %v14446_v30 }
 0x32b   :  { %10464 = vmatpush3.bf16.msra.mxu0 %v10463_v11 }
 0x32c   :  { %10466 = vmatprep.subr.bf16.mxu0 %v10465_v40  ;;  %v10471_v32 = vpack.c.bf16 %v15839_v47, %v15838_v52  ;;  %v10477_v39 = vpack.c.bf16 %v15845_v49, %v15844_v22 }
 0x32d   :  { %10492 = vmatpush3.bf16.msra.mxu1 %v15807_v15  ;;  %v15842_v15 = vand.u32 4294901760, %v14409_v28 }
 0x32e   :  { %10494 = vmatprep.subr.bf16.mxu1 %v15808_v3 }
 0x32f   :  { %10468 = vmatpush3.bf16.msra.mxu0 %v10467_v5  ;;  %v10475_v3 = vpack.c.bf16 %v15843_v0, %v15842_v15 }
 0x330   :  { %10470 = vmatprep.subr.bf16.mxu0 %v10469_v20 }
 0x331   :  { %v8449_v56 = vpop.f32.mrb[32].mxu0  ;;  %10496 = vmatpush3.bf16.msra.mxu1 %v15811_v51  ;;  %v15846_v51 = vand.u32 4294901760, %v14467_v10 }
 0x332   :  { %v8450_v43 = vpop.f32.mrb[33].mxu0  ;;  %10498 = vmatprep.subr.bf16.mxu1 %v15812_v4  ;;  %v15847_v4 = vand.u32 4294901760, %v14472_v36 }
 0x333   :  { %v8451_v44 = vadd.f32 %v8450_v43, %v8449_v56  ;;  %10472 = vmatpush3.bf16.msra.mxu0 %v10471_v32 }
 0x334   :  { %10474 = vmatprep.subr.bf16.mxu0 %v10473_v8  ;;  %v10479_v28 = vpack.c.bf16 %v15847_v4, %v15846_v51 }
 0x335   :  { %v5167_v62 = vadd.f32 %v8451_v44, %v5029_v27  ;;  %10500 = vmatpush3.bf16.msra.mxu1 %v15813_v7 }
 0x336   :  { %10502 = vmatprep.subr.bf16.mxu1 %v15814_v33 }
 0x337   :  { %10476 = vmatpush3.bf16.msra.mxu0 %v10475_v3  ;;  %v8484_v50 = vpop.f32.mrb[32].mxu1 }
 0x338   :  { %10478 = vmatprep.subr.bf16.mxu0 %v10477_v39  ;;  %v8485_v9 = vpop.f32.mrb[33].mxu1 }
 0x339   :  { %v8486_v17 = vadd.f32 %v8485_v9, %v8484_v50  ;;  %10504 = vmatpush3.bf16.msra.mxu1 %v14359_v57 }
 0x33a   :  { %10506 = vmatprep.subr.bf16.mxu1 %v14491_v59 }
 0x33b   :  { %10480 = vmatpush3.bf16.msra.mxu0 %v10479_v28  ;;  %v5275_v23 = vadd.f32 %v8486_v17, %v5167_v62 }
 0x33d   :  { %10508 = vmatpush3.bf16.msra.mxu1 %v14495_v54 }
 0x33e   :  { %7165 = vmatmul.mubr.f32.vlgmr.msra.gmra.mrb[46].mxu0 %v14438_v18  ;;  %10510 = vmatprep.subr.bf16.mxu1 %v14518_v6 }
 0x341   :  { %10512 = vmatpush3.bf16.msra.mxu1 %v14535_v29 }
 0x344   :  { %7269 = vmatmul.mubr.f32.vlgmr.msra.gmra.mrb[46].mxu1 %v14438_v18 }
 0x351   :  { %v8519_v30 = vpop.f32.mrb[34].mxu0 }
 0x352   :  { %v8520_v10 = vpop.f32.mrb[35].mxu0 }
 0x353   :  { %v8521_v36 = vadd.f32 %v8520_v10, %v8519_v30 }
 0x355   :  { %v5443_v27 = vadd.f32 %v8521_v36, %v5275_v23 }
 0x357   :  { %v8554_v7 = vpop.f32.mrb[34].mxu1 }
 0x358   :  { %v8555_v57 = vpop.f32.mrb[35].mxu1 }
 0x359   :  { %v8556_v33 = vadd.f32 %v8555_v57, %v8554_v7 }
 0x35b   :  { %v5547_v24 = vadd.f32 %v8556_v33, %v5443_v27 }
 0x371   :  { %v8589_v59 = vpop.f32.mrb[36].mxu0 }
 0x372   :  { %v8590_v45 = vpop.f32.mrb[37].mxu0 }
 0x373   :  { %v8591_v31 = vadd.f32 %v8590_v45, %v8589_v59 }
 0x375   :  { %v5659_v12 = vadd.f32 %v8591_v31, %v5547_v24 }
 0x377   :  { %v8624_v55 = vpop.f32.mrb[36].mxu1 }
 0x378   :  { %v8625_v54 = vpop.f32.mrb[37].mxu1 }
 0x379   :  { %v8626_v63 = vadd.f32 %v8625_v54, %v8624_v55 }
 0x37b   :  { %v5891_v6 = vadd.f32 %v8626_v63, %v5659_v12 }
 0x391   :  { %v8659_v16 = vpop.f32.mrb[38].mxu0 }
 0x392   :  { %v8660_v29 = vpop.f32.mrb[39].mxu0 }
 0x393   :  { %v8661_v38 = vadd.f32 %v8660_v29, %v8659_v16 }
 0x395   :  { %v6029_v18 = vadd.f32 %v8661_v38, %v5891_v6 }
 0x397   :  { %v8694_v60 = vpop.f32.mrb[38].mxu1 }
 0x398   :  { %v8695_v35 = vpop.f32.mrb[39].mxu1 }
 0x399   :  { %v8696_v26 = vadd.f32 %v8695_v35, %v8694_v60 }
 0x39b   :  { %v6137_v53 = vadd.f32 %v8696_v26, %v6029_v18 }
 0x3b1   :  { %v8729_v21 = vpop.f32.mrb[40].mxu0 }
 0x3b2   :  { %v8730_v19 = vpop.f32.mrb[41].mxu0 }
 0x3b3   :  { %v8731_v34 = vadd.f32 %v8730_v19, %v8729_v21 }
 0x3b5   :  { %v6305_v2 = vadd.f32 %v8731_v34, %v6137_v53 }
 0x3b7   :  { %v8764_v42 = vpop.f32.mrb[40].mxu1 }
 0x3b8   :  { %v8765_v48 = vpop.f32.mrb[41].mxu1 }
 0x3b9   :  { %v8766_v58 = vadd.f32 %v8765_v48, %v8764_v42 }
 0x3bb   :  { %v6409_v11 = vadd.f32 %v8766_v58, %v6305_v2 }
 0x3d1   :  { %v8799_v13 = vpop.f32.mrb[42].mxu0 }
 0x3d2   :  { %v8800_v14 = vpop.f32.mrb[43].mxu0 }
 0x3d3   :  { %v8801_v40 = vadd.f32 %v8800_v14, %v8799_v13 }
 0x3d5   :  { %v6521_v46 = vadd.f32 %v8801_v40, %v6409_v11 }
 0x3d7   :  { %v8834_v41 = vpop.f32.mrb[42].mxu1 }
 0x3d8   :  { %v8835_v5 = vpop.f32.mrb[43].mxu1 }
 0x3d9   :  { %v8836_v1 = vadd.f32 %v8835_v5, %v8834_v41 }
 0x3db   :  { %v6753_v37 = vadd.f32 %v8836_v1, %v6521_v46 }
 0x3f1   :  { %v8869_v20 = vpop.f32.mrb[44].mxu0 }
 0x3f2   :  { %v8870_v52 = vpop.f32.mrb[45].mxu0 }
 0x3f3   :  { %v8871_v47 = vadd.f32 %v8870_v52, %v8869_v20 }
 0x3f5   :  { %v6891_v32 = vadd.f32 %v8871_v47, %v6753_v37 }
 0x3f7   :  { %v8904_v61 = vpop.f32.mrb[44].mxu1 }
 0x3f8   :  { %v8905_v25 = vpop.f32.mrb[45].mxu1 }
 0x3f9   :  { %v8906_v8 = vadd.f32 %v8905_v25, %v8904_v61 }
 0x3fb   :  { %v6999_v56 = vadd.f32 %v8906_v8, %v6891_v32 }
 0x411   :  { %v8939_v43 = vpop.f32.mrb[46].mxu0 }
 0x412   :  { %v8940_v44 = vpop.f32.mrb[47].mxu0 }
 0x413   :  { %v8941_v15 = vadd.f32 %v8940_v44, %v8939_v43 }
 0x415   :  { %v7167_v0 = vadd.f32 %v8941_v15, %v6999_v56 }
 0x417   :  { %v8974_v3 = vpop.f32.mrb[46].mxu1 }
 0x418   :  { %v8975_v22 = vpop.f32.mrb[47].mxu1 }
 0x419   :  { %v8976_v49 = vadd.f32 %v8975_v22, %v8974_v3 }
 0x41b   :  { %v7271_v39 = vadd.f32 %v8976_v49, %v7167_v0 }
 0x41d   :  { %v7274_v62 = vsub.f32 0.0, %v7271_v39 }
 0x41f   :  { %v7275_v51 = vmul.f32 1.442695, %v7274_v62 }
 0x421   :  { %10518 = vpow2.f32 %v7275_v51 }
 0x42b   :  { %v10519_v4 = vpop.eup %10518 }
 0x42c   :  { %v7277_v28 = vadd.f32 1.0, %v10519_v4 }
 0x42e   :  { %10520 = vrcp.f32 %v7277_v28 }
 0x438   :  { %v10521_v50 = vpop.eup %10520 }
 0x439   :  { %7280 = vst [vmem:[#allocation7] sm:$0x1] %v10521_v50 }
 0x43a   :  { %10581 = shalt.err (!%p10578_p6)
}
 0x43b   :  { %s10582_s11 = scalar_lea.hbm %s14692_s2, 16 }
 0x43c   :  { %p10583_p7 = scmp.ne.s32.totalorder %s14692_s2, %s10582_s11  ;;  %p10586_p8 = scmp.lt.u32.totalorder %s10582_s11, %s14692_s2 }
 0x43e   :  { %p10588_p9 = pnand %p10586_p8, %p10583_p7 }
 0x440   :  { %10591 = shalt.err (!%p10588_p9)
}
 0x441   :  { %7290 = dma.vmem_to_hbm [thread:$0]  %s7288_s6, 16, %s14692_s2, [#allocation4]  }
 0x442   :  { %10596 = dma.done.wait [#allocation4], 16  }
 0x443   :  { %10597 = vsyncadd [#allocation4], 4294967280 }
 0x444   :  { %7294 = vsyncpa [#allocation3], 1 }
 0x445   :  { %7295 = vsyncpa [#allocation6], 1 }
 0x446   :  { %7296 = vsyncpa [#allocation4], 1 }

</bundles_post_ra>
